<compile_context>
chip_gen: v6e
topology: v6e:2x2x1
jax: 0.10.0
libtpu: 0.0.40
codegen_flags: <defaults>
</compile_context>

<pallas_src>
import jax
import jax.numpy as jnp
from jax.experimental import pallas as pl
from jax.experimental.pallas import tpu as pltpu


def _round_up(x, m):
    return (x + m - 1) // m * m


def _sigmoid(x):
    return 1.0 / (1.0 + jnp.exp(-x))


# ----------------------------------------------------------------------------
# Kernel 1: fused feature compression + LSTM input-to-hidden projection.
#   gates_x = (X @ Wc^T + bc) @ W_ih^T + (b_ih + b_hh)
# ----------------------------------------------------------------------------
def project_kernel(x_ref, wc_ref, bc_ref, wih_ref, bg_ref, gx_ref):
    comp = (jnp.dot(x_ref[...], wc_ref[...], preferred_element_type=jnp.float32)
            + bc_ref[...])                                           # (TM, H)
    gx_ref[...] = (jnp.dot(comp, wih_ref[...],
                           preferred_element_type=jnp.float32)
                   + bg_ref[...]).astype(gx_ref.dtype)               # (TM, 4H)


# ----------------------------------------------------------------------------
# Kernel 2: LSTM recurrence over time. grid=(S,), sequential ("arbitrary").
# h lives in the resident `hidestate` output block; c in VMEM scratch.
# ----------------------------------------------------------------------------
def lstm_kernel(gx_ref, whh_ref, yseq_ref, h_ref, c_ref):
    t = pl.program_id(0)

    @pl.when(t == 0)
    def _():
        h_ref[...] = jnp.zeros_like(h_ref)
        c_ref[...] = jnp.zeros_like(c_ref)

    h_prev = h_ref[...]                                              # (B, H)
    gates = gx_ref[0] + jnp.dot(h_prev, whh_ref[...],
                                preferred_element_type=jnp.float32)  # (B, 4H)
    Hd = h_prev.shape[-1]
    # PyTorch gate order: i, f, g, o — slices are 128-lane aligned (H = 256).
    i_g = _sigmoid(gates[:, 0:Hd])
    f_g = _sigmoid(gates[:, Hd:2 * Hd])
    g_g = jnp.tanh(gates[:, 2 * Hd:3 * Hd])
    o_g = _sigmoid(gates[:, 3 * Hd:4 * Hd])

    c_new = f_g * c_ref[...] + i_g * g_g
    h_new = o_g * jnp.tanh(c_new)

    c_ref[...] = c_new
    h_ref[...] = h_new
    yseq_ref[0] = h_new.astype(yseq_ref.dtype)


def encoder_forward(x, params):
    """x: (B, S, 4096) f32 -> (output (B, S, H), hidestate (1, B, H))."""
    wc_t, bc, wih_t, whh_t, bg = params
    B, S, F = x.shape
    H = wc_t.shape[1]
    H4 = 4 * H
    BS = B * S

    # Batch all B*S rows through the MXU; pad rows to a sublane-friendly tile.
    TM = 256 if BS >= 256 else _round_up(BS, 8)
    BSp = _round_up(BS, TM)
    x2d = x.reshape(BS, F)
    if BSp != BS:
        x2d = jnp.pad(x2d, ((0, BSp - BS), (0, 0)))

    const = lambda shape: pl.BlockSpec(shape, lambda m: (0,) * len(shape))

    gates_x = pl.pallas_call(
        project_kernel,
        out_shape=jax.ShapeDtypeStruct((BSp, H4), jnp.float32),
        grid_spec=pltpu.PrefetchScalarGridSpec(
            num_scalar_prefetch=0,
            grid=(BSp // TM,),
            in_specs=[
                pl.BlockSpec((TM, F), lambda m: (m, 0)),   # input feature rows
                const((F, H)),                             # Wc^T
                const((1, H)),                             # bc
                const((H, H4)),                            # W_ih^T
                const((1, H4)),                            # b_ih + b_hh
            ],
            out_specs=pl.BlockSpec((TM, H4), lambda m: (m, 0)),
        ),
        compiler_params=pltpu.CompilerParams(
            dimension_semantics=("parallel",)),
    )(x2d, wc_t, bc, wih_t, bg)

    # Time-major (S, B, 4H) so each recurrence step gets one lane-dense block.
    gx_sbd = jnp.swapaxes(gates_x[:BS].reshape(B, S, H4), 0, 1)

    out_seq, h_final = pl.pallas_call(
        lstm_kernel,
        out_shape=(jax.ShapeDtypeStruct((S, B, H), jnp.float32),
                   jax.ShapeDtypeStruct((B, H), jnp.float32)),
        grid_spec=pltpu.PrefetchScalarGridSpec(
            num_scalar_prefetch=0,
            grid=(S,),
            in_specs=[
                pl.BlockSpec((1, B, H4), lambda t: (t, 0, 0)),   # gates_x[t]
                pl.BlockSpec((H, H4), lambda t: (0, 0)),         # W_hh^T (const)
            ],
            out_specs=[
                pl.BlockSpec((1, B, H), lambda t: (t, 0, 0)),    # per-step h
                pl.BlockSpec((B, H), lambda t: (0, 0)),          # final h (resident)
            ],
            scratch_shapes=[pltpu.VMEM((B, H), jnp.float32)],    # cell state c
        ),
        compiler_params=pltpu.CompilerParams(
            dimension_semantics=("arbitrary",)),
    )(gx_sbd, whh_t)

    output = jnp.swapaxes(out_seq, 0, 1)          # (B, S, H)
    hidestate = h_final.reshape(1, B, H)          # matches torch h_n shape
    return output, hidestate


def init_params(key, feat_n=4096, hid=256):
    """Deterministic synthetic parameters in PyTorch layout, pre-transposed."""
    ks = jax.random.split(key, 6)
    s = 0.05
    wc = s * jax.random.normal(ks[0], (hid, feat_n), jnp.float32)    # (out, in)
    bc = s * jax.random.normal(ks[1], (hid,), jnp.float32)
    wih = s * jax.random.normal(ks[2], (4 * hid, hid), jnp.float32)
    whh = s * jax.random.normal(ks[3], (4 * hid, hid), jnp.float32)
    bih = s * jax.random.normal(ks[4], (4 * hid,), jnp.float32)
    bhh = s * jax.random.normal(ks[5], (4 * hid,), jnp.float32)
    return (wc.T, bc.reshape(1, hid), wih.T, whh.T,
            (bih + bhh).reshape(1, 4 * hid))


def encoder_reference(x, params):
    """Pure-JAX mirror of the PyTorch forward (eval mode), for checking."""
    wc_t, bc, wih_t, whh_t, bg = params
    B, S, F = x.shape
    H = wc_t.shape[1]
    comp = x.reshape(-1, F) @ wc_t + bc                 # dropout = identity
    gates_x = (comp @ wih_t + bg).reshape(B, S, 4 * H)
    h = jnp.zeros((B, H), jnp.float32)
    c = jnp.zeros((B, H), jnp.float32)
    ys = []
    for t in range(S):
        gates = gates_x[:, t, :] + h @ whh_t
        i = _sigmoid(gates[:, :H])
        f = _sigmoid(gates[:, H:2 * H])
        g = jnp.tanh(gates[:, 2 * H:3 * H])
        o = _sigmoid(gates[:, 3 * H:])
        c = f * c + i * g
        h = o * jnp.tanh(c)
        ys.append(h)
    output = jnp.stack(ys, axis=1)
    return output, h[None]


if __name__ == "__main__":
    B, S, FEAT, HID = 2, 8, 4096, 256

    key = jax.random.PRNGKey(0)
    k_x, k_p = jax.random.split(key)
    x = jax.random.normal(k_x, (B, S, FEAT), jnp.float32)
    params = init_params(k_p, FEAT, HID)

    output, hidestate = jax.block_until_ready(encoder_forward(x, params))

    ref_out, ref_h = encoder_reference(x, params)
    assert output.shape == (B, S, HID)
    assert hidestate.shape == (1, B, HID)
    assert jnp.allclose(output, ref_out, atol=1e-4, rtol=1e-4), "output mismatch"
    assert jnp.allclose(hidestate, ref_h, atol=1e-4, rtol=1e-4), "hidestate mismatch"

    print("KERNEL_OK")
</pallas_src>

<mosaic_0001>
module attributes {stable_mosaic.version = 11 : i64} {
  func.func @project_kernel(%arg0: i32, %arg1: memref<16x4096xf32, #tpu.memory_space<vmem>>, %arg2: memref<4096x256xf32, #tpu.memory_space<vmem>>, %arg3: memref<1x256xf32, #tpu.memory_space<vmem>>, %arg4: memref<256x1024xf32, #tpu.memory_space<vmem>>, %arg5: memref<1x1024xf32, #tpu.memory_space<vmem>>, %arg6: memref<16x1024xf32, #tpu.memory_space<vmem>>) attributes {dimension_semantics = [#tpu.dimension_semantics<parallel>], iteration_bounds = array<i64: 1>, scalar_prefetch = 0 : i64, scratch_operands = 0 : i64, tpu.core_type = #tpu.core_type<tc>, window_params = [{transform_indices = @transform_0, window_bounds = array<i64: 16, 4096>}, {pipeline_mode = #tpu.pipeline_mode<synchronous>, transform_indices = @transform_1, window_bounds = array<i64: 4096, 256>}, {pipeline_mode = #tpu.pipeline_mode<synchronous>, transform_indices = @transform_2, window_bounds = array<i64: 1, 256>}, {pipeline_mode = #tpu.pipeline_mode<synchronous>, transform_indices = @transform_3, window_bounds = array<i64: 256, 1024>}, {pipeline_mode = #tpu.pipeline_mode<synchronous>, transform_indices = @transform_4, window_bounds = array<i64: 1, 1024>}, {transform_indices = @transform_5, window_bounds = array<i64: 16, 1024>}]} {
    %c0 = arith.constant 0 : index
    %c0_0 = arith.constant 0 : index
    %0 = vector.load %arg1[%c0, %c0_0] : memref<16x4096xf32, #tpu.memory_space<vmem>>, vector<16x4096xf32>
    %c0_1 = arith.constant 0 : index
    %c0_2 = arith.constant 0 : index
    %1 = vector.load %arg2[%c0_1, %c0_2] : memref<4096x256xf32, #tpu.memory_space<vmem>>, vector<4096x256xf32>
    %cst = arith.constant dense<0.000000e+00> : vector<16x256xf32>
    %2 = tpu.matmul %0, %1, %cst {dimension_numbers = #tpu.dot_dimension_numbers<[1], [0], [0], [1], [0, 0, 1, 1], [], []>} : vector<16x4096xf32>, vector<4096x256xf32>, vector<16x256xf32> -> vector<16x256xf32>
    %c0_3 = arith.constant 0 : index
    %c0_4 = arith.constant 0 : index
    %3 = vector.load %arg3[%c0_3, %c0_4] : memref<1x256xf32, #tpu.memory_space<vmem>>, vector<1x256xf32>
    %4 = vector.broadcast %3 : vector<1x256xf32> to vector<16x256xf32>
    %5 = arith.addf %2, %4 : vector<16x256xf32>
    %c0_5 = arith.constant 0 : index
    %c0_6 = arith.constant 0 : index
    %6 = vector.load %arg4[%c0_5, %c0_6] : memref<256x1024xf32, #tpu.memory_space<vmem>>, vector<256x1024xf32>
    %cst_7 = arith.constant dense<0.000000e+00> : vector<16x1024xf32>
    %7 = tpu.matmul %5, %6, %cst_7 {dimension_numbers = #tpu.dot_dimension_numbers<[1], [0], [0], [1], [0, 0, 1, 1], [], []>} : vector<16x256xf32>, vector<256x1024xf32>, vector<16x1024xf32> -> vector<16x1024xf32>
    %c0_8 = arith.constant 0 : index
    %c0_9 = arith.constant 0 : index
    %8 = vector.load %arg5[%c0_8, %c0_9] : memref<1x1024xf32, #tpu.memory_space<vmem>>, vector<1x1024xf32>
    %9 = vector.broadcast %8 : vector<1x1024xf32> to vector<16x1024xf32>
    %10 = arith.addf %7, %9 : vector<16x1024xf32>
    %c0_10 = arith.constant 0 : index
    %c0_11 = arith.constant 0 : index
    %11 = vector.load %arg6[%c0_10, %c0_11] : memref<16x1024xf32, #tpu.memory_space<vmem>>, vector<16x1024xf32>
    tpu.vector_store %arg6[%c0_10, %c0_11], %10 {strides = array<i32>} : memref<16x1024xf32, #tpu.memory_space<vmem>>, vector<16x1024xf32>,
    return
  }
  func.func @transform_0(%arg0: i32) -> (i32, i32) {
    %c0_i32 = arith.constant 0 : i32
    %c0_i32_0 = arith.constant 0 : i32
    return %arg0, %c0_i32 : i32, i32
  }
  func.func @transform_1(%arg0: i32) -> (i32, i32) {
    %c0_i32 = arith.constant 0 : i32
    %c0_i32_0 = arith.constant 0 : i32
    %c0_i32_1 = arith.constant 0 : i32
    return %c0_i32, %c0_i32_0 : i32, i32
  }
  func.func @transform_2(%arg0: i32) -> (i32, i32) {
    %c0_i32 = arith.constant 0 : i32
    %c0_i32_0 = arith.constant 0 : i32
    %c0_i32_1 = arith.constant 0 : i32
    return %c0_i32, %c0_i32_0 : i32, i32
  }
  func.func @transform_3(%arg0: i32) -> (i32, i32) {
    %c0_i32 = arith.constant 0 : i32
    %c0_i32_0 = arith.constant 0 : i32
    %c0_i32_1 = arith.constant 0 : i32
    return %c0_i32, %c0_i32_0 : i32, i32
  }
  func.func @transform_4(%arg0: i32) -> (i32, i32) {
    %c0_i32 = arith.constant 0 : i32
    %c0_i32_0 = arith.constant 0 : i32
    %c0_i32_1 = arith.constant 0 : i32
    return %c0_i32, %c0_i32_0 : i32, i32
  }
  func.func @transform_5(%arg0: i32) -> (i32, i32) {
    %c0_i32 = arith.constant 0 : i32
    %c0_i32_0 = arith.constant 0 : i32
    return %arg0, %c0_i32 : i32, i32
  }
}

</mosaic_0001>

<bundles_post_ra>
// kernel: tpu_custom_call.1
= control target key start
LH: loop header
LB: loop body
LE: loop exit
PB: predicated region body
PF: predicated region fallthrough
CT: control target
= control target key end

     0   :  { %10 = vsyncpa [#allocation3], 0  ;;  %s3301_s0 = inlined_call_operand.hbm [shape: f32[16,4096], index: 0, kind: input, shape index: {}]   ;;  %s3302_s1 = inlined_call_operand.hbm [shape: f32[4096,256], index: 1, kind: input, shape index: {}]   ;;  %s3303_s2 = inlined_call_operand.hbm [shape: f32[1,256], index: 2, kind: input, shape index: {}]   ;;  %s3304_s3 = inlined_call_operand.hbm [shape: f32[256,1024], index: 3, kind: input, shape index: {}]   ;;  %s3305_s4 = inlined_call_operand.hbm [shape: f32[1,1024], index: 4, kind: input, shape index: {}]   ;;  %s3306_s5 = inlined_call_operand.hbm [shape: f32[16,1024], index: 5, kind: output, shape index: {}]  }
   0x1   :  { %11 = vsyncpa [#allocation6], 0 }
   0x2   :  { %12 = vsyncpa [#allocation9], 0 }
   0x3   :  { %13 = vsyncpa [#allocation4], 0  ;;  %s3197_s18 = smov [#allocation5]  }
   0x4   :  { %s31_s19 = sshll.u32 %s3197_s18, 4  ;;  %s32_s19 = int_to_ptr.vmem [resolvable:$true] %s31_s19 }
   0x5   :  { %s3077_s20 = scalar_lea.vmem %s32_s19, 131072  ;;  %p3082_p1 = scmp.lt.s32.totalorder %s32_s19, %s32_s19 }
   0x6   :  { %p3078_p0 = scmp.ne.s32.totalorder %s32_s19, %s3077_s20  ;;  %p3083_p2 = scmp.lt.s32.totalorder %s3077_s20, %s3077_s20 }
   0x8   :  { %p3084_p3 = por %p3083_p2, %p3082_p1 }
   0xa   :  { %p3085_p4 = pnand %p3084_p3, %p3078_p0 }
   0xc   :  { %3088 = shalt.err (!%p3085_p4)
}
   0xd   :  { %s3198_s21 = smov 256   ;;  %s3199_s22 = smov 16  }
   0xe   :  { %37 = dma.hbm_to_vmem [thread:$0]  %s3302_s1, 131072, %s32_s19, [#allocation6], %s3198_s21, %s3198_s21, %s3199_s22  }
   0xf   :  { %s3200_s25 = smov [#allocation8]  }
  0x10   :  { %s53_s26 = sshll.u32 %s3200_s25, 4  ;;  %s54_s26 = int_to_ptr.vmem [resolvable:$true] %s53_s26 }
  0x11   :  { %s3097_s27 = scalar_lea.vmem %s54_s26, 32768  ;;  %p3102_p6 = scmp.lt.s32.totalorder %s54_s26, %s54_s26 }
  0x12   :  { %p3098_p5 = scmp.ne.s32.totalorder %s54_s26, %s3097_s27  ;;  %p3103_p7 = scmp.lt.s32.totalorder %s3097_s27, %s3097_s27 }
  0x14   :  { %p3104_p8 = por %p3103_p7, %p3102_p6 }
  0x16   :  { %p3105_p9 = pnand %p3104_p8, %p3098_p5 }
  0x18   :  { %3108 = shalt.err (!%p3105_p9)
}
  0x19   :  { %s3201_s28 = smov 1024   ;;  %s3202_s29 = smov 64  }
  0x1a   :  { %59 = dma.hbm_to_vmem [thread:$0]  %s3304_s3, 32768, %s54_s26, [#allocation9], %s3201_s28, %s3201_s28, %s3202_s29  }
  0x1b   :  { %s3203_s1 = smov [#allocation2]   ;;  %s3204_s8 = smov [#allocation7]  }
  0x1c   :  { %s19_s7 = sshll.u32 %s3203_s1, 4  ;;  %s44_s9 = sshll.u32 %s3204_s8, 4  ;;  %s20_s7 = int_to_ptr.vmem [resolvable:$true] %s19_s7  ;;  %s45_s9 = int_to_ptr.vmem [resolvable:$true] %s44_s9 }
  0x1d   :  { %s3117_s10 = scalar_lea.vmem %s20_s7, 8192  ;;  %p3122_p11 = scmp.lt.s32.totalorder %s20_s7, %s20_s7 }
  0x1e   :  { %p3118_p10 = scmp.ne.s32.totalorder %s20_s7, %s3117_s10  ;;  %p3123_p12 = scmp.lt.s32.totalorder %s3117_s10, %s3117_s10 }
  0x20   :  { %p3124_p13 = por %p3123_p12, %p3122_p11 }
  0x22   :  { %p3125_p0 = pnand %p3124_p13, %p3118_p10 }
  0x24   :  { %3128 = shalt.err (!%p3125_p0)
}
  0x25   :  { %s3205_s11 = smov 4096   ;;  %s3137_s3 = scalar_lea.vmem %s45_s9, 32 }
  0x26   :  { %25 = dma.hbm_to_vmem [thread:$0]  %s3301_s0, 8192, %s20_s7, [#allocation3], %s3205_s11, %s3205_s11, %s3198_s21  }
  0x27   :  { %p3138_p1 = scmp.ne.s32.totalorder %s45_s9, %s3137_s3  ;;  %p3142_p2 = scmp.lt.s32.totalorder %s45_s9, %s45_s9 }
  0x28   :  { %p3143_p3 = scmp.lt.s32.totalorder %s3137_s3, %s3137_s3 }
  0x2a   :  { %p3144_p4 = por %p3143_p3, %p3142_p2 }
  0x2c   :  { %p3145_p5 = pnand %p3144_p4, %p3138_p1 }
  0x2e   :  { %3148 = shalt.err (!%p3145_p5)
}
  0x2f   :  { %47 = dma.hbm_to_vmem [thread:$0]  %s3303_s2, 32, %s45_s9, [#allocation6]  }
  0x30   :  { %s3206_s16 = smov [#allocation10]  }
  0x31   :  { %s66_s17 = sshll.u32 %s3206_s16, 4  ;;  %s67_s17 = int_to_ptr.vmem [resolvable:$true] %s66_s17 }
  0x32   :  { %s3157_s18 = scalar_lea.vmem %s67_s17, 128  ;;  %p3162_p7 = scmp.lt.s32.totalorder %s67_s17, %s67_s17 }
  0x33   :  { %p3158_p6 = scmp.ne.s32.totalorder %s67_s17, %s3157_s18  ;;  %p3163_p8 = scmp.lt.s32.totalorder %s3157_s18, %s3157_s18 }
  0x35   :  { %p3164_p9 = por %p3163_p8, %p3162_p7 }
  0x37   :  { %p3165_p10 = pnand %p3164_p9, %p3158_p6 }
  0x39   :  { %3168 = shalt.err (!%p3165_p10)
}
  0x3a   :  { %69 = dma.hbm_to_vmem [thread:$0]  %s3305_s4, 128, %s67_s17, [#allocation9]  }
  0x3b   :  { %3189 = dma.done.wait [#allocation3], 8192  }
  0x3c   :  { %3190 = vsyncadd [#allocation3], 4294959104 }
  0x3d   :  { %3191 = dma.done.wait [#allocation6], 131104  }
  0x3e   :  { %3192 = vsyncadd [#allocation6], 4294836192 }
  0x3f   :  { %3193 = dma.done.wait [#allocation9], 32896  }
  0x40   :  { %3194 = vsyncadd [#allocation9], 4294934400  ;;  %v180_v0 = vld [vmem:[#allocation5 + $0xf8] sm:$0xff]  ;;  %v179_v2 = vld [vmem:[#allocation5 + $0xf0] sm:$0xff]  ;;  %s3207_s2 = smov [#allocation11]  }
  0x41   :  { %v244_v1 = vld [vmem:[#allocation5 + $0x2f8] sm:$0xff]  ;;  %1185 = vmatprep.subr.mxu0 %v180_v0  ;;  %v243_v3 = vld [vmem:[#allocation5 + $0x2f0] sm:$0xff]  ;;  %v178_v4 = vld [vmem:[#allocation5 + $0xe8] sm:$0xff]  ;;  %s3044_s4 = sshll.u32 %s3207_s2, 4  ;;  %s3045_s4 = int_to_ptr.vmem [resolvable:$true] %s3044_s4 }
  0x42   :  { %1262 = vmatprep.subr.mxu1 %v244_v1  ;;  %v242_v5 = vld [vmem:[#allocation5 + $0x2e8] sm:$0xff]  ;;  %1186 = vmatpush1.msra.mxu0 %v179_v2  ;;  %v177_v6 = vld [vmem:[#allocation5 + $0xe0] sm:$0xff]  ;;  %v176_v8 = vld [vmem:[#allocation5 + $0xd8] sm:$0xff]  ;;  %s3169_s20 = scalar_lea.vmem %s3045_s4, 2048  ;;  %p3174_p12 = scmp.lt.s32.totalorder %s3045_s4, %s3045_s4 }
  0x43   :  { %1263 = vmatpush1.msra.mxu1 %v243_v3  ;;  %v241_v7 = vld [vmem:[#allocation5 + $0x2e0] sm:$0xff]  ;;  %1187 = vmatprep.subr.mxu0 %v178_v4  ;;  %v240_v9 = vld [vmem:[#allocation5 + $0x2d8] sm:$0xff]  ;;  %v175_v10 = vld [vmem:[#allocation5 + $0xd0] sm:$0xff]  ;;  %p3170_p11 = scmp.ne.s32.totalorder %s3045_s4, %s3169_s20  ;;  %p3175_p13 = scmp.lt.s32.totalorder %s3169_s20, %s3169_s20 }
  0x44   :  { %1264 = vmatprep.subr.mxu1 %v242_v5  ;;  %v239_v11 = vld [vmem:[#allocation5 + $0x2d0] sm:$0xff]  ;;  %1188 = vmatpush1.msra.mxu0 %v177_v6  ;;  %v174_v12 = vld [vmem:[#allocation5 + $0xc8] sm:$0xff]  ;;  %v173_v14 = vld [vmem:[#allocation5 + $0xc0] sm:$0xff] }
  0x45   :  { %1265 = vmatpush1.msra.mxu1 %v241_v7  ;;  %v238_v13 = vld [vmem:[#allocation5 + $0x2c8] sm:$0xff]  ;;  %1189 = vmatprep.subr.mxu0 %v176_v8  ;;  %v237_v15 = vld [vmem:[#allocation5 + $0x2c0] sm:$0xff]  ;;  %v172_v16 = vld [vmem:[#allocation5 + $0xb8] sm:$0xff]  ;;  %p3176_p0 = por %p3175_p13, %p3174_p12 }
  0x46   :  { %1266 = vmatprep.subr.mxu1 %v240_v9  ;;  %1190 = vmatpush1.msra.mxu0 %v175_v10  ;;  %v236_v17 = vld [vmem:[#allocation5 + $0x2b8] sm:$0xff]  ;;  %v171_v18 = vld [vmem:[#allocation5 + $0xb0] sm:$0xff]  ;;  %v170_v20 = vld [vmem:[#allocation5 + $0xa8] sm:$0xff] }
  0x47   :  { %1267 = vmatpush1.msra.mxu1 %v239_v11  ;;  %1191 = vmatprep.subr.mxu0 %v174_v12  ;;  %v235_v19 = vld [vmem:[#allocation5 + $0x2b0] sm:$0xff]  ;;  %v234_v21 = vld [vmem:[#allocation5 + $0x2a8] sm:$0xff]  ;;  %v169_v22 = vld [vmem:[#allocation5 + $0xa0] sm:$0xff]  ;;  %p3177_p1 = pnand %p3176_p0, %p3170_p11 }
  0x48   :  { %1268 = vmatprep.subr.mxu1 %v238_v13  ;;  %1192 = vmatpush1.msra.mxu0 %v173_v14  ;;  %v233_v23 = vld [vmem:[#allocation5 + $0x2a0] sm:$0xff]  ;;  %v168_v24 = vld [vmem:[#allocation5 + $0x98] sm:$0xff]  ;;  %v167_v26 = vld [vmem:[#allocation5 + $0x90] sm:$0xff] }
  0x49   :  { %1269 = vmatpush1.msra.mxu1 %v237_v15  ;;  %1193 = vmatprep.subr.mxu0 %v172_v16  ;;  %v232_v25 = vld [vmem:[#allocation5 + $0x298] sm:$0xff]  ;;  %v231_v27 = vld [vmem:[#allocation5 + $0x290] sm:$0xff]  ;;  %v166_v28 = vld [vmem:[#allocation5 + $0x88] sm:$0xff] }
  0x4a   :  { %1270 = vmatprep.subr.mxu1 %v236_v17  ;;  %1194 = vmatpush1.msra.mxu0 %v171_v18  ;;  %v230_v29 = vld [vmem:[#allocation5 + $0x288] sm:$0xff]  ;;  %v165_v30 = vld [vmem:[#allocation5 + $0x80] sm:$0xff]  ;;  %v164_v32 = vld [vmem:[#allocation5 + $0x78] sm:$0xff] }
  0x4b   :  { %1271 = vmatpush1.msra.mxu1 %v235_v19  ;;  %1195 = vmatprep.subr.mxu0 %v170_v20  ;;  %v229_v31 = vld [vmem:[#allocation5 + $0x280] sm:$0xff]  ;;  %v228_v33 = vld [vmem:[#allocation5 + $0x278] sm:$0xff]  ;;  %v163_v34 = vld [vmem:[#allocation5 + $0x70] sm:$0xff] }
  0x4c   :  { %1272 = vmatprep.subr.mxu1 %v234_v21  ;;  %1196 = vmatpush1.msra.mxu0 %v169_v22  ;;  %v227_v35 = vld [vmem:[#allocation5 + $0x270] sm:$0xff]  ;;  %v162_v36 = vld [vmem:[#allocation5 + $0x68] sm:$0xff]  ;;  %v161_v38 = vld [vmem:[#allocation5 + $0x60] sm:$0xff] }
  0x4d   :  { %1273 = vmatpush1.msra.mxu1 %v233_v23  ;;  %1197 = vmatprep.subr.mxu0 %v168_v24  ;;  %v226_v37 = vld [vmem:[#allocation5 + $0x268] sm:$0xff]  ;;  %v225_v39 = vld [vmem:[#allocation5 + $0x260] sm:$0xff]  ;;  %v160_v40 = vld [vmem:[#allocation5 + $0x58] sm:$0xff] }
  0x4e   :  { %1274 = vmatprep.subr.mxu1 %v232_v25  ;;  %1198 = vmatpush1.msra.mxu0 %v167_v26  ;;  %v224_v41 = vld [vmem:[#allocation5 + $0x258] sm:$0xff]  ;;  %v159_v42 = vld [vmem:[#allocation5 + $0x50] sm:$0xff]  ;;  %v158_v44 = vld [vmem:[#allocation5 + $0x48] sm:$0xff] }
  0x4f   :  { %1275 = vmatpush1.msra.mxu1 %v231_v27  ;;  %1199 = vmatprep.subr.mxu0 %v166_v28  ;;  %v223_v43 = vld [vmem:[#allocation5 + $0x250] sm:$0xff]  ;;  %v222_v45 = vld [vmem:[#allocation5 + $0x248] sm:$0xff]  ;;  %v157_v46 = vld [vmem:[#allocation5 + $0x40] sm:$0xff] }
  0x50   :  { %1276 = vmatprep.subr.mxu1 %v230_v29  ;;  %1200 = vmatpush1.msra.mxu0 %v165_v30  ;;  %v221_v47 = vld [vmem:[#allocation5 + $0x240] sm:$0xff]  ;;  %v156_v48 = vld [vmem:[#allocation5 + $0x38] sm:$0xff]  ;;  %v155_v50 = vld [vmem:[#allocation5 + $0x30] sm:$0xff] }
  0x51   :  { %1277 = vmatpush1.msra.mxu1 %v229_v31  ;;  %1201 = vmatprep.subr.mxu0 %v164_v32  ;;  %v220_v49 = vld [vmem:[#allocation5 + $0x238] sm:$0xff]  ;;  %v219_v51 = vld [vmem:[#allocation5 + $0x230] sm:$0xff]  ;;  %v154_v52 = vld [vmem:[#allocation5 + $0x28] sm:$0xff] }
  0x52   :  { %1278 = vmatprep.subr.mxu1 %v228_v33  ;;  %1202 = vmatpush1.msra.mxu0 %v163_v34  ;;  %v218_v53 = vld [vmem:[#allocation5 + $0x228] sm:$0xff]  ;;  %v153_v54 = vld [vmem:[#allocation5 + $0x20] sm:$0xff]  ;;  %v152_v56 = vld [vmem:[#allocation5 + $0x18] sm:$0xff] }
  0x53   :  { %1279 = vmatpush1.msra.mxu1 %v227_v35  ;;  %1203 = vmatprep.subr.mxu0 %v162_v36  ;;  %v217_v55 = vld [vmem:[#allocation5 + $0x220] sm:$0xff]  ;;  %v216_v57 = vld [vmem:[#allocation5 + $0x218] sm:$0xff]  ;;  %v151_v58 = vld [vmem:[#allocation5 + $0x10] sm:$0xff] }
  0x54   :  { %1280 = vmatprep.subr.mxu1 %v226_v37  ;;  %1204 = vmatpush1.msra.mxu0 %v161_v38  ;;  %v215_v59 = vld [vmem:[#allocation5 + $0x210] sm:$0xff]  ;;  %v150_v60 = vld [vmem:[#allocation5 + $0x8] sm:$0xff]  ;;  %v149_v62 = vld [vmem:[#allocation5] sm:$0xff] }
  0x55   :  { %1281 = vmatpush1.msra.mxu1 %v225_v39  ;;  %1205 = vmatprep.subr.mxu0 %v160_v40  ;;  %v214_v61 = vld [vmem:[#allocation5 + $0x208] sm:$0xff]  ;;  %v213_v63 = vld [vmem:[#allocation5 + $0x200] sm:$0xff]  ;;  %v212_v0 = vld [vmem:[#allocation5 + $0x1f8] sm:$0xff] }
  0x56   :  { %1282 = vmatprep.subr.mxu1 %v224_v41  ;;  %1206 = vmatpush1.msra.mxu0 %v159_v42  ;;  %v276_v1 = vld [vmem:[#allocation5 + $0x3f8] sm:$0xff]  ;;  %v211_v2 = vld [vmem:[#allocation5 + $0x1f0] sm:$0xff]  ;;  %v210_v4 = vld [vmem:[#allocation5 + $0x1e8] sm:$0xff] }
  0x57   :  { %1283 = vmatpush1.msra.mxu1 %v223_v43  ;;  %1207 = vmatprep.subr.mxu0 %v158_v44  ;;  %v275_v3 = vld [vmem:[#allocation5 + $0x3f0] sm:$0xff]  ;;  %v274_v5 = vld [vmem:[#allocation5 + $0x3e8] sm:$0xff]  ;;  %v209_v6 = vld [vmem:[#allocation5 + $0x1e0] sm:$0xff] }
  0x58   :  { %1284 = vmatprep.subr.mxu1 %v222_v45  ;;  %1208 = vmatpush1.msra.mxu0 %v157_v46  ;;  %v273_v7 = vld [vmem:[#allocation5 + $0x3e0] sm:$0xff]  ;;  %v208_v8 = vld [vmem:[#allocation5 + $0x1d8] sm:$0xff]  ;;  %v207_v10 = vld [vmem:[#allocation5 + $0x1d0] sm:$0xff] }
  0x59   :  { %1285 = vmatpush1.msra.mxu1 %v221_v47  ;;  %1209 = vmatprep.subr.mxu0 %v156_v48  ;;  %v272_v9 = vld [vmem:[#allocation5 + $0x3d8] sm:$0xff]  ;;  %v271_v11 = vld [vmem:[#allocation5 + $0x3d0] sm:$0xff]  ;;  %v206_v12 = vld [vmem:[#allocation5 + $0x1c8] sm:$0xff] }
  0x5a   :  { %1286 = vmatprep.subr.mxu1 %v220_v49  ;;  %1210 = vmatpush1.msra.mxu0 %v155_v50  ;;  %v270_v13 = vld [vmem:[#allocation5 + $0x3c8] sm:$0xff]  ;;  %v205_v14 = vld [vmem:[#allocation5 + $0x1c0] sm:$0xff]  ;;  %v204_v16 = vld [vmem:[#allocation5 + $0x1b8] sm:$0xff] }
  0x5b   :  { %1287 = vmatpush1.msra.mxu1 %v219_v51  ;;  %1211 = vmatprep.subr.mxu0 %v154_v52  ;;  %v269_v15 = vld [vmem:[#allocation5 + $0x3c0] sm:$0xff]  ;;  %v268_v17 = vld [vmem:[#allocation5 + $0x3b8] sm:$0xff]  ;;  %v203_v18 = vld [vmem:[#allocation5 + $0x1b0] sm:$0xff] }
  0x5c   :  { %1288 = vmatprep.subr.mxu1 %v218_v53  ;;  %1212 = vmatpush1.msra.mxu0 %v153_v54  ;;  %v267_v19 = vld [vmem:[#allocation5 + $0x3b0] sm:$0xff]  ;;  %v202_v20 = vld [vmem:[#allocation5 + $0x1a8] sm:$0xff]  ;;  %v201_v22 = vld [vmem:[#allocation5 + $0x1a0] sm:$0xff] }
  0x5d   :  { %1289 = vmatpush1.msra.mxu1 %v217_v55  ;;  %1213 = vmatprep.subr.mxu0 %v152_v56  ;;  %v266_v21 = vld [vmem:[#allocation5 + $0x3a8] sm:$0xff]  ;;  %v265_v23 = vld [vmem:[#allocation5 + $0x3a0] sm:$0xff]  ;;  %v200_v24 = vld [vmem:[#allocation5 + $0x198] sm:$0xff] }
  0x5e   :  { %1290 = vmatprep.subr.mxu1 %v216_v57  ;;  %1214 = vmatpush1.msra.mxu0 %v151_v58  ;;  %v264_v25 = vld [vmem:[#allocation5 + $0x398] sm:$0xff]  ;;  %v199_v26 = vld [vmem:[#allocation5 + $0x190] sm:$0xff]  ;;  %v198_v28 = vld [vmem:[#allocation5 + $0x188] sm:$0xff] }
  0x5f   :  { %1291 = vmatpush1.msra.mxu1 %v215_v59  ;;  %1215 = vmatprep.subr.mxu0 %v150_v60  ;;  %v263_v27 = vld [vmem:[#allocation5 + $0x390] sm:$0xff]  ;;  %v262_v29 = vld [vmem:[#allocation5 + $0x388] sm:$0xff]  ;;  %v197_v30 = vld [vmem:[#allocation5 + $0x180] sm:$0xff] }
  0x60   :  { %1292 = vmatprep.subr.mxu1 %v214_v61  ;;  %1216 = vmatpush1.msra.mxu0 %v149_v62  ;;  %v261_v31 = vld [vmem:[#allocation5 + $0x380] sm:$0xff]  ;;  %v196_v32 = vld [vmem:[#allocation5 + $0x178] sm:$0xff]  ;;  %v195_v34 = vld [vmem:[#allocation5 + $0x170] sm:$0xff] }
  0x61   :  { %1293 = vmatpush1.msra.mxu1 %v213_v63  ;;  %1217 = vmatprep.subr.mxu0 %v212_v0  ;;  %v260_v33 = vld [vmem:[#allocation5 + $0x378] sm:$0xff]  ;;  %v259_v35 = vld [vmem:[#allocation5 + $0x370] sm:$0xff]  ;;  %v194_v36 = vld [vmem:[#allocation5 + $0x168] sm:$0xff] }
  0x62   :  { %1294 = vmatprep.subr.mxu1 %v276_v1  ;;  %1218 = vmatpush2.msra.mxu0 %v211_v2  ;;  %v258_v37 = vld [vmem:[#allocation5 + $0x368] sm:$0xff]  ;;  %v193_v38 = vld [vmem:[#allocation5 + $0x160] sm:$0xff]  ;;  %v192_v40 = vld [vmem:[#allocation5 + $0x158] sm:$0xff] }
  0x63   :  { %1295 = vmatpush2.msra.mxu1 %v275_v3  ;;  %1219 = vmatprep.subr.mxu0 %v210_v4  ;;  %v257_v39 = vld [vmem:[#allocation5 + $0x360] sm:$0xff]  ;;  %v256_v41 = vld [vmem:[#allocation5 + $0x358] sm:$0xff]  ;;  %v191_v42 = vld [vmem:[#allocation5 + $0x150] sm:$0xff] }
  0x64   :  { %1296 = vmatprep.subr.mxu1 %v274_v5  ;;  %1220 = vmatpush2.msra.mxu0 %v209_v6  ;;  %v255_v43 = vld [vmem:[#allocation5 + $0x350] sm:$0xff]  ;;  %v190_v44 = vld [vmem:[#allocation5 + $0x148] sm:$0xff]  ;;  %v189_v46 = vld [vmem:[#allocation5 + $0x140] sm:$0xff] }
  0x65   :  { %1297 = vmatpush2.msra.mxu1 %v273_v7  ;;  %1221 = vmatprep.subr.mxu0 %v208_v8  ;;  %v254_v45 = vld [vmem:[#allocation5 + $0x348] sm:$0xff]  ;;  %v253_v47 = vld [vmem:[#allocation5 + $0x340] sm:$0xff]  ;;  %v188_v48 = vld [vmem:[#allocation5 + $0x138] sm:$0xff] }
  0x66   :  { %1298 = vmatprep.subr.mxu1 %v272_v9  ;;  %1222 = vmatpush2.msra.mxu0 %v207_v10  ;;  %v252_v49 = vld [vmem:[#allocation5 + $0x338] sm:$0xff]  ;;  %v187_v50 = vld [vmem:[#allocation5 + $0x130] sm:$0xff]  ;;  %v186_v52 = vld [vmem:[#allocation5 + $0x128] sm:$0xff] }
  0x67   :  { %1299 = vmatpush2.msra.mxu1 %v271_v11  ;;  %1223 = vmatprep.subr.mxu0 %v206_v12  ;;  %v251_v51 = vld [vmem:[#allocation5 + $0x330] sm:$0xff]  ;;  %v250_v53 = vld [vmem:[#allocation5 + $0x328] sm:$0xff]  ;;  %v185_v54 = vld [vmem:[#allocation5 + $0x120] sm:$0xff] }
  0x68   :  { %1300 = vmatprep.subr.mxu1 %v270_v13  ;;  %1224 = vmatpush2.msra.mxu0 %v205_v14  ;;  %v249_v55 = vld [vmem:[#allocation5 + $0x320] sm:$0xff]  ;;  %v184_v56 = vld [vmem:[#allocation5 + $0x118] sm:$0xff]  ;;  %v183_v58 = vld [vmem:[#allocation5 + $0x110] sm:$0xff] }
  0x69   :  { %1301 = vmatpush2.msra.mxu1 %v269_v15  ;;  %1225 = vmatprep.subr.mxu0 %v204_v16  ;;  %v248_v57 = vld [vmem:[#allocation5 + $0x318] sm:$0xff]  ;;  %v247_v59 = vld [vmem:[#allocation5 + $0x310] sm:$0xff]  ;;  %v182_v60 = vld [vmem:[#allocation5 + $0x108] sm:$0xff] }
  0x6a   :  { %1302 = vmatprep.subr.mxu1 %v268_v17  ;;  %1226 = vmatpush2.msra.mxu0 %v203_v18  ;;  %v246_v61 = vld [vmem:[#allocation5 + $0x308] sm:$0xff]  ;;  %v181_v62 = vld [vmem:[#allocation5 + $0x100] sm:$0xff]  ;;  %v88_v2 = vld [vmem:[#allocation2 + $0x18] sm:$0xff] }
  0x6b   :  { %1303 = vmatpush2.msra.mxu1 %v267_v19  ;;  %1227 = vmatprep.subr.mxu0 %v202_v20  ;;  %v86_v63 = vld [vmem:[#allocation2 + $0x8] sm:$0xff]  ;;  %v245_v0 = vld [vmem:[#allocation5 + $0x300] sm:$0xff]  ;;  %v308_v3 = vld [vmem:[#allocation5 + $0x4f8] sm:$0xff] }
  0x6c   :  { %1304 = vmatprep.subr.mxu1 %v266_v21  ;;  %1228 = vmatpush2.msra.mxu0 %v201_v22  ;;  %v85_v1 = vld [vmem:[#allocation2] sm:$0xff]  ;;  %v372_v4 = vld [vmem:[#allocation5 + $0x6f8] sm:$0xff]  ;;  %v87_v5 = vld [vmem:[#allocation2 + $0x10] sm:$0xff] }
  0x6d   :  { %1305 = vmatpush2.msra.mxu1 %v265_v23  ;;  %1229 = vmatprep.subr.mxu0 %v200_v24  ;;  %v307_v6 = vld [vmem:[#allocation5 + $0x4f0] sm:$0xff]  ;;  %v306_v8 = vld [vmem:[#allocation5 + $0x4e8] sm:$0xff]  ;;  %v305_v10 = vld [vmem:[#allocation5 + $0x4e0] sm:$0xff] }
  0x6e   :  { %1306 = vmatprep.subr.mxu1 %v264_v25  ;;  %1230 = vmatpush2.msra.mxu0 %v199_v26  ;;  %v371_v7 = vld [vmem:[#allocation5 + $0x6f0] sm:$0xff]  ;;  %v370_v9 = vld [vmem:[#allocation5 + $0x6e8] sm:$0xff]  ;;  %v369_v11 = vld [vmem:[#allocation5 + $0x6e0] sm:$0xff] }
  0x6f   :  { %1307 = vmatpush2.msra.mxu1 %v263_v27  ;;  %1231 = vmatprep.subr.mxu0 %v198_v28  ;;  %v304_v12 = vld [vmem:[#allocation5 + $0x4d8] sm:$0xff]  ;;  %v303_v14 = vld [vmem:[#allocation5 + $0x4d0] sm:$0xff]  ;;  %v302_v16 = vld [vmem:[#allocation5 + $0x4c8] sm:$0xff] }
  0x70   :  { %1308 = vmatprep.subr.mxu1 %v262_v29  ;;  %1232 = vmatpush2.msra.mxu0 %v197_v30  ;;  %v368_v13 = vld [vmem:[#allocation5 + $0x6d8] sm:$0xff]  ;;  %v367_v15 = vld [vmem:[#allocation5 + $0x6d0] sm:$0xff]  ;;  %v366_v17 = vld [vmem:[#allocation5 + $0x6c8] sm:$0xff] }
  0x71   :  { %1309 = vmatpush2.msra.mxu1 %v261_v31  ;;  %1233 = vmatprep.subr.mxu0 %v196_v32  ;;  %v301_v18 = vld [vmem:[#allocation5 + $0x4c0] sm:$0xff]  ;;  %v300_v20 = vld [vmem:[#allocation5 + $0x4b8] sm:$0xff]  ;;  %v299_v22 = vld [vmem:[#allocation5 + $0x4b0] sm:$0xff] }
  0x72   :  { %1310 = vmatprep.subr.mxu1 %v260_v33  ;;  %1234 = vmatpush2.msra.mxu0 %v195_v34  ;;  %v365_v19 = vld [vmem:[#allocation5 + $0x6c0] sm:$0xff]  ;;  %v364_v21 = vld [vmem:[#allocation5 + $0x6b8] sm:$0xff]  ;;  %v363_v23 = vld [vmem:[#allocation5 + $0x6b0] sm:$0xff] }
  0x73   :  { %1311 = vmatpush2.msra.mxu1 %v259_v35  ;;  %1235 = vmatprep.subr.mxu0 %v194_v36  ;;  %v298_v24 = vld [vmem:[#allocation5 + $0x4a8] sm:$0xff]  ;;  %v297_v26 = vld [vmem:[#allocation5 + $0x4a0] sm:$0xff]  ;;  %v296_v28 = vld [vmem:[#allocation5 + $0x498] sm:$0xff] }
  0x74   :  { %1312 = vmatprep.subr.mxu1 %v258_v37  ;;  %1236 = vmatpush2.msra.mxu0 %v193_v38  ;;  %v362_v25 = vld [vmem:[#allocation5 + $0x6a8] sm:$0xff]  ;;  %v361_v27 = vld [vmem:[#allocation5 + $0x6a0] sm:$0xff]  ;;  %v360_v29 = vld [vmem:[#allocation5 + $0x698] sm:$0xff] }
  0x75   :  { %1313 = vmatpush2.msra.mxu1 %v257_v39  ;;  %1237 = vmatprep.subr.mxu0 %v192_v40  ;;  %v295_v30 = vld [vmem:[#allocation5 + $0x490] sm:$0xff]  ;;  %v294_v32 = vld [vmem:[#allocation5 + $0x488] sm:$0xff]  ;;  %v293_v34 = vld [vmem:[#allocation5 + $0x480] sm:$0xff] }
  0x76   :  { %1314 = vmatprep.subr.mxu1 %v256_v41  ;;  %1238 = vmatpush2.msra.mxu0 %v191_v42  ;;  %v359_v31 = vld [vmem:[#allocation5 + $0x690] sm:$0xff]  ;;  %v358_v33 = vld [vmem:[#allocation5 + $0x688] sm:$0xff]  ;;  %v357_v35 = vld [vmem:[#allocation5 + $0x680] sm:$0xff] }
  0x77   :  { %1315 = vmatpush2.msra.mxu1 %v255_v43  ;;  %1239 = vmatprep.subr.mxu0 %v190_v44  ;;  %v292_v36 = vld [vmem:[#allocation5 + $0x478] sm:$0xff]  ;;  %v291_v38 = vld [vmem:[#allocation5 + $0x470] sm:$0xff]  ;;  %v290_v40 = vld [vmem:[#allocation5 + $0x468] sm:$0xff] }
  0x78   :  { %1316 = vmatprep.subr.mxu1 %v254_v45  ;;  %1240 = vmatpush2.msra.mxu0 %v189_v46  ;;  %v356_v37 = vld [vmem:[#allocation5 + $0x678] sm:$0xff]  ;;  %v355_v39 = vld [vmem:[#allocation5 + $0x670] sm:$0xff]  ;;  %v354_v41 = vld [vmem:[#allocation5 + $0x668] sm:$0xff] }
  0x79   :  { %1317 = vmatpush2.msra.mxu1 %v253_v47  ;;  %1241 = vmatprep.subr.mxu0 %v188_v48  ;;  %v289_v42 = vld [vmem:[#allocation5 + $0x460] sm:$0xff]  ;;  %v288_v44 = vld [vmem:[#allocation5 + $0x458] sm:$0xff]  ;;  %v287_v46 = vld [vmem:[#allocation5 + $0x450] sm:$0xff] }
  0x7a   :  { %1318 = vmatprep.subr.mxu1 %v252_v49  ;;  %1242 = vmatpush2.msra.mxu0 %v187_v50  ;;  %v353_v43 = vld [vmem:[#allocation5 + $0x660] sm:$0xff]  ;;  %v352_v45 = vld [vmem:[#allocation5 + $0x658] sm:$0xff]  ;;  %v351_v47 = vld [vmem:[#allocation5 + $0x650] sm:$0xff] }
  0x7b   :  { %1319 = vmatpush2.msra.mxu1 %v251_v51  ;;  %1243 = vmatprep.subr.mxu0 %v186_v52  ;;  %v286_v48 = vld [vmem:[#allocation5 + $0x448] sm:$0xff]  ;;  %v285_v50 = vld [vmem:[#allocation5 + $0x440] sm:$0xff]  ;;  %v284_v52 = vld [vmem:[#allocation5 + $0x438] sm:$0xff] }
  0x7c   :  { %1320 = vmatprep.subr.mxu1 %v250_v53  ;;  %1244 = vmatpush2.msra.mxu0 %v185_v54  ;;  %v350_v49 = vld [vmem:[#allocation5 + $0x648] sm:$0xff]  ;;  %v349_v51 = vld [vmem:[#allocation5 + $0x640] sm:$0xff]  ;;  %v348_v53 = vld [vmem:[#allocation5 + $0x638] sm:$0xff] }
  0x7d   :  { %1321 = vmatpush2.msra.mxu1 %v249_v55  ;;  %1245 = vmatprep.subr.mxu0 %v184_v56  ;;  %v283_v54 = vld [vmem:[#allocation5 + $0x430] sm:$0xff]  ;;  %v282_v56 = vld [vmem:[#allocation5 + $0x428] sm:$0xff] }
  0x7e   :  { %1322 = vmatprep.subr.mxu1 %v248_v57  ;;  %1246 = vmatpush2.msra.mxu0 %v183_v58  ;;  %v347_v55 = vld [vmem:[#allocation5 + $0x630] sm:$0xff]  ;;  %v346_v57 = vld [vmem:[#allocation5 + $0x628] sm:$0xff]  ;;  %v281_v58 = vld [vmem:[#allocation5 + $0x420] sm:$0xff] }
  0x7f   :  { %1323 = vmatpush2.msra.mxu1 %v247_v59  ;;  %1247 = vmatprep.subr.mxu0 %v182_v60  ;;  %v345_v59 = vld [vmem:[#allocation5 + $0x620] sm:$0xff]  ;;  %v280_v60 = vld [vmem:[#allocation5 + $0x418] sm:$0xff] }
  0x80   :  { %1324 = vmatprep.subr.mxu1 %v246_v61  ;;  %1248 = vmatpush2.msra.mxu0 %v181_v62  ;;  %v344_v61 = vld [vmem:[#allocation5 + $0x618] sm:$0xff]  ;;  %v279_v62 = vld [vmem:[#allocation5 + $0x410] sm:$0xff] }
  0x81   :  { %1249 = vmatprep.mubr.f32.mxu0 %v86_v63  ;;  %1325 = vmatpush2.msra.mxu1 %v245_v0  ;;  %v343_v63 = vld [vmem:[#allocation5 + $0x610] sm:$0xff]  ;;  %v278_v0 = vld [vmem:[#allocation5 + $0x408] sm:$0xff] }
  0x82   :  { %1250 = vmatmul.mubr.f32.vlgmr.msra.gmra.mxu0 %v85_v1  ;;  %1326 = vmatprep.mubr.f32.mxu1 %v88_v2  ;;  %v342_v1 = vld [vmem:[#allocation5 + $0x608] sm:$0xff]  ;;  %v277_v2 = vld [vmem:[#allocation5 + $0x400] sm:$0xff] }
  0x83   :  { %1339 = vmatprep.subr.mxu0 %v308_v3  ;;  %1416 = vmatprep.subr.mxu1 %v372_v4  ;;  %v341_v3 = vld [vmem:[#allocation5 + $0x600] sm:$0xff]  ;;  %v340_v4 = vld [vmem:[#allocation5 + $0x5f8] sm:$0xff] }
  0x84   :  { %1327 = vmatmul.mubr.f32.vlgmr.msra.gmra.mxu1 %v87_v5  ;;  %1340 = vmatpush1.msra.mxu0 %v307_v6  ;;  %v404_v5 = vld [vmem:[#allocation5 + $0x7f8] sm:$0xff]  ;;  %v339_v6 = vld [vmem:[#allocation5 + $0x5f0] sm:$0xff] }
  0x85   :  { %1417 = vmatpush1.msra.mxu1 %v371_v7  ;;  %1341 = vmatprep.subr.mxu0 %v306_v8  ;;  %v403_v7 = vld [vmem:[#allocation5 + $0x7f0] sm:$0xff]  ;;  %v338_v8 = vld [vmem:[#allocation5 + $0x5e8] sm:$0xff] }
  0x86   :  { %1418 = vmatprep.subr.mxu1 %v370_v9  ;;  %1342 = vmatpush1.msra.mxu0 %v305_v10  ;;  %v402_v9 = vld [vmem:[#allocation5 + $0x7e8] sm:$0xff]  ;;  %v337_v10 = vld [vmem:[#allocation5 + $0x5e0] sm:$0xff] }
  0x87   :  { %1419 = vmatpush1.msra.mxu1 %v369_v11  ;;  %1343 = vmatprep.subr.mxu0 %v304_v12  ;;  %v401_v11 = vld [vmem:[#allocation5 + $0x7e0] sm:$0xff]  ;;  %v336_v12 = vld [vmem:[#allocation5 + $0x5d8] sm:$0xff] }
  0x88   :  { %1420 = vmatprep.subr.mxu1 %v368_v13  ;;  %1344 = vmatpush1.msra.mxu0 %v303_v14  ;;  %v400_v13 = vld [vmem:[#allocation5 + $0x7d8] sm:$0xff]  ;;  %v335_v14 = vld [vmem:[#allocation5 + $0x5d0] sm:$0xff] }
  0x89   :  { %1421 = vmatpush1.msra.mxu1 %v367_v15  ;;  %1345 = vmatprep.subr.mxu0 %v302_v16  ;;  %v399_v15 = vld [vmem:[#allocation5 + $0x7d0] sm:$0xff]  ;;  %v334_v16 = vld [vmem:[#allocation5 + $0x5c8] sm:$0xff] }
  0x8a   :  { %1422 = vmatprep.subr.mxu1 %v366_v17  ;;  %1346 = vmatpush1.msra.mxu0 %v301_v18  ;;  %v398_v17 = vld [vmem:[#allocation5 + $0x7c8] sm:$0xff]  ;;  %v333_v18 = vld [vmem:[#allocation5 + $0x5c0] sm:$0xff] }
  0x8b   :  { %1423 = vmatpush1.msra.mxu1 %v365_v19  ;;  %1347 = vmatprep.subr.mxu0 %v300_v20  ;;  %v397_v19 = vld [vmem:[#allocation5 + $0x7c0] sm:$0xff]  ;;  %v332_v20 = vld [vmem:[#allocation5 + $0x5b8] sm:$0xff] }
  0x8c   :  { %1424 = vmatprep.subr.mxu1 %v364_v21  ;;  %1348 = vmatpush1.msra.mxu0 %v299_v22  ;;  %v396_v21 = vld [vmem:[#allocation5 + $0x7b8] sm:$0xff]  ;;  %v331_v22 = vld [vmem:[#allocation5 + $0x5b0] sm:$0xff] }
  0x8d   :  { %1425 = vmatpush1.msra.mxu1 %v363_v23  ;;  %1349 = vmatprep.subr.mxu0 %v298_v24  ;;  %v395_v23 = vld [vmem:[#allocation5 + $0x7b0] sm:$0xff]  ;;  %v330_v24 = vld [vmem:[#allocation5 + $0x5a8] sm:$0xff] }
  0x8e   :  { %1426 = vmatprep.subr.mxu1 %v362_v25  ;;  %1350 = vmatpush1.msra.mxu0 %v297_v26  ;;  %v394_v25 = vld [vmem:[#allocation5 + $0x7a8] sm:$0xff]  ;;  %v329_v26 = vld [vmem:[#allocation5 + $0x5a0] sm:$0xff] }
  0x8f   :  { %1427 = vmatpush1.msra.mxu1 %v361_v27  ;;  %1351 = vmatprep.subr.mxu0 %v296_v28  ;;  %v393_v27 = vld [vmem:[#allocation5 + $0x7a0] sm:$0xff]  ;;  %v328_v28 = vld [vmem:[#allocation5 + $0x598] sm:$0xff] }
  0x90   :  { %1428 = vmatprep.subr.mxu1 %v360_v29  ;;  %1352 = vmatpush1.msra.mxu0 %v295_v30  ;;  %v392_v29 = vld [vmem:[#allocation5 + $0x798] sm:$0xff]  ;;  %v327_v30 = vld [vmem:[#allocation5 + $0x590] sm:$0xff] }
  0x91   :  { %1429 = vmatpush1.msra.mxu1 %v359_v31  ;;  %1353 = vmatprep.subr.mxu0 %v294_v32  ;;  %v391_v31 = vld [vmem:[#allocation5 + $0x790] sm:$0xff]  ;;  %v326_v32 = vld [vmem:[#allocation5 + $0x588] sm:$0xff] }
  0x92   :  { %1430 = vmatprep.subr.mxu1 %v358_v33  ;;  %1354 = vmatpush1.msra.mxu0 %v293_v34  ;;  %v390_v33 = vld [vmem:[#allocation5 + $0x788] sm:$0xff]  ;;  %v325_v34 = vld [vmem:[#allocation5 + $0x580] sm:$0xff] }
  0x93   :  { %1431 = vmatpush1.msra.mxu1 %v357_v35  ;;  %1355 = vmatprep.subr.mxu0 %v292_v36  ;;  %v389_v35 = vld [vmem:[#allocation5 + $0x780] sm:$0xff]  ;;  %v324_v36 = vld [vmem:[#allocation5 + $0x578] sm:$0xff] }
  0x94   :  { %1432 = vmatprep.subr.mxu1 %v356_v37  ;;  %1356 = vmatpush1.msra.mxu0 %v291_v38  ;;  %v388_v37 = vld [vmem:[#allocation5 + $0x778] sm:$0xff]  ;;  %v323_v38 = vld [vmem:[#allocation5 + $0x570] sm:$0xff] }
  0x95   :  { %1433 = vmatpush1.msra.mxu1 %v355_v39  ;;  %1357 = vmatprep.subr.mxu0 %v290_v40  ;;  %v387_v39 = vld [vmem:[#allocation5 + $0x770] sm:$0xff]  ;;  %v322_v40 = vld [vmem:[#allocation5 + $0x568] sm:$0xff] }
  0x96   :  { %1434 = vmatprep.subr.mxu1 %v354_v41  ;;  %1358 = vmatpush1.msra.mxu0 %v289_v42  ;;  %v386_v41 = vld [vmem:[#allocation5 + $0x768] sm:$0xff]  ;;  %v321_v42 = vld [vmem:[#allocation5 + $0x560] sm:$0xff] }
  0x97   :  { %1435 = vmatpush1.msra.mxu1 %v353_v43  ;;  %1359 = vmatprep.subr.mxu0 %v288_v44  ;;  %v385_v43 = vld [vmem:[#allocation5 + $0x760] sm:$0xff]  ;;  %v320_v44 = vld [vmem:[#allocation5 + $0x558] sm:$0xff] }
  0x98   :  { %1436 = vmatprep.subr.mxu1 %v352_v45  ;;  %1360 = vmatpush1.msra.mxu0 %v287_v46  ;;  %v384_v45 = vld [vmem:[#allocation5 + $0x758] sm:$0xff]  ;;  %v319_v46 = vld [vmem:[#allocation5 + $0x550] sm:$0xff] }
  0x99   :  { %1437 = vmatpush1.msra.mxu1 %v351_v47  ;;  %1361 = vmatprep.subr.mxu0 %v286_v48  ;;  %v383_v47 = vld [vmem:[#allocation5 + $0x750] sm:$0xff]  ;;  %v318_v48 = vld [vmem:[#allocation5 + $0x548] sm:$0xff] }
  0x9a   :  { %1438 = vmatprep.subr.mxu1 %v350_v49  ;;  %1362 = vmatpush1.msra.mxu0 %v285_v50  ;;  %v382_v49 = vld [vmem:[#allocation5 + $0x748] sm:$0xff]  ;;  %v317_v50 = vld [vmem:[#allocation5 + $0x540] sm:$0xff] }
  0x9b   :  { %1439 = vmatpush1.msra.mxu1 %v349_v51  ;;  %1363 = vmatprep.subr.mxu0 %v284_v52  ;;  %v381_v51 = vld [vmem:[#allocation5 + $0x740] sm:$0xff]  ;;  %v316_v52 = vld [vmem:[#allocation5 + $0x538] sm:$0xff] }
  0x9c   :  { %1440 = vmatprep.subr.mxu1 %v348_v53  ;;  %1364 = vmatpush1.msra.mxu0 %v283_v54  ;;  %v380_v53 = vld [vmem:[#allocation5 + $0x738] sm:$0xff]  ;;  %v315_v54 = vld [vmem:[#allocation5 + $0x530] sm:$0xff] }
  0x9d   :  { %1441 = vmatpush1.msra.mxu1 %v347_v55  ;;  %1365 = vmatprep.subr.mxu0 %v282_v56  ;;  %v379_v55 = vld [vmem:[#allocation5 + $0x730] sm:$0xff]  ;;  %v118_v56 = vld [vmem:[#allocation2 + $0x108] sm:$0xff] }
  0x9e   :  { %1442 = vmatprep.subr.mxu1 %v346_v57  ;;  %1366 = vmatpush1.msra.mxu0 %v281_v58  ;;  %v314_v57 = vld [vmem:[#allocation5 + $0x528] sm:$0xff] }
  0x9f   :  { %1443 = vmatpush1.msra.mxu1 %v345_v59  ;;  %1367 = vmatprep.subr.mxu0 %v280_v60  ;;  %v378_v58 = vld [vmem:[#allocation5 + $0x728] sm:$0xff]  ;;  %v117_v59 = vld [vmem:[#allocation2 + $0x100] sm:$0xff] }
  0xa0   :  { %1444 = vmatprep.subr.mxu1 %v344_v61  ;;  %1368 = vmatpush1.msra.mxu0 %v279_v62  ;;  %v313_v60 = vld [vmem:[#allocation5 + $0x520] sm:$0xff]  ;;  %v120_v62 = vld [vmem:[#allocation2 + $0x118] sm:$0xff] }
  0xa1   :  { %1445 = vmatpush1.msra.mxu1 %v343_v63  ;;  %1369 = vmatprep.subr.mxu0 %v278_v0  ;;  %v377_v61 = vld [vmem:[#allocation5 + $0x720] sm:$0xff]  ;;  %v312_v63 = vld [vmem:[#allocation5 + $0x518] sm:$0xff] }
  0xa2   :  { %1446 = vmatprep.subr.mxu1 %v342_v1  ;;  %1370 = vmatpush1.msra.mxu0 %v277_v2  ;;  %v376_v0 = vld [vmem:[#allocation5 + $0x718] sm:$0xff]  ;;  %v119_v1 = vld [vmem:[#allocation2 + $0x110] sm:$0xff] }
  0xa3   :  { %1447 = vmatpush1.msra.mxu1 %v341_v3  ;;  %1371 = vmatprep.subr.mxu0 %v340_v4  ;;  %v311_v2 = vld [vmem:[#allocation5 + $0x510] sm:$0xff]  ;;  %v310_v4 = vld [vmem:[#allocation5 + $0x508] sm:$0xff] }
  0xa4   :  { %1448 = vmatprep.subr.mxu1 %v404_v5  ;;  %1372 = vmatpush2.msra.mxu0 %v339_v6  ;;  %v375_v3 = vld [vmem:[#allocation5 + $0x710] sm:$0xff]  ;;  %v374_v5 = vld [vmem:[#allocation5 + $0x708] sm:$0xff]  ;;  %v309_v6 = vld [vmem:[#allocation5 + $0x500] sm:$0xff] }
  0xa5   :  { %1449 = vmatpush2.msra.mxu1 %v403_v7  ;;  %1373 = vmatprep.subr.mxu0 %v338_v8  ;;  %v90_v7 = vld [vmem:[#allocation2 + $0x28] sm:$0xff]  ;;  %v373_v8 = vld [vmem:[#allocation5 + $0x700] sm:$0xff] }
  0xa6   :  { %1450 = vmatprep.subr.mxu1 %v402_v9  ;;  %1374 = vmatpush2.msra.mxu0 %v337_v10  ;;  %v89_v9 = vld [vmem:[#allocation2 + $0x20] sm:$0xff]  ;;  %v92_v10 = vld [vmem:[#allocation2 + $0x38] sm:$0xff] }
  0xa7   :  { %1451 = vmatpush2.msra.mxu1 %v401_v11  ;;  %1375 = vmatprep.subr.mxu0 %v336_v12  ;;  %v436_v11 = vld [vmem:[#allocation5 + $0x8f8] sm:$0xff] }
  0xa8   :  { %1452 = vmatprep.subr.mxu1 %v400_v13  ;;  %1376 = vmatpush2.msra.mxu0 %v335_v14  ;;  %v500_v12 = vld [vmem:[#allocation5 + $0xaf8] sm:$0xff]  ;;  %v91_v13 = vld [vmem:[#allocation2 + $0x30] sm:$0xff] }
  0xa9   :  { %1453 = vmatpush2.msra.mxu1 %v399_v15  ;;  %1377 = vmatprep.subr.mxu0 %v334_v16  ;;  %v435_v14 = vld [vmem:[#allocation5 + $0x8f0] sm:$0xff]  ;;  %v434_v16 = vld [vmem:[#allocation5 + $0x8e8] sm:$0xff] }
  0xaa   :  { %1454 = vmatprep.subr.mxu1 %v398_v17  ;;  %1378 = vmatpush2.msra.mxu0 %v333_v18  ;;  %v499_v15 = vld [vmem:[#allocation5 + $0xaf0] sm:$0xff]  ;;  %v498_v17 = vld [vmem:[#allocation5 + $0xae8] sm:$0xff] }
  0xab   :  { %1455 = vmatpush2.msra.mxu1 %v397_v19  ;;  %1379 = vmatprep.subr.mxu0 %v332_v20  ;;  %v122_v18 = vld [vmem:[#allocation2 + $0x128] sm:$0xff]  ;;  %v433_v19 = vld [vmem:[#allocation5 + $0x8e0] sm:$0xff] }
  0xac   :  { %1456 = vmatprep.subr.mxu1 %v396_v21  ;;  %1380 = vmatpush2.msra.mxu0 %v331_v22  ;;  %v497_v20 = vld [vmem:[#allocation5 + $0xae0] sm:$0xff]  ;;  %v432_v22 = vld [vmem:[#allocation5 + $0x8d8] sm:$0xff] }
  0xad   :  { %1457 = vmatpush2.msra.mxu1 %v395_v23  ;;  %1381 = vmatprep.subr.mxu0 %v330_v24  ;;  %v121_v21 = vld [vmem:[#allocation2 + $0x120] sm:$0xff]  ;;  %v496_v23 = vld [vmem:[#allocation5 + $0xad8] sm:$0xff] }
  0xae   :  { %1458 = vmatprep.subr.mxu1 %v394_v25  ;;  %1382 = vmatpush2.msra.mxu0 %v329_v26  ;;  %v124_v24 = vld [vmem:[#allocation2 + $0x138] sm:$0xff]  ;;  %v431_v25 = vld [vmem:[#allocation5 + $0x8d0] sm:$0xff] }
  0xaf   :  { %1459 = vmatpush2.msra.mxu1 %v393_v27  ;;  %1383 = vmatprep.subr.mxu0 %v328_v28  ;;  %v495_v26 = vld [vmem:[#allocation5 + $0xad0] sm:$0xff]  ;;  %v430_v27 = vld [vmem:[#allocation5 + $0x8c8] sm:$0xff] }
  0xb0   :  { %1460 = vmatprep.subr.mxu1 %v392_v29  ;;  %1384 = vmatpush2.msra.mxu0 %v327_v30  ;;  %v123_v28 = vld [vmem:[#allocation2 + $0x130] sm:$0xff]  ;;  %v494_v29 = vld [vmem:[#allocation5 + $0xac8] sm:$0xff]  ;;  %v429_v30 = vld [vmem:[#allocation5 + $0x8c0] sm:$0xff] }
  0xb1   :  { %1461 = vmatpush2.msra.mxu1 %v391_v31  ;;  %1385 = vmatprep.subr.mxu0 %v326_v32  ;;  %v493_v31 = vld [vmem:[#allocation5 + $0xac0] sm:$0xff]  ;;  %v428_v32 = vld [vmem:[#allocation5 + $0x8b8] sm:$0xff] }
  0xb2   :  { %1462 = vmatprep.subr.mxu1 %v390_v33  ;;  %1386 = vmatpush2.msra.mxu0 %v325_v34  ;;  %v492_v33 = vld [vmem:[#allocation5 + $0xab8] sm:$0xff]  ;;  %v427_v34 = vld [vmem:[#allocation5 + $0x8b0] sm:$0xff] }
  0xb3   :  { %1463 = vmatpush2.msra.mxu1 %v389_v35  ;;  %1387 = vmatprep.subr.mxu0 %v324_v36  ;;  %v491_v35 = vld [vmem:[#allocation5 + $0xab0] sm:$0xff]  ;;  %v426_v36 = vld [vmem:[#allocation5 + $0x8a8] sm:$0xff] }
  0xb4   :  { %1464 = vmatprep.subr.mxu1 %v388_v37  ;;  %1388 = vmatpush2.msra.mxu0 %v323_v38  ;;  %v490_v37 = vld [vmem:[#allocation5 + $0xaa8] sm:$0xff]  ;;  %v425_v38 = vld [vmem:[#allocation5 + $0x8a0] sm:$0xff] }
  0xb5   :  { %1465 = vmatpush2.msra.mxu1 %v387_v39  ;;  %1389 = vmatprep.subr.mxu0 %v322_v40  ;;  %v489_v39 = vld [vmem:[#allocation5 + $0xaa0] sm:$0xff]  ;;  %v424_v40 = vld [vmem:[#allocation5 + $0x898] sm:$0xff] }
  0xb6   :  { %1466 = vmatprep.subr.mxu1 %v386_v41  ;;  %1390 = vmatpush2.msra.mxu0 %v321_v42  ;;  %v488_v41 = vld [vmem:[#allocation5 + $0xa98] sm:$0xff]  ;;  %v423_v42 = vld [vmem:[#allocation5 + $0x890] sm:$0xff] }
  0xb7   :  { %1467 = vmatpush2.msra.mxu1 %v385_v43  ;;  %1391 = vmatprep.subr.mxu0 %v320_v44  ;;  %v487_v43 = vld [vmem:[#allocation5 + $0xa90] sm:$0xff]  ;;  %v422_v44 = vld [vmem:[#allocation5 + $0x888] sm:$0xff] }
  0xb8   :  { %1468 = vmatprep.subr.mxu1 %v384_v45  ;;  %1392 = vmatpush2.msra.mxu0 %v319_v46  ;;  %v486_v45 = vld [vmem:[#allocation5 + $0xa88] sm:$0xff]  ;;  %v421_v46 = vld [vmem:[#allocation5 + $0x880] sm:$0xff] }
  0xb9   :  { %1469 = vmatpush2.msra.mxu1 %v383_v47  ;;  %1393 = vmatprep.subr.mxu0 %v318_v48  ;;  %v485_v47 = vld [vmem:[#allocation5 + $0xa80] sm:$0xff]  ;;  %v420_v48 = vld [vmem:[#allocation5 + $0x878] sm:$0xff] }
  0xba   :  { %1470 = vmatprep.subr.mxu1 %v382_v49  ;;  %1394 = vmatpush2.msra.mxu0 %v317_v50  ;;  %v484_v49 = vld [vmem:[#allocation5 + $0xa78] sm:$0xff]  ;;  %v419_v50 = vld [vmem:[#allocation5 + $0x870] sm:$0xff] }
  0xbb   :  { %1471 = vmatpush2.msra.mxu1 %v381_v51  ;;  %1395 = vmatprep.subr.mxu0 %v316_v52  ;;  %v483_v51 = vld [vmem:[#allocation5 + $0xa70] sm:$0xff]  ;;  %v418_v52 = vld [vmem:[#allocation5 + $0x868] sm:$0xff] }
  0xbc   :  { %1472 = vmatprep.subr.mxu1 %v380_v53  ;;  %1396 = vmatpush2.msra.mxu0 %v315_v54  ;;  %v482_v53 = vld [vmem:[#allocation5 + $0xa68] sm:$0xff]  ;;  %v417_v54 = vld [vmem:[#allocation5 + $0x860] sm:$0xff] }
  0xbd   :  { %1473 = vmatpush2.msra.mxu1 %v379_v55  ;;  %1255 = vmatprep.mubr.f32.mxu0 %v118_v56  ;;  %v481_v55 = vld [vmem:[#allocation5 + $0xa60] sm:$0xff]  ;;  %v416_v56 = vld [vmem:[#allocation5 + $0x858] sm:$0xff] }
  0xbe   :  { %1397 = vmatprep.subr.mxu0 %v314_v57  ;;  %1474 = vmatprep.subr.mxu1 %v378_v58  ;;  %v480_v57 = vld [vmem:[#allocation5 + $0xa58] sm:$0xff]  ;;  %v415_v58 = vld [vmem:[#allocation5 + $0x850] sm:$0xff] }
  0xbf   :  { %1256 = vmatmul.mubr.f32.gmra.mxu0 %v117_v59  ;;  %1475 = vmatpush2.msra.mxu1 %v377_v61  ;;  %v479_v59 = vld [vmem:[#allocation5 + $0xa50] sm:$0xff]  ;;  %v478_v61 = vld [vmem:[#allocation5 + $0xa48] sm:$0xff] }
  0xc0   :  { %1398 = vmatpush2.msra.mxu0 %v313_v60  ;;  %1332 = vmatprep.mubr.f32.mxu1 %v120_v62  ;;  %v414_v60 = vld [vmem:[#allocation5 + $0x848] sm:$0xff]  ;;  %v413_v62 = vld [vmem:[#allocation5 + $0x840] sm:$0xff] }
  0xc1   :  { %1399 = vmatprep.subr.mxu0 %v312_v63  ;;  %1476 = vmatprep.subr.mxu1 %v376_v0  ;;  %v477_v63 = vld [vmem:[#allocation5 + $0xa40] sm:$0xff]  ;;  %v412_v0 = vld [vmem:[#allocation5 + $0x838] sm:$0xff] }
  0xc2   :  { %1333 = vmatmul.mubr.f32.gmra.mxu1 %v119_v1  ;;  %1400 = vmatpush2.msra.mxu0 %v311_v2  ;;  %v476_v1 = vld [vmem:[#allocation5 + $0xa38] sm:$0xff]  ;;  %v411_v2 = vld [vmem:[#allocation5 + $0x830] sm:$0xff] }
  0xc3   :  { %1477 = vmatpush2.msra.mxu1 %v375_v3  ;;  %1401 = vmatprep.subr.mxu0 %v310_v4  ;;  %v475_v3 = vld [vmem:[#allocation5 + $0xa30] sm:$0xff]  ;;  %v410_v4 = vld [vmem:[#allocation5 + $0x828] sm:$0xff] }
  0xc4   :  { %1478 = vmatprep.subr.mxu1 %v374_v5  ;;  %1402 = vmatpush2.msra.mxu0 %v309_v6  ;;  %v474_v5 = vld [vmem:[#allocation5 + $0xa28] sm:$0xff]  ;;  %v409_v6 = vld [vmem:[#allocation5 + $0x820] sm:$0xff] }
  0xc5   :  { %1403 = vmatprep.mubr.f32.mxu0 %v90_v7  ;;  %1479 = vmatpush2.msra.mxu1 %v373_v8  ;;  %v473_v7 = vld [vmem:[#allocation5 + $0xa20] sm:$0xff]  ;;  %v408_v8 = vld [vmem:[#allocation5 + $0x818] sm:$0xff] }
  0xc6   :  { %1404 = vmatmul.mubr.f32.vlgmr.msra.gmra.mxu0 %v89_v9  ;;  %1480 = vmatprep.mubr.f32.mxu1 %v92_v10  ;;  %v472_v9 = vld [vmem:[#allocation5 + $0xa18] sm:$0xff]  ;;  %v407_v10 = vld [vmem:[#allocation5 + $0x810] sm:$0xff] }
  0xc7   :  { %1493 = vmatprep.subr.mxu0 %v436_v11  ;;  %1570 = vmatprep.subr.mxu1 %v500_v12  ;;  %v471_v11 = vld [vmem:[#allocation5 + $0xa10] sm:$0xff]  ;;  %v406_v12 = vld [vmem:[#allocation5 + $0x808] sm:$0xff] }
  0xc8   :  { %1481 = vmatmul.mubr.f32.vlgmr.msra.gmra.mxu1 %v91_v13  ;;  %1494 = vmatpush1.msra.mxu0 %v435_v14  ;;  %v470_v13 = vld [vmem:[#allocation5 + $0xa08] sm:$0xff]  ;;  %v405_v14 = vld [vmem:[#allocation5 + $0x800] sm:$0xff] }
  0xc9   :  { %1571 = vmatpush1.msra.mxu1 %v499_v15  ;;  %1495 = vmatprep.subr.mxu0 %v434_v16  ;;  %v469_v15 = vld [vmem:[#allocation5 + $0xa00] sm:$0xff]  ;;  %v468_v16 = vld [vmem:[#allocation5 + $0x9f8] sm:$0xff] }
  0xca   :  { %1572 = vmatprep.subr.mxu1 %v498_v17  ;;  %1409 = vmatprep.mubr.f32.mxu0 %v122_v18  ;;  %v532_v17 = vld [vmem:[#allocation5 + $0xbf8] sm:$0xff]  ;;  %v467_v18 = vld [vmem:[#allocation5 + $0x9f0] sm:$0xff] }
  0xcb   :  { %1496 = vmatpush1.msra.mxu0 %v433_v19  ;;  %1573 = vmatpush1.msra.mxu1 %v497_v20  ;;  %v531_v19 = vld [vmem:[#allocation5 + $0xbf0] sm:$0xff]  ;;  %v466_v20 = vld [vmem:[#allocation5 + $0x9e8] sm:$0xff] }
  0xcc   :  { %1410 = vmatmul.mubr.f32.gmra.mxu0 %v121_v21  ;;  %1497 = vmatprep.subr.mxu0 %v432_v22  ;;  %v530_v21 = vld [vmem:[#allocation5 + $0xbe8] sm:$0xff]  ;;  %v465_v22 = vld [vmem:[#allocation5 + $0x9e0] sm:$0xff] }
  0xcd   :  { %1574 = vmatprep.subr.mxu1 %v496_v23  ;;  %1486 = vmatprep.mubr.f32.mxu1 %v124_v24  ;;  %v529_v23 = vld [vmem:[#allocation5 + $0xbe0] sm:$0xff]  ;;  %v464_v24 = vld [vmem:[#allocation5 + $0x9d8] sm:$0xff] }
  0xce   :  { %1498 = vmatpush1.msra.mxu0 %v431_v25  ;;  %1575 = vmatpush1.msra.mxu1 %v495_v26  ;;  %v528_v25 = vld [vmem:[#allocation5 + $0xbd8] sm:$0xff]  ;;  %v463_v26 = vld [vmem:[#allocation5 + $0x9d0] sm:$0xff] }
  0xcf   :  { %1499 = vmatprep.subr.mxu0 %v430_v27  ;;  %1487 = vmatmul.mubr.f32.gmra.mxu1 %v123_v28  ;;  %v527_v27 = vld [vmem:[#allocation5 + $0xbd0] sm:$0xff]  ;;  %v462_v28 = vld [vmem:[#allocation5 + $0x9c8] sm:$0xff] }
  0xd0   :  { %1576 = vmatprep.subr.mxu1 %v494_v29  ;;  %1500 = vmatpush1.msra.mxu0 %v429_v30  ;;  %v526_v29 = vld [vmem:[#allocation5 + $0xbc8] sm:$0xff]  ;;  %v461_v30 = vld [vmem:[#allocation5 + $0x9c0] sm:$0xff] }
  0xd1   :  { %1577 = vmatpush1.msra.mxu1 %v493_v31  ;;  %1501 = vmatprep.subr.mxu0 %v428_v32  ;;  %v525_v31 = vld [vmem:[#allocation5 + $0xbc0] sm:$0xff]  ;;  %v460_v32 = vld [vmem:[#allocation5 + $0x9b8] sm:$0xff] }
  0xd2   :  { %1578 = vmatprep.subr.mxu1 %v492_v33  ;;  %1502 = vmatpush1.msra.mxu0 %v427_v34  ;;  %v524_v33 = vld [vmem:[#allocation5 + $0xbb8] sm:$0xff]  ;;  %v459_v34 = vld [vmem:[#allocation5 + $0x9b0] sm:$0xff] }
  0xd3   :  { %1579 = vmatpush1.msra.mxu1 %v491_v35  ;;  %1503 = vmatprep.subr.mxu0 %v426_v36  ;;  %v523_v35 = vld [vmem:[#allocation5 + $0xbb0] sm:$0xff]  ;;  %v458_v36 = vld [vmem:[#allocation5 + $0x9a8] sm:$0xff] }
  0xd4   :  { %1580 = vmatprep.subr.mxu1 %v490_v37  ;;  %1504 = vmatpush1.msra.mxu0 %v425_v38  ;;  %v522_v37 = vld [vmem:[#allocation5 + $0xba8] sm:$0xff]  ;;  %v457_v38 = vld [vmem:[#allocation5 + $0x9a0] sm:$0xff] }
  0xd5   :  { %1581 = vmatpush1.msra.mxu1 %v489_v39  ;;  %1505 = vmatprep.subr.mxu0 %v424_v40  ;;  %v521_v39 = vld [vmem:[#allocation5 + $0xba0] sm:$0xff]  ;;  %v456_v40 = vld [vmem:[#allocation5 + $0x998] sm:$0xff] }
  0xd6   :  { %1582 = vmatprep.subr.mxu1 %v488_v41  ;;  %1506 = vmatpush1.msra.mxu0 %v423_v42  ;;  %v520_v41 = vld [vmem:[#allocation5 + $0xb98] sm:$0xff]  ;;  %v455_v42 = vld [vmem:[#allocation5 + $0x990] sm:$0xff] }
  0xd7   :  { %1583 = vmatpush1.msra.mxu1 %v487_v43  ;;  %1507 = vmatprep.subr.mxu0 %v422_v44  ;;  %v519_v43 = vld [vmem:[#allocation5 + $0xb90] sm:$0xff]  ;;  %v454_v44 = vld [vmem:[#allocation5 + $0x988] sm:$0xff] }
  0xd8   :  { %1584 = vmatprep.subr.mxu1 %v486_v45  ;;  %1508 = vmatpush1.msra.mxu0 %v421_v46  ;;  %v518_v45 = vld [vmem:[#allocation5 + $0xb88] sm:$0xff]  ;;  %v453_v46 = vld [vmem:[#allocation5 + $0x980] sm:$0xff] }
  0xd9   :  { %1585 = vmatpush1.msra.mxu1 %v485_v47  ;;  %1509 = vmatprep.subr.mxu0 %v420_v48  ;;  %v517_v47 = vld [vmem:[#allocation5 + $0xb80] sm:$0xff]  ;;  %v452_v48 = vld [vmem:[#allocation5 + $0x978] sm:$0xff] }
  0xda   :  { %1586 = vmatprep.subr.mxu1 %v484_v49  ;;  %1510 = vmatpush1.msra.mxu0 %v419_v50  ;;  %v516_v49 = vld [vmem:[#allocation5 + $0xb78] sm:$0xff]  ;;  %v451_v50 = vld [vmem:[#allocation5 + $0x970] sm:$0xff] }
  0xdb   :  { %1587 = vmatpush1.msra.mxu1 %v483_v51  ;;  %1511 = vmatprep.subr.mxu0 %v418_v52  ;;  %v515_v51 = vld [vmem:[#allocation5 + $0xb70] sm:$0xff]  ;;  %v450_v52 = vld [vmem:[#allocation5 + $0x968] sm:$0xff] }
  0xdc   :  { %1588 = vmatprep.subr.mxu1 %v482_v53  ;;  %1512 = vmatpush1.msra.mxu0 %v417_v54  ;;  %v514_v53 = vld [vmem:[#allocation5 + $0xb68] sm:$0xff]  ;;  %v449_v54 = vld [vmem:[#allocation5 + $0x960] sm:$0xff] }
  0xdd   :  { %1589 = vmatpush1.msra.mxu1 %v481_v55  ;;  %1513 = vmatprep.subr.mxu0 %v416_v56  ;;  %v513_v55 = vld [vmem:[#allocation5 + $0xb60] sm:$0xff]  ;;  %v448_v56 = vld [vmem:[#allocation5 + $0x958] sm:$0xff] }
  0xde   :  { %1590 = vmatprep.subr.mxu1 %v480_v57  ;;  %1514 = vmatpush1.msra.mxu0 %v415_v58  ;;  %v512_v57 = vld [vmem:[#allocation5 + $0xb58] sm:$0xff]  ;;  %v447_v58 = vld [vmem:[#allocation5 + $0x950] sm:$0xff] }
  0xdf   :  { %1591 = vmatpush1.msra.mxu1 %v479_v59  ;;  %1515 = vmatprep.subr.mxu0 %v414_v60  ;;  %v511_v59 = vld [vmem:[#allocation5 + $0xb50] sm:$0xff]  ;;  %v446_v60 = vld [vmem:[#allocation5 + $0x948] sm:$0xff] }
  0xe0   :  { %1592 = vmatprep.subr.mxu1 %v478_v61  ;;  %1516 = vmatpush1.msra.mxu0 %v413_v62  ;;  %v510_v61 = vld [vmem:[#allocation5 + $0xb48] sm:$0xff]  ;;  %v445_v62 = vld [vmem:[#allocation5 + $0x940] sm:$0xff] }
  0xe1   :  { %1593 = vmatpush1.msra.mxu1 %v477_v63  ;;  %1517 = vmatprep.subr.mxu0 %v412_v0  ;;  %v509_v63 = vld [vmem:[#allocation5 + $0xb40] sm:$0xff]  ;;  %v444_v0 = vld [vmem:[#allocation5 + $0x938] sm:$0xff] }
  0xe2   :  { %1594 = vmatprep.subr.mxu1 %v476_v1  ;;  %1518 = vmatpush1.msra.mxu0 %v411_v2  ;;  %v508_v1 = vld [vmem:[#allocation5 + $0xb38] sm:$0xff]  ;;  %v443_v2 = vld [vmem:[#allocation5 + $0x930] sm:$0xff] }
  0xe3   :  { %1595 = vmatpush1.msra.mxu1 %v475_v3  ;;  %1519 = vmatprep.subr.mxu0 %v410_v4  ;;  %v507_v3 = vld [vmem:[#allocation5 + $0xb30] sm:$0xff]  ;;  %v442_v4 = vld [vmem:[#allocation5 + $0x928] sm:$0xff] }
  0xe4   :  { %1596 = vmatprep.subr.mxu1 %v474_v5  ;;  %1520 = vmatpush1.msra.mxu0 %v409_v6  ;;  %v506_v5 = vld [vmem:[#allocation5 + $0xb28] sm:$0xff]  ;;  %v441_v6 = vld [vmem:[#allocation5 + $0x920] sm:$0xff] }
  0xe5   :  { %1597 = vmatpush1.msra.mxu1 %v473_v7  ;;  %1521 = vmatprep.subr.mxu0 %v408_v8  ;;  %v505_v7 = vld [vmem:[#allocation5 + $0xb20] sm:$0xff]  ;;  %v440_v8 = vld [vmem:[#allocation5 + $0x918] sm:$0xff] }
  0xe6   :  { %1598 = vmatprep.subr.mxu1 %v472_v9  ;;  %1522 = vmatpush1.msra.mxu0 %v407_v10  ;;  %v504_v9 = vld [vmem:[#allocation5 + $0xb18] sm:$0xff]  ;;  %v439_v10 = vld [vmem:[#allocation5 + $0x910] sm:$0xff] }
  0xe7   :  { %1599 = vmatpush1.msra.mxu1 %v471_v11  ;;  %1523 = vmatprep.subr.mxu0 %v406_v12  ;;  %v503_v11 = vld [vmem:[#allocation5 + $0xb10] sm:$0xff]  ;;  %v438_v12 = vld [vmem:[#allocation5 + $0x908] sm:$0xff] }
  0xe8   :  { %1600 = vmatprep.subr.mxu1 %v470_v13  ;;  %1524 = vmatpush1.msra.mxu0 %v405_v14  ;;  %v502_v13 = vld [vmem:[#allocation5 + $0xb08] sm:$0xff]  ;;  %v437_v14 = vld [vmem:[#allocation5 + $0x900] sm:$0xff] }
  0xe9   :  { %1601 = vmatpush1.msra.mxu1 %v469_v15  ;;  %1525 = vmatprep.subr.mxu0 %v468_v16  ;;  %v94_v15 = vld [vmem:[#allocation2 + $0x48] sm:$0xff]  ;;  %v501_v16 = vld [vmem:[#allocation5 + $0xb00] sm:$0xff] }
  0xea   :  { %1602 = vmatprep.subr.mxu1 %v532_v17  ;;  %1526 = vmatpush2.msra.mxu0 %v467_v18  ;;  %v93_v17 = vld [vmem:[#allocation2 + $0x40] sm:$0xff]  ;;  %v96_v18 = vld [vmem:[#allocation2 + $0x58] sm:$0xff] }
  0xeb   :  { %1603 = vmatpush2.msra.mxu1 %v531_v19  ;;  %1527 = vmatprep.subr.mxu0 %v466_v20  ;;  %v564_v19 = vld [vmem:[#allocation5 + $0xcf8] sm:$0xff] }
  0xec   :  { %1604 = vmatprep.subr.mxu1 %v530_v21  ;;  %1528 = vmatpush2.msra.mxu0 %v465_v22  ;;  %v628_v20 = vld [vmem:[#allocation5 + $0xef8] sm:$0xff]  ;;  %v95_v21 = vld [vmem:[#allocation2 + $0x50] sm:$0xff] }
  0xed   :  { %1605 = vmatpush2.msra.mxu1 %v529_v23  ;;  %1529 = vmatprep.subr.mxu0 %v464_v24  ;;  %v563_v22 = vld [vmem:[#allocation5 + $0xcf0] sm:$0xff]  ;;  %v562_v24 = vld [vmem:[#allocation5 + $0xce8] sm:$0xff] }
  0xee   :  { %1606 = vmatprep.subr.mxu1 %v528_v25  ;;  %1530 = vmatpush2.msra.mxu0 %v463_v26  ;;  %v627_v23 = vld [vmem:[#allocation5 + $0xef0] sm:$0xff]  ;;  %v626_v25 = vld [vmem:[#allocation5 + $0xee8] sm:$0xff] }
  0xef   :  { %1607 = vmatpush2.msra.mxu1 %v527_v27  ;;  %1531 = vmatprep.subr.mxu0 %v462_v28  ;;  %v126_v26 = vld [vmem:[#allocation2 + $0x148] sm:$0xff]  ;;  %v561_v27 = vld [vmem:[#allocation5 + $0xce0] sm:$0xff] }
  0xf0   :  { %1608 = vmatprep.subr.mxu1 %v526_v29  ;;  %1532 = vmatpush2.msra.mxu0 %v461_v30  ;;  %v625_v28 = vld [vmem:[#allocation5 + $0xee0] sm:$0xff]  ;;  %v560_v30 = vld [vmem:[#allocation5 + $0xcd8] sm:$0xff] }
  0xf1   :  { %1609 = vmatpush2.msra.mxu1 %v525_v31  ;;  %1533 = vmatprep.subr.mxu0 %v460_v32  ;;  %v125_v29 = vld [vmem:[#allocation2 + $0x140] sm:$0xff]  ;;  %v624_v31 = vld [vmem:[#allocation5 + $0xed8] sm:$0xff] }
  0xf2   :  { %1610 = vmatprep.subr.mxu1 %v524_v33  ;;  %1534 = vmatpush2.msra.mxu0 %v459_v34  ;;  %v128_v32 = vld [vmem:[#allocation2 + $0x158] sm:$0xff]  ;;  %v559_v33 = vld [vmem:[#allocation5 + $0xcd0] sm:$0xff] }
  0xf3   :  { %1611 = vmatpush2.msra.mxu1 %v523_v35  ;;  %1535 = vmatprep.subr.mxu0 %v458_v36  ;;  %v623_v34 = vld [vmem:[#allocation5 + $0xed0] sm:$0xff]  ;;  %v558_v35 = vld [vmem:[#allocation5 + $0xcc8] sm:$0xff] }
  0xf4   :  { %1612 = vmatprep.subr.mxu1 %v522_v37  ;;  %1536 = vmatpush2.msra.mxu0 %v457_v38  ;;  %v127_v36 = vld [vmem:[#allocation2 + $0x150] sm:$0xff]  ;;  %v622_v37 = vld [vmem:[#allocation5 + $0xec8] sm:$0xff]  ;;  %v557_v38 = vld [vmem:[#allocation5 + $0xcc0] sm:$0xff] }
  0xf5   :  { %1613 = vmatpush2.msra.mxu1 %v521_v39  ;;  %1537 = vmatprep.subr.mxu0 %v456_v40  ;;  %v621_v39 = vld [vmem:[#allocation5 + $0xec0] sm:$0xff]  ;;  %v556_v40 = vld [vmem:[#allocation5 + $0xcb8] sm:$0xff] }
  0xf6   :  { %1614 = vmatprep.subr.mxu1 %v520_v41  ;;  %1538 = vmatpush2.msra.mxu0 %v455_v42  ;;  %v620_v41 = vld [vmem:[#allocation5 + $0xeb8] sm:$0xff]  ;;  %v555_v42 = vld [vmem:[#allocation5 + $0xcb0] sm:$0xff] }
  0xf7   :  { %1615 = vmatpush2.msra.mxu1 %v519_v43  ;;  %1539 = vmatprep.subr.mxu0 %v454_v44  ;;  %v619_v43 = vld [vmem:[#allocation5 + $0xeb0] sm:$0xff]  ;;  %v554_v44 = vld [vmem:[#allocation5 + $0xca8] sm:$0xff] }
  0xf8   :  { %1616 = vmatprep.subr.mxu1 %v518_v45  ;;  %1540 = vmatpush2.msra.mxu0 %v453_v46  ;;  %v618_v45 = vld [vmem:[#allocation5 + $0xea8] sm:$0xff]  ;;  %v553_v46 = vld [vmem:[#allocation5 + $0xca0] sm:$0xff] }
  0xf9   :  { %1617 = vmatpush2.msra.mxu1 %v517_v47  ;;  %1541 = vmatprep.subr.mxu0 %v452_v48  ;;  %v617_v47 = vld [vmem:[#allocation5 + $0xea0] sm:$0xff]  ;;  %v552_v48 = vld [vmem:[#allocation5 + $0xc98] sm:$0xff] }
  0xfa   :  { %1618 = vmatprep.subr.mxu1 %v516_v49  ;;  %1542 = vmatpush2.msra.mxu0 %v451_v50  ;;  %v616_v49 = vld [vmem:[#allocation5 + $0xe98] sm:$0xff]  ;;  %v551_v50 = vld [vmem:[#allocation5 + $0xc90] sm:$0xff] }
  0xfb   :  { %1619 = vmatpush2.msra.mxu1 %v515_v51  ;;  %1543 = vmatprep.subr.mxu0 %v450_v52  ;;  %v615_v51 = vld [vmem:[#allocation5 + $0xe90] sm:$0xff]  ;;  %v550_v52 = vld [vmem:[#allocation5 + $0xc88] sm:$0xff] }
  0xfc   :  { %1620 = vmatprep.subr.mxu1 %v514_v53  ;;  %1544 = vmatpush2.msra.mxu0 %v449_v54  ;;  %v614_v53 = vld [vmem:[#allocation5 + $0xe88] sm:$0xff]  ;;  %v549_v54 = vld [vmem:[#allocation5 + $0xc80] sm:$0xff] }
  0xfd   :  { %1621 = vmatpush2.msra.mxu1 %v513_v55  ;;  %1545 = vmatprep.subr.mxu0 %v448_v56  ;;  %v613_v55 = vld [vmem:[#allocation5 + $0xe80] sm:$0xff]  ;;  %v548_v56 = vld [vmem:[#allocation5 + $0xc78] sm:$0xff] }
  0xfe   :  { %1622 = vmatprep.subr.mxu1 %v512_v57  ;;  %1546 = vmatpush2.msra.mxu0 %v447_v58  ;;  %v612_v57 = vld [vmem:[#allocation5 + $0xe78] sm:$0xff]  ;;  %v547_v58 = vld [vmem:[#allocation5 + $0xc70] sm:$0xff] }
  0xff   :  { %1623 = vmatpush2.msra.mxu1 %v511_v59  ;;  %1547 = vmatprep.subr.mxu0 %v446_v60  ;;  %v611_v59 = vld [vmem:[#allocation5 + $0xe70] sm:$0xff]  ;;  %v546_v60 = vld [vmem:[#allocation5 + $0xc68] sm:$0xff] }
 0x100   :  { %1624 = vmatprep.subr.mxu1 %v510_v61  ;;  %1548 = vmatpush2.msra.mxu0 %v445_v62  ;;  %v610_v61 = vld [vmem:[#allocation5 + $0xe68] sm:$0xff]  ;;  %v545_v62 = vld [vmem:[#allocation5 + $0xc60] sm:$0xff] }
 0x101   :  { %1625 = vmatpush2.msra.mxu1 %v509_v63  ;;  %1549 = vmatprep.subr.mxu0 %v444_v0  ;;  %v609_v63 = vld [vmem:[#allocation5 + $0xe60] sm:$0xff]  ;;  %v544_v0 = vld [vmem:[#allocation5 + $0xc58] sm:$0xff] }
 0x102   :  { %1626 = vmatprep.subr.mxu1 %v508_v1  ;;  %1550 = vmatpush2.msra.mxu0 %v443_v2  ;;  %v608_v1 = vld [vmem:[#allocation5 + $0xe58] sm:$0xff]  ;;  %v543_v2 = vld [vmem:[#allocation5 + $0xc50] sm:$0xff] }
 0x103   :  { %1627 = vmatpush2.msra.mxu1 %v507_v3  ;;  %1551 = vmatprep.subr.mxu0 %v442_v4  ;;  %v607_v3 = vld [vmem:[#allocation5 + $0xe50] sm:$0xff]  ;;  %v542_v4 = vld [vmem:[#allocation5 + $0xc48] sm:$0xff] }
 0x104   :  { %1628 = vmatprep.subr.mxu1 %v506_v5  ;;  %1552 = vmatpush2.msra.mxu0 %v441_v6  ;;  %v606_v5 = vld [vmem:[#allocation5 + $0xe48] sm:$0xff]  ;;  %v541_v6 = vld [vmem:[#allocation5 + $0xc40] sm:$0xff] }
 0x105   :  { %1629 = vmatpush2.msra.mxu1 %v505_v7  ;;  %1553 = vmatprep.subr.mxu0 %v440_v8  ;;  %v605_v7 = vld [vmem:[#allocation5 + $0xe40] sm:$0xff]  ;;  %v540_v8 = vld [vmem:[#allocation5 + $0xc38] sm:$0xff] }
 0x106   :  { %1630 = vmatprep.subr.mxu1 %v504_v9  ;;  %1554 = vmatpush2.msra.mxu0 %v439_v10  ;;  %v604_v9 = vld [vmem:[#allocation5 + $0xe38] sm:$0xff]  ;;  %v539_v10 = vld [vmem:[#allocation5 + $0xc30] sm:$0xff] }
 0x107   :  { %1631 = vmatpush2.msra.mxu1 %v503_v11  ;;  %1555 = vmatprep.subr.mxu0 %v438_v12  ;;  %v603_v11 = vld [vmem:[#allocation5 + $0xe30] sm:$0xff]  ;;  %v538_v12 = vld [vmem:[#allocation5 + $0xc28] sm:$0xff] }
 0x108   :  { %1632 = vmatprep.subr.mxu1 %v502_v13  ;;  %1556 = vmatpush2.msra.mxu0 %v437_v14  ;;  %v602_v13 = vld [vmem:[#allocation5 + $0xe28] sm:$0xff]  ;;  %v537_v14 = vld [vmem:[#allocation5 + $0xc20] sm:$0xff] }
 0x109   :  { %1557 = vmatprep.mubr.f32.mxu0 %v94_v15  ;;  %1633 = vmatpush2.msra.mxu1 %v501_v16  ;;  %v601_v15 = vld [vmem:[#allocation5 + $0xe20] sm:$0xff]  ;;  %v536_v16 = vld [vmem:[#allocation5 + $0xc18] sm:$0xff] }
 0x10a   :  { %1558 = vmatmul.mubr.f32.vlgmr.msra.gmra.mxu0 %v93_v17  ;;  %1634 = vmatprep.mubr.f32.mxu1 %v96_v18  ;;  %v600_v17 = vld [vmem:[#allocation5 + $0xe18] sm:$0xff]  ;;  %v535_v18 = vld [vmem:[#allocation5 + $0xc10] sm:$0xff] }
 0x10b   :  { %1647 = vmatprep.subr.mxu0 %v564_v19  ;;  %1724 = vmatprep.subr.mxu1 %v628_v20  ;;  %v599_v19 = vld [vmem:[#allocation5 + $0xe10] sm:$0xff]  ;;  %v534_v20 = vld [vmem:[#allocation5 + $0xc08] sm:$0xff] }
 0x10c   :  { %1635 = vmatmul.mubr.f32.vlgmr.msra.gmra.mxu1 %v95_v21  ;;  %1648 = vmatpush1.msra.mxu0 %v563_v22  ;;  %v598_v21 = vld [vmem:[#allocation5 + $0xe08] sm:$0xff]  ;;  %v533_v22 = vld [vmem:[#allocation5 + $0xc00] sm:$0xff] }
 0x10d   :  { %1725 = vmatpush1.msra.mxu1 %v627_v23  ;;  %1649 = vmatprep.subr.mxu0 %v562_v24  ;;  %v597_v23 = vld [vmem:[#allocation5 + $0xe00] sm:$0xff]  ;;  %v596_v24 = vld [vmem:[#allocation5 + $0xdf8] sm:$0xff] }
 0x10e   :  { %1726 = vmatprep.subr.mxu1 %v626_v25  ;;  %1563 = vmatprep.mubr.f32.mxu0 %v126_v26  ;;  %v660_v25 = vld [vmem:[#allocation5 + $0xff8] sm:$0xff]  ;;  %v595_v26 = vld [vmem:[#allocation5 + $0xdf0] sm:$0xff] }
 0x10f   :  { %1650 = vmatpush1.msra.mxu0 %v561_v27  ;;  %1727 = vmatpush1.msra.mxu1 %v625_v28  ;;  %v659_v27 = vld [vmem:[#allocation5 + $0xff0] sm:$0xff]  ;;  %v594_v28 = vld [vmem:[#allocation5 + $0xde8] sm:$0xff] }
 0x110   :  { %1564 = vmatmul.mubr.f32.gmra.mxu0 %v125_v29  ;;  %1651 = vmatprep.subr.mxu0 %v560_v30  ;;  %v658_v29 = vld [vmem:[#allocation5 + $0xfe8] sm:$0xff]  ;;  %v593_v30 = vld [vmem:[#allocation5 + $0xde0] sm:$0xff] }
 0x111   :  { %1728 = vmatprep.subr.mxu1 %v624_v31  ;;  %1640 = vmatprep.mubr.f32.mxu1 %v128_v32  ;;  %v657_v31 = vld [vmem:[#allocation5 + $0xfe0] sm:$0xff]  ;;  %v592_v32 = vld [vmem:[#allocation5 + $0xdd8] sm:$0xff] }
 0x112   :  { %1652 = vmatpush1.msra.mxu0 %v559_v33  ;;  %1729 = vmatpush1.msra.mxu1 %v623_v34  ;;  %v656_v33 = vld [vmem:[#allocation5 + $0xfd8] sm:$0xff]  ;;  %v591_v34 = vld [vmem:[#allocation5 + $0xdd0] sm:$0xff] }
 0x113   :  { %1653 = vmatprep.subr.mxu0 %v558_v35  ;;  %1641 = vmatmul.mubr.f32.gmra.mxu1 %v127_v36  ;;  %v655_v35 = vld [vmem:[#allocation5 + $0xfd0] sm:$0xff]  ;;  %v590_v36 = vld [vmem:[#allocation5 + $0xdc8] sm:$0xff] }
 0x114   :  { %1730 = vmatprep.subr.mxu1 %v622_v37  ;;  %1654 = vmatpush1.msra.mxu0 %v557_v38  ;;  %v654_v37 = vld [vmem:[#allocation5 + $0xfc8] sm:$0xff]  ;;  %v589_v38 = vld [vmem:[#allocation5 + $0xdc0] sm:$0xff] }
 0x115   :  { %1731 = vmatpush1.msra.mxu1 %v621_v39  ;;  %1655 = vmatprep.subr.mxu0 %v556_v40  ;;  %v653_v39 = vld [vmem:[#allocation5 + $0xfc0] sm:$0xff]  ;;  %v588_v40 = vld [vmem:[#allocation5 + $0xdb8] sm:$0xff] }
 0x116   :  { %1732 = vmatprep.subr.mxu1 %v620_v41  ;;  %1656 = vmatpush1.msra.mxu0 %v555_v42  ;;  %v652_v41 = vld [vmem:[#allocation5 + $0xfb8] sm:$0xff]  ;;  %v587_v42 = vld [vmem:[#allocation5 + $0xdb0] sm:$0xff] }
 0x117   :  { %1733 = vmatpush1.msra.mxu1 %v619_v43  ;;  %1657 = vmatprep.subr.mxu0 %v554_v44  ;;  %v651_v43 = vld [vmem:[#allocation5 + $0xfb0] sm:$0xff]  ;;  %v586_v44 = vld [vmem:[#allocation5 + $0xda8] sm:$0xff] }
 0x118   :  { %1734 = vmatprep.subr.mxu1 %v618_v45  ;;  %1658 = vmatpush1.msra.mxu0 %v553_v46  ;;  %v650_v45 = vld [vmem:[#allocation5 + $0xfa8] sm:$0xff]  ;;  %v585_v46 = vld [vmem:[#allocation5 + $0xda0] sm:$0xff] }
 0x119   :  { %1735 = vmatpush1.msra.mxu1 %v617_v47  ;;  %1659 = vmatprep.subr.mxu0 %v552_v48  ;;  %v649_v47 = vld [vmem:[#allocation5 + $0xfa0] sm:$0xff]  ;;  %v584_v48 = vld [vmem:[#allocation5 + $0xd98] sm:$0xff] }
 0x11a   :  { %1736 = vmatprep.subr.mxu1 %v616_v49  ;;  %1660 = vmatpush1.msra.mxu0 %v551_v50  ;;  %v648_v49 = vld [vmem:[#allocation5 + $0xf98] sm:$0xff]  ;;  %v583_v50 = vld [vmem:[#allocation5 + $0xd90] sm:$0xff] }
 0x11b   :  { %1737 = vmatpush1.msra.mxu1 %v615_v51  ;;  %1661 = vmatprep.subr.mxu0 %v550_v52  ;;  %v647_v51 = vld [vmem:[#allocation5 + $0xf90] sm:$0xff]  ;;  %v582_v52 = vld [vmem:[#allocation5 + $0xd88] sm:$0xff] }
 0x11c   :  { %1738 = vmatprep.subr.mxu1 %v614_v53  ;;  %1662 = vmatpush1.msra.mxu0 %v549_v54  ;;  %v646_v53 = vld [vmem:[#allocation5 + $0xf88] sm:$0xff]  ;;  %v581_v54 = vld [vmem:[#allocation5 + $0xd80] sm:$0xff] }
 0x11d   :  { %1739 = vmatpush1.msra.mxu1 %v613_v55  ;;  %1663 = vmatprep.subr.mxu0 %v548_v56  ;;  %v645_v55 = vld [vmem:[#allocation5 + $0xf80] sm:$0xff]  ;;  %v580_v56 = vld [vmem:[#allocation5 + $0xd78] sm:$0xff] }
 0x11e   :  { %1740 = vmatprep.subr.mxu1 %v612_v57  ;;  %1664 = vmatpush1.msra.mxu0 %v547_v58  ;;  %v644_v57 = vld [vmem:[#allocation5 + $0xf78] sm:$0xff]  ;;  %v579_v58 = vld [vmem:[#allocation5 + $0xd70] sm:$0xff] }
 0x11f   :  { %1741 = vmatpush1.msra.mxu1 %v611_v59  ;;  %1665 = vmatprep.subr.mxu0 %v546_v60  ;;  %v643_v59 = vld [vmem:[#allocation5 + $0xf70] sm:$0xff]  ;;  %v578_v60 = vld [vmem:[#allocation5 + $0xd68] sm:$0xff] }
 0x120   :  { %1742 = vmatprep.subr.mxu1 %v610_v61  ;;  %1666 = vmatpush1.msra.mxu0 %v545_v62  ;;  %v642_v61 = vld [vmem:[#allocation5 + $0xf68] sm:$0xff]  ;;  %v577_v62 = vld [vmem:[#allocation5 + $0xd60] sm:$0xff] }
 0x121   :  { %1743 = vmatpush1.msra.mxu1 %v609_v63  ;;  %1667 = vmatprep.subr.mxu0 %v544_v0  ;;  %v641_v63 = vld [vmem:[#allocation5 + $0xf60] sm:$0xff]  ;;  %v576_v0 = vld [vmem:[#allocation5 + $0xd58] sm:$0xff] }
 0x122   :  { %1744 = vmatprep.subr.mxu1 %v608_v1  ;;  %1668 = vmatpush1.msra.mxu0 %v543_v2  ;;  %v640_v1 = vld [vmem:[#allocation5 + $0xf58] sm:$0xff]  ;;  %v575_v2 = vld [vmem:[#allocation5 + $0xd50] sm:$0xff] }
 0x123   :  { %1745 = vmatpush1.msra.mxu1 %v607_v3  ;;  %1669 = vmatprep.subr.mxu0 %v542_v4  ;;  %v639_v3 = vld [vmem:[#allocation5 + $0xf50] sm:$0xff]  ;;  %v574_v4 = vld [vmem:[#allocation5 + $0xd48] sm:$0xff] }
 0x124   :  { %1746 = vmatprep.subr.mxu1 %v606_v5  ;;  %1670 = vmatpush1.msra.mxu0 %v541_v6  ;;  %v638_v5 = vld [vmem:[#allocation5 + $0xf48] sm:$0xff]  ;;  %v573_v6 = vld [vmem:[#allocation5 + $0xd40] sm:$0xff] }
 0x125   :  { %1747 = vmatpush1.msra.mxu1 %v605_v7  ;;  %1671 = vmatprep.subr.mxu0 %v540_v8  ;;  %v637_v7 = vld [vmem:[#allocation5 + $0xf40] sm:$0xff]  ;;  %v572_v8 = vld [vmem:[#allocation5 + $0xd38] sm:$0xff] }
 0x126   :  { %1748 = vmatprep.subr.mxu1 %v604_v9  ;;  %1672 = vmatpush1.msra.mxu0 %v539_v10  ;;  %v636_v9 = vld [vmem:[#allocation5 + $0xf38] sm:$0xff]  ;;  %v571_v10 = vld [vmem:[#allocation5 + $0xd30] sm:$0xff] }
 0x127   :  { %1749 = vmatpush1.msra.mxu1 %v603_v11  ;;  %1673 = vmatprep.subr.mxu0 %v538_v12  ;;  %v635_v11 = vld [vmem:[#allocation5 + $0xf30] sm:$0xff]  ;;  %v570_v12 = vld [vmem:[#allocation5 + $0xd28] sm:$0xff] }
 0x128   :  { %1750 = vmatprep.subr.mxu1 %v602_v13  ;;  %1674 = vmatpush1.msra.mxu0 %v537_v14  ;;  %v634_v13 = vld [vmem:[#allocation5 + $0xf28] sm:$0xff]  ;;  %v569_v14 = vld [vmem:[#allocation5 + $0xd20] sm:$0xff] }
 0x129   :  { %1751 = vmatpush1.msra.mxu1 %v601_v15  ;;  %1675 = vmatprep.subr.mxu0 %v536_v16  ;;  %v633_v15 = vld [vmem:[#allocation5 + $0xf20] sm:$0xff]  ;;  %v568_v16 = vld [vmem:[#allocation5 + $0xd18] sm:$0xff] }
 0x12a   :  { %1752 = vmatprep.subr.mxu1 %v600_v17  ;;  %1676 = vmatpush1.msra.mxu0 %v535_v18  ;;  %v632_v17 = vld [vmem:[#allocation5 + $0xf18] sm:$0xff]  ;;  %v567_v18 = vld [vmem:[#allocation5 + $0xd10] sm:$0xff] }
 0x12b   :  { %1753 = vmatpush1.msra.mxu1 %v599_v19  ;;  %1677 = vmatprep.subr.mxu0 %v534_v20  ;;  %v631_v19 = vld [vmem:[#allocation5 + $0xf10] sm:$0xff]  ;;  %v566_v20 = vld [vmem:[#allocation5 + $0xd08] sm:$0xff] }
 0x12c   :  { %1754 = vmatprep.subr.mxu1 %v598_v21  ;;  %1678 = vmatpush1.msra.mxu0 %v533_v22  ;;  %v630_v21 = vld [vmem:[#allocation5 + $0xf08] sm:$0xff]  ;;  %v565_v22 = vld [vmem:[#allocation5 + $0xd00] sm:$0xff] }
 0x12d   :  { %1755 = vmatpush1.msra.mxu1 %v597_v23  ;;  %1679 = vmatprep.subr.mxu0 %v596_v24  ;;  %v98_v23 = vld [vmem:[#allocation2 + $0x68] sm:$0xff]  ;;  %v629_v24 = vld [vmem:[#allocation5 + $0xf00] sm:$0xff] }
 0x12e   :  { %1756 = vmatprep.subr.mxu1 %v660_v25  ;;  %1680 = vmatpush2.msra.mxu0 %v595_v26  ;;  %v97_v25 = vld [vmem:[#allocation2 + $0x60] sm:$0xff]  ;;  %v100_v26 = vld [vmem:[#allocation2 + $0x78] sm:$0xff] }
 0x12f   :  { %1757 = vmatpush2.msra.mxu1 %v659_v27  ;;  %1681 = vmatprep.subr.mxu0 %v594_v28  ;;  %v692_v27 = vld [vmem:[#allocation5 + $0x10f8] sm:$0xff] }
 0x130   :  { %1758 = vmatprep.subr.mxu1 %v658_v29  ;;  %1682 = vmatpush2.msra.mxu0 %v593_v30  ;;  %v756_v28 = vld [vmem:[#allocation5 + $0x12f8] sm:$0xff]  ;;  %v99_v29 = vld [vmem:[#allocation2 + $0x70] sm:$0xff] }
 0x131   :  { %1759 = vmatpush2.msra.mxu1 %v657_v31  ;;  %1683 = vmatprep.subr.mxu0 %v592_v32  ;;  %v691_v30 = vld [vmem:[#allocation5 + $0x10f0] sm:$0xff]  ;;  %v690_v32 = vld [vmem:[#allocation5 + $0x10e8] sm:$0xff] }
 0x132   :  { %1760 = vmatprep.subr.mxu1 %v656_v33  ;;  %1684 = vmatpush2.msra.mxu0 %v591_v34  ;;  %v755_v31 = vld [vmem:[#allocation5 + $0x12f0] sm:$0xff]  ;;  %v754_v33 = vld [vmem:[#allocation5 + $0x12e8] sm:$0xff] }
 0x133   :  { %1761 = vmatpush2.msra.mxu1 %v655_v35  ;;  %1685 = vmatprep.subr.mxu0 %v590_v36  ;;  %v130_v34 = vld [vmem:[#allocation2 + $0x168] sm:$0xff]  ;;  %v689_v35 = vld [vmem:[#allocation5 + $0x10e0] sm:$0xff] }
 0x134   :  { %1762 = vmatprep.subr.mxu1 %v654_v37  ;;  %1686 = vmatpush2.msra.mxu0 %v589_v38  ;;  %v753_v36 = vld [vmem:[#allocation5 + $0x12e0] sm:$0xff]  ;;  %v688_v38 = vld [vmem:[#allocation5 + $0x10d8] sm:$0xff] }
 0x135   :  { %1763 = vmatpush2.msra.mxu1 %v653_v39  ;;  %1687 = vmatprep.subr.mxu0 %v588_v40  ;;  %v129_v37 = vld [vmem:[#allocation2 + $0x160] sm:$0xff]  ;;  %v752_v39 = vld [vmem:[#allocation5 + $0x12d8] sm:$0xff] }
 0x136   :  { %1764 = vmatprep.subr.mxu1 %v652_v41  ;;  %1688 = vmatpush2.msra.mxu0 %v587_v42  ;;  %v132_v40 = vld [vmem:[#allocation2 + $0x178] sm:$0xff]  ;;  %v687_v41 = vld [vmem:[#allocation5 + $0x10d0] sm:$0xff] }
 0x137   :  { %1765 = vmatpush2.msra.mxu1 %v651_v43  ;;  %1689 = vmatprep.subr.mxu0 %v586_v44  ;;  %v751_v42 = vld [vmem:[#allocation5 + $0x12d0] sm:$0xff]  ;;  %v686_v43 = vld [vmem:[#allocation5 + $0x10c8] sm:$0xff] }
 0x138   :  { %1766 = vmatprep.subr.mxu1 %v650_v45  ;;  %1690 = vmatpush2.msra.mxu0 %v585_v46  ;;  %v131_v44 = vld [vmem:[#allocation2 + $0x170] sm:$0xff]  ;;  %v750_v45 = vld [vmem:[#allocation5 + $0x12c8] sm:$0xff]  ;;  %v685_v46 = vld [vmem:[#allocation5 + $0x10c0] sm:$0xff] }
 0x139   :  { %1767 = vmatpush2.msra.mxu1 %v649_v47  ;;  %1691 = vmatprep.subr.mxu0 %v584_v48  ;;  %v749_v47 = vld [vmem:[#allocation5 + $0x12c0] sm:$0xff]  ;;  %v684_v48 = vld [vmem:[#allocation5 + $0x10b8] sm:$0xff] }
 0x13a   :  { %1768 = vmatprep.subr.mxu1 %v648_v49  ;;  %1692 = vmatpush2.msra.mxu0 %v583_v50  ;;  %v748_v49 = vld [vmem:[#allocation5 + $0x12b8] sm:$0xff]  ;;  %v683_v50 = vld [vmem:[#allocation5 + $0x10b0] sm:$0xff] }
 0x13b   :  { %1769 = vmatpush2.msra.mxu1 %v647_v51  ;;  %1693 = vmatprep.subr.mxu0 %v582_v52  ;;  %v747_v51 = vld [vmem:[#allocation5 + $0x12b0] sm:$0xff]  ;;  %v682_v52 = vld [vmem:[#allocation5 + $0x10a8] sm:$0xff] }
 0x13c   :  { %1770 = vmatprep.subr.mxu1 %v646_v53  ;;  %1694 = vmatpush2.msra.mxu0 %v581_v54  ;;  %v746_v53 = vld [vmem:[#allocation5 + $0x12a8] sm:$0xff]  ;;  %v681_v54 = vld [vmem:[#allocation5 + $0x10a0] sm:$0xff] }
 0x13d   :  { %1771 = vmatpush2.msra.mxu1 %v645_v55  ;;  %1695 = vmatprep.subr.mxu0 %v580_v56  ;;  %v745_v55 = vld [vmem:[#allocation5 + $0x12a0] sm:$0xff]  ;;  %v680_v56 = vld [vmem:[#allocation5 + $0x1098] sm:$0xff] }
 0x13e   :  { %1772 = vmatprep.subr.mxu1 %v644_v57  ;;  %1696 = vmatpush2.msra.mxu0 %v579_v58  ;;  %v744_v57 = vld [vmem:[#allocation5 + $0x1298] sm:$0xff]  ;;  %v679_v58 = vld [vmem:[#allocation5 + $0x1090] sm:$0xff] }
 0x13f   :  { %1773 = vmatpush2.msra.mxu1 %v643_v59  ;;  %1697 = vmatprep.subr.mxu0 %v578_v60  ;;  %v743_v59 = vld [vmem:[#allocation5 + $0x1290] sm:$0xff]  ;;  %v678_v60 = vld [vmem:[#allocation5 + $0x1088] sm:$0xff] }
 0x140   :  { %1774 = vmatprep.subr.mxu1 %v642_v61  ;;  %1698 = vmatpush2.msra.mxu0 %v577_v62  ;;  %v742_v61 = vld [vmem:[#allocation5 + $0x1288] sm:$0xff]  ;;  %v677_v62 = vld [vmem:[#allocation5 + $0x1080] sm:$0xff] }
 0x141   :  { %1775 = vmatpush2.msra.mxu1 %v641_v63  ;;  %1699 = vmatprep.subr.mxu0 %v576_v0  ;;  %v741_v63 = vld [vmem:[#allocation5 + $0x1280] sm:$0xff]  ;;  %v676_v0 = vld [vmem:[#allocation5 + $0x1078] sm:$0xff] }
 0x142   :  { %1776 = vmatprep.subr.mxu1 %v640_v1  ;;  %1700 = vmatpush2.msra.mxu0 %v575_v2  ;;  %v740_v1 = vld [vmem:[#allocation5 + $0x1278] sm:$0xff]  ;;  %v675_v2 = vld [vmem:[#allocation5 + $0x1070] sm:$0xff] }
 0x143   :  { %1777 = vmatpush2.msra.mxu1 %v639_v3  ;;  %1701 = vmatprep.subr.mxu0 %v574_v4  ;;  %v739_v3 = vld [vmem:[#allocation5 + $0x1270] sm:$0xff]  ;;  %v674_v4 = vld [vmem:[#allocation5 + $0x1068] sm:$0xff] }
 0x144   :  { %1778 = vmatprep.subr.mxu1 %v638_v5  ;;  %1702 = vmatpush2.msra.mxu0 %v573_v6  ;;  %v738_v5 = vld [vmem:[#allocation5 + $0x1268] sm:$0xff]  ;;  %v673_v6 = vld [vmem:[#allocation5 + $0x1060] sm:$0xff] }
 0x145   :  { %1779 = vmatpush2.msra.mxu1 %v637_v7  ;;  %1703 = vmatprep.subr.mxu0 %v572_v8  ;;  %v737_v7 = vld [vmem:[#allocation5 + $0x1260] sm:$0xff]  ;;  %v672_v8 = vld [vmem:[#allocation5 + $0x1058] sm:$0xff] }
 0x146   :  { %1780 = vmatprep.subr.mxu1 %v636_v9  ;;  %1704 = vmatpush2.msra.mxu0 %v571_v10  ;;  %v736_v9 = vld [vmem:[#allocation5 + $0x1258] sm:$0xff]  ;;  %v671_v10 = vld [vmem:[#allocation5 + $0x1050] sm:$0xff] }
 0x147   :  { %1781 = vmatpush2.msra.mxu1 %v635_v11  ;;  %1705 = vmatprep.subr.mxu0 %v570_v12  ;;  %v735_v11 = vld [vmem:[#allocation5 + $0x1250] sm:$0xff]  ;;  %v670_v12 = vld [vmem:[#allocation5 + $0x1048] sm:$0xff] }
 0x148   :  { %1782 = vmatprep.subr.mxu1 %v634_v13  ;;  %1706 = vmatpush2.msra.mxu0 %v569_v14  ;;  %v734_v13 = vld [vmem:[#allocation5 + $0x1248] sm:$0xff]  ;;  %v669_v14 = vld [vmem:[#allocation5 + $0x1040] sm:$0xff] }
 0x149   :  { %1783 = vmatpush2.msra.mxu1 %v633_v15  ;;  %1707 = vmatprep.subr.mxu0 %v568_v16  ;;  %v733_v15 = vld [vmem:[#allocation5 + $0x1240] sm:$0xff]  ;;  %v668_v16 = vld [vmem:[#allocation5 + $0x1038] sm:$0xff] }
 0x14a   :  { %1784 = vmatprep.subr.mxu1 %v632_v17  ;;  %1708 = vmatpush2.msra.mxu0 %v567_v18  ;;  %v732_v17 = vld [vmem:[#allocation5 + $0x1238] sm:$0xff]  ;;  %v667_v18 = vld [vmem:[#allocation5 + $0x1030] sm:$0xff] }
 0x14b   :  { %1785 = vmatpush2.msra.mxu1 %v631_v19  ;;  %1709 = vmatprep.subr.mxu0 %v566_v20  ;;  %v731_v19 = vld [vmem:[#allocation5 + $0x1230] sm:$0xff]  ;;  %v666_v20 = vld [vmem:[#allocation5 + $0x1028] sm:$0xff] }
 0x14c   :  { %1786 = vmatprep.subr.mxu1 %v630_v21  ;;  %1710 = vmatpush2.msra.mxu0 %v565_v22  ;;  %v730_v21 = vld [vmem:[#allocation5 + $0x1228] sm:$0xff]  ;;  %v665_v22 = vld [vmem:[#allocation5 + $0x1020] sm:$0xff] }
 0x14d   :  { %1711 = vmatprep.mubr.f32.mxu0 %v98_v23  ;;  %1787 = vmatpush2.msra.mxu1 %v629_v24  ;;  %v729_v23 = vld [vmem:[#allocation5 + $0x1220] sm:$0xff]  ;;  %v664_v24 = vld [vmem:[#allocation5 + $0x1018] sm:$0xff] }
 0x14e   :  { %1712 = vmatmul.mubr.f32.vlgmr.msra.gmra.mxu0 %v97_v25  ;;  %1788 = vmatprep.mubr.f32.mxu1 %v100_v26  ;;  %v728_v25 = vld [vmem:[#allocation5 + $0x1218] sm:$0xff]  ;;  %v663_v26 = vld [vmem:[#allocation5 + $0x1010] sm:$0xff] }
 0x14f   :  { %1801 = vmatprep.subr.mxu0 %v692_v27  ;;  %1878 = vmatprep.subr.mxu1 %v756_v28  ;;  %v727_v27 = vld [vmem:[#allocation5 + $0x1210] sm:$0xff]  ;;  %v662_v28 = vld [vmem:[#allocation5 + $0x1008] sm:$0xff] }
 0x150   :  { %1789 = vmatmul.mubr.f32.vlgmr.msra.gmra.mxu1 %v99_v29  ;;  %1802 = vmatpush1.msra.mxu0 %v691_v30  ;;  %v726_v29 = vld [vmem:[#allocation5 + $0x1208] sm:$0xff]  ;;  %v661_v30 = vld [vmem:[#allocation5 + $0x1000] sm:$0xff] }
 0x151   :  { %1879 = vmatpush1.msra.mxu1 %v755_v31  ;;  %1803 = vmatprep.subr.mxu0 %v690_v32  ;;  %v725_v31 = vld [vmem:[#allocation5 + $0x1200] sm:$0xff]  ;;  %v724_v32 = vld [vmem:[#allocation5 + $0x11f8] sm:$0xff] }
 0x152   :  { %1880 = vmatprep.subr.mxu1 %v754_v33  ;;  %1717 = vmatprep.mubr.f32.mxu0 %v130_v34  ;;  %v788_v33 = vld [vmem:[#allocation5 + $0x13f8] sm:$0xff]  ;;  %v723_v34 = vld [vmem:[#allocation5 + $0x11f0] sm:$0xff] }
 0x153   :  { %1804 = vmatpush1.msra.mxu0 %v689_v35  ;;  %1881 = vmatpush1.msra.mxu1 %v753_v36  ;;  %v787_v35 = vld [vmem:[#allocation5 + $0x13f0] sm:$0xff]  ;;  %v722_v36 = vld [vmem:[#allocation5 + $0x11e8] sm:$0xff] }
 0x154   :  { %1718 = vmatmul.mubr.f32.gmra.mxu0 %v129_v37  ;;  %1805 = vmatprep.subr.mxu0 %v688_v38  ;;  %v786_v37 = vld [vmem:[#allocation5 + $0x13e8] sm:$0xff]  ;;  %v721_v38 = vld [vmem:[#allocation5 + $0x11e0] sm:$0xff] }
 0x155   :  { %1882 = vmatprep.subr.mxu1 %v752_v39  ;;  %1794 = vmatprep.mubr.f32.mxu1 %v132_v40  ;;  %v785_v39 = vld [vmem:[#allocation5 + $0x13e0] sm:$0xff]  ;;  %v720_v40 = vld [vmem:[#allocation5 + $0x11d8] sm:$0xff] }
 0x156   :  { %1806 = vmatpush1.msra.mxu0 %v687_v41  ;;  %1883 = vmatpush1.msra.mxu1 %v751_v42  ;;  %v784_v41 = vld [vmem:[#allocation5 + $0x13d8] sm:$0xff]  ;;  %v719_v42 = vld [vmem:[#allocation5 + $0x11d0] sm:$0xff] }
 0x157   :  { %1807 = vmatprep.subr.mxu0 %v686_v43  ;;  %1795 = vmatmul.mubr.f32.gmra.mxu1 %v131_v44  ;;  %v783_v43 = vld [vmem:[#allocation5 + $0x13d0] sm:$0xff]  ;;  %v718_v44 = vld [vmem:[#allocation5 + $0x11c8] sm:$0xff] }
 0x158   :  { %1884 = vmatprep.subr.mxu1 %v750_v45  ;;  %1808 = vmatpush1.msra.mxu0 %v685_v46  ;;  %v782_v45 = vld [vmem:[#allocation5 + $0x13c8] sm:$0xff]  ;;  %v717_v46 = vld [vmem:[#allocation5 + $0x11c0] sm:$0xff] }
 0x159   :  { %1885 = vmatpush1.msra.mxu1 %v749_v47  ;;  %1809 = vmatprep.subr.mxu0 %v684_v48  ;;  %v781_v47 = vld [vmem:[#allocation5 + $0x13c0] sm:$0xff]  ;;  %v716_v48 = vld [vmem:[#allocation5 + $0x11b8] sm:$0xff] }
 0x15a   :  { %1886 = vmatprep.subr.mxu1 %v748_v49  ;;  %1810 = vmatpush1.msra.mxu0 %v683_v50  ;;  %v780_v49 = vld [vmem:[#allocation5 + $0x13b8] sm:$0xff]  ;;  %v715_v50 = vld [vmem:[#allocation5 + $0x11b0] sm:$0xff] }
 0x15b   :  { %1887 = vmatpush1.msra.mxu1 %v747_v51  ;;  %1811 = vmatprep.subr.mxu0 %v682_v52  ;;  %v779_v51 = vld [vmem:[#allocation5 + $0x13b0] sm:$0xff]  ;;  %v714_v52 = vld [vmem:[#allocation5 + $0x11a8] sm:$0xff] }
 0x15c   :  { %1888 = vmatprep.subr.mxu1 %v746_v53  ;;  %1812 = vmatpush1.msra.mxu0 %v681_v54  ;;  %v778_v53 = vld [vmem:[#allocation5 + $0x13a8] sm:$0xff]  ;;  %v713_v54 = vld [vmem:[#allocation5 + $0x11a0] sm:$0xff] }
 0x15d   :  { %1889 = vmatpush1.msra.mxu1 %v745_v55  ;;  %1813 = vmatprep.subr.mxu0 %v680_v56  ;;  %v777_v55 = vld [vmem:[#allocation5 + $0x13a0] sm:$0xff]  ;;  %v712_v56 = vld [vmem:[#allocation5 + $0x1198] sm:$0xff] }
 0x15e   :  { %1890 = vmatprep.subr.mxu1 %v744_v57  ;;  %1814 = vmatpush1.msra.mxu0 %v679_v58  ;;  %v776_v57 = vld [vmem:[#allocation5 + $0x1398] sm:$0xff]  ;;  %v711_v58 = vld [vmem:[#allocation5 + $0x1190] sm:$0xff] }
 0x15f   :  { %1891 = vmatpush1.msra.mxu1 %v743_v59  ;;  %1815 = vmatprep.subr.mxu0 %v678_v60  ;;  %v775_v59 = vld [vmem:[#allocation5 + $0x1390] sm:$0xff]  ;;  %v710_v60 = vld [vmem:[#allocation5 + $0x1188] sm:$0xff] }
 0x160   :  { %1892 = vmatprep.subr.mxu1 %v742_v61  ;;  %1816 = vmatpush1.msra.mxu0 %v677_v62  ;;  %v774_v61 = vld [vmem:[#allocation5 + $0x1388] sm:$0xff]  ;;  %v709_v62 = vld [vmem:[#allocation5 + $0x1180] sm:$0xff] }
 0x161   :  { %1893 = vmatpush1.msra.mxu1 %v741_v63  ;;  %1817 = vmatprep.subr.mxu0 %v676_v0  ;;  %v773_v63 = vld [vmem:[#allocation5 + $0x1380] sm:$0xff]  ;;  %v708_v0 = vld [vmem:[#allocation5 + $0x1178] sm:$0xff] }
 0x162   :  { %1894 = vmatprep.subr.mxu1 %v740_v1  ;;  %1818 = vmatpush1.msra.mxu0 %v675_v2  ;;  %v772_v1 = vld [vmem:[#allocation5 + $0x1378] sm:$0xff]  ;;  %v707_v2 = vld [vmem:[#allocation5 + $0x1170] sm:$0xff] }
 0x163   :  { %1895 = vmatpush1.msra.mxu1 %v739_v3  ;;  %1819 = vmatprep.subr.mxu0 %v674_v4  ;;  %v771_v3 = vld [vmem:[#allocation5 + $0x1370] sm:$0xff]  ;;  %v706_v4 = vld [vmem:[#allocation5 + $0x1168] sm:$0xff] }
 0x164   :  { %1896 = vmatprep.subr.mxu1 %v738_v5  ;;  %1820 = vmatpush1.msra.mxu0 %v673_v6  ;;  %v770_v5 = vld [vmem:[#allocation5 + $0x1368] sm:$0xff]  ;;  %v705_v6 = vld [vmem:[#allocation5 + $0x1160] sm:$0xff] }
 0x165   :  { %1897 = vmatpush1.msra.mxu1 %v737_v7  ;;  %1821 = vmatprep.subr.mxu0 %v672_v8  ;;  %v769_v7 = vld [vmem:[#allocation5 + $0x1360] sm:$0xff]  ;;  %v704_v8 = vld [vmem:[#allocation5 + $0x1158] sm:$0xff] }
 0x166   :  { %1898 = vmatprep.subr.mxu1 %v736_v9  ;;  %1822 = vmatpush1.msra.mxu0 %v671_v10  ;;  %v768_v9 = vld [vmem:[#allocation5 + $0x1358] sm:$0xff]  ;;  %v703_v10 = vld [vmem:[#allocation5 + $0x1150] sm:$0xff] }
 0x167   :  { %1899 = vmatpush1.msra.mxu1 %v735_v11  ;;  %1823 = vmatprep.subr.mxu0 %v670_v12  ;;  %v767_v11 = vld [vmem:[#allocation5 + $0x1350] sm:$0xff]  ;;  %v702_v12 = vld [vmem:[#allocation5 + $0x1148] sm:$0xff] }
 0x168   :  { %1900 = vmatprep.subr.mxu1 %v734_v13  ;;  %1824 = vmatpush1.msra.mxu0 %v669_v14  ;;  %v766_v13 = vld [vmem:[#allocation5 + $0x1348] sm:$0xff]  ;;  %v701_v14 = vld [vmem:[#allocation5 + $0x1140] sm:$0xff] }
 0x169   :  { %1901 = vmatpush1.msra.mxu1 %v733_v15  ;;  %1825 = vmatprep.subr.mxu0 %v668_v16  ;;  %v765_v15 = vld [vmem:[#allocation5 + $0x1340] sm:$0xff]  ;;  %v700_v16 = vld [vmem:[#allocation5 + $0x1138] sm:$0xff] }
 0x16a   :  { %1902 = vmatprep.subr.mxu1 %v732_v17  ;;  %1826 = vmatpush1.msra.mxu0 %v667_v18  ;;  %v764_v17 = vld [vmem:[#allocation5 + $0x1338] sm:$0xff]  ;;  %v699_v18 = vld [vmem:[#allocation5 + $0x1130] sm:$0xff] }
 0x16b   :  { %1903 = vmatpush1.msra.mxu1 %v731_v19  ;;  %1827 = vmatprep.subr.mxu0 %v666_v20  ;;  %v763_v19 = vld [vmem:[#allocation5 + $0x1330] sm:$0xff]  ;;  %v698_v20 = vld [vmem:[#allocation5 + $0x1128] sm:$0xff] }
 0x16c   :  { %1904 = vmatprep.subr.mxu1 %v730_v21  ;;  %1828 = vmatpush1.msra.mxu0 %v665_v22  ;;  %v762_v21 = vld [vmem:[#allocation5 + $0x1328] sm:$0xff]  ;;  %v697_v22 = vld [vmem:[#allocation5 + $0x1120] sm:$0xff] }
 0x16d   :  { %1905 = vmatpush1.msra.mxu1 %v729_v23  ;;  %1829 = vmatprep.subr.mxu0 %v664_v24  ;;  %v761_v23 = vld [vmem:[#allocation5 + $0x1320] sm:$0xff]  ;;  %v696_v24 = vld [vmem:[#allocation5 + $0x1118] sm:$0xff] }
 0x16e   :  { %1906 = vmatprep.subr.mxu1 %v728_v25  ;;  %1830 = vmatpush1.msra.mxu0 %v663_v26  ;;  %v760_v25 = vld [vmem:[#allocation5 + $0x1318] sm:$0xff]  ;;  %v695_v26 = vld [vmem:[#allocation5 + $0x1110] sm:$0xff] }
 0x16f   :  { %1907 = vmatpush1.msra.mxu1 %v727_v27  ;;  %1831 = vmatprep.subr.mxu0 %v662_v28  ;;  %v759_v27 = vld [vmem:[#allocation5 + $0x1310] sm:$0xff]  ;;  %v694_v28 = vld [vmem:[#allocation5 + $0x1108] sm:$0xff] }
 0x170   :  { %1908 = vmatprep.subr.mxu1 %v726_v29  ;;  %1832 = vmatpush1.msra.mxu0 %v661_v30  ;;  %v758_v29 = vld [vmem:[#allocation5 + $0x1308] sm:$0xff]  ;;  %v693_v30 = vld [vmem:[#allocation5 + $0x1100] sm:$0xff] }
 0x171   :  { %1909 = vmatpush1.msra.mxu1 %v725_v31  ;;  %1833 = vmatprep.subr.mxu0 %v724_v32  ;;  %v102_v31 = vld [vmem:[#allocation2 + $0x88] sm:$0xff]  ;;  %v757_v32 = vld [vmem:[#allocation5 + $0x1300] sm:$0xff] }
 0x172   :  { %1910 = vmatprep.subr.mxu1 %v788_v33  ;;  %1834 = vmatpush2.msra.mxu0 %v723_v34  ;;  %v101_v33 = vld [vmem:[#allocation2 + $0x80] sm:$0xff]  ;;  %v104_v34 = vld [vmem:[#allocation2 + $0x98] sm:$0xff] }
 0x173   :  { %1911 = vmatpush2.msra.mxu1 %v787_v35  ;;  %1835 = vmatprep.subr.mxu0 %v722_v36  ;;  %v820_v35 = vld [vmem:[#allocation5 + $0x14f8] sm:$0xff] }
 0x174   :  { %1912 = vmatprep.subr.mxu1 %v786_v37  ;;  %1836 = vmatpush2.msra.mxu0 %v721_v38  ;;  %v884_v36 = vld [vmem:[#allocation5 + $0x16f8] sm:$0xff]  ;;  %v103_v37 = vld [vmem:[#allocation2 + $0x90] sm:$0xff] }
 0x175   :  { %1913 = vmatpush2.msra.mxu1 %v785_v39  ;;  %1837 = vmatprep.subr.mxu0 %v720_v40  ;;  %v819_v38 = vld [vmem:[#allocation5 + $0x14f0] sm:$0xff]  ;;  %v818_v40 = vld [vmem:[#allocation5 + $0x14e8] sm:$0xff] }
 0x176   :  { %1914 = vmatprep.subr.mxu1 %v784_v41  ;;  %1838 = vmatpush2.msra.mxu0 %v719_v42  ;;  %v883_v39 = vld [vmem:[#allocation5 + $0x16f0] sm:$0xff]  ;;  %v882_v41 = vld [vmem:[#allocation5 + $0x16e8] sm:$0xff] }
 0x177   :  { %1915 = vmatpush2.msra.mxu1 %v783_v43  ;;  %1839 = vmatprep.subr.mxu0 %v718_v44  ;;  %v134_v42 = vld [vmem:[#allocation2 + $0x188] sm:$0xff]  ;;  %v817_v43 = vld [vmem:[#allocation5 + $0x14e0] sm:$0xff] }
 0x178   :  { %1916 = vmatprep.subr.mxu1 %v782_v45  ;;  %1840 = vmatpush2.msra.mxu0 %v717_v46  ;;  %v881_v44 = vld [vmem:[#allocation5 + $0x16e0] sm:$0xff]  ;;  %v816_v46 = vld [vmem:[#allocation5 + $0x14d8] sm:$0xff] }
 0x179   :  { %1917 = vmatpush2.msra.mxu1 %v781_v47  ;;  %1841 = vmatprep.subr.mxu0 %v716_v48  ;;  %v133_v45 = vld [vmem:[#allocation2 + $0x180] sm:$0xff]  ;;  %v880_v47 = vld [vmem:[#allocation5 + $0x16d8] sm:$0xff] }
 0x17a   :  { %1918 = vmatprep.subr.mxu1 %v780_v49  ;;  %1842 = vmatpush2.msra.mxu0 %v715_v50  ;;  %v136_v48 = vld [vmem:[#allocation2 + $0x198] sm:$0xff]  ;;  %v815_v49 = vld [vmem:[#allocation5 + $0x14d0] sm:$0xff] }
 0x17b   :  { %1919 = vmatpush2.msra.mxu1 %v779_v51  ;;  %1843 = vmatprep.subr.mxu0 %v714_v52  ;;  %v879_v50 = vld [vmem:[#allocation5 + $0x16d0] sm:$0xff]  ;;  %v814_v51 = vld [vmem:[#allocation5 + $0x14c8] sm:$0xff] }
 0x17c   :  { %1920 = vmatprep.subr.mxu1 %v778_v53  ;;  %1844 = vmatpush2.msra.mxu0 %v713_v54  ;;  %v135_v52 = vld [vmem:[#allocation2 + $0x190] sm:$0xff]  ;;  %v878_v53 = vld [vmem:[#allocation5 + $0x16c8] sm:$0xff]  ;;  %v813_v54 = vld [vmem:[#allocation5 + $0x14c0] sm:$0xff] }
 0x17d   :  { %1921 = vmatpush2.msra.mxu1 %v777_v55  ;;  %1845 = vmatprep.subr.mxu0 %v712_v56  ;;  %v877_v55 = vld [vmem:[#allocation5 + $0x16c0] sm:$0xff]  ;;  %v812_v56 = vld [vmem:[#allocation5 + $0x14b8] sm:$0xff] }
 0x17e   :  { %1922 = vmatprep.subr.mxu1 %v776_v57  ;;  %1846 = vmatpush2.msra.mxu0 %v711_v58  ;;  %v876_v57 = vld [vmem:[#allocation5 + $0x16b8] sm:$0xff]  ;;  %v811_v58 = vld [vmem:[#allocation5 + $0x14b0] sm:$0xff] }
 0x17f   :  { %1923 = vmatpush2.msra.mxu1 %v775_v59  ;;  %1847 = vmatprep.subr.mxu0 %v710_v60  ;;  %v875_v59 = vld [vmem:[#allocation5 + $0x16b0] sm:$0xff]  ;;  %v810_v60 = vld [vmem:[#allocation5 + $0x14a8] sm:$0xff] }
 0x180   :  { %1924 = vmatprep.subr.mxu1 %v774_v61  ;;  %1848 = vmatpush2.msra.mxu0 %v709_v62  ;;  %v874_v61 = vld [vmem:[#allocation5 + $0x16a8] sm:$0xff]  ;;  %v809_v62 = vld [vmem:[#allocation5 + $0x14a0] sm:$0xff] }
 0x181   :  { %1925 = vmatpush2.msra.mxu1 %v773_v63  ;;  %1849 = vmatprep.subr.mxu0 %v708_v0  ;;  %v873_v63 = vld [vmem:[#allocation5 + $0x16a0] sm:$0xff]  ;;  %v808_v0 = vld [vmem:[#allocation5 + $0x1498] sm:$0xff] }
 0x182   :  { %1926 = vmatprep.subr.mxu1 %v772_v1  ;;  %1850 = vmatpush2.msra.mxu0 %v707_v2  ;;  %v872_v1 = vld [vmem:[#allocation5 + $0x1698] sm:$0xff]  ;;  %v807_v2 = vld [vmem:[#allocation5 + $0x1490] sm:$0xff] }
 0x183   :  { %1927 = vmatpush2.msra.mxu1 %v771_v3  ;;  %1851 = vmatprep.subr.mxu0 %v706_v4  ;;  %v871_v3 = vld [vmem:[#allocation5 + $0x1690] sm:$0xff]  ;;  %v806_v4 = vld [vmem:[#allocation5 + $0x1488] sm:$0xff] }
 0x184   :  { %1928 = vmatprep.subr.mxu1 %v770_v5  ;;  %1852 = vmatpush2.msra.mxu0 %v705_v6  ;;  %v870_v5 = vld [vmem:[#allocation5 + $0x1688] sm:$0xff]  ;;  %v805_v6 = vld [vmem:[#allocation5 + $0x1480] sm:$0xff] }
 0x185   :  { %1929 = vmatpush2.msra.mxu1 %v769_v7  ;;  %1853 = vmatprep.subr.mxu0 %v704_v8  ;;  %v869_v7 = vld [vmem:[#allocation5 + $0x1680] sm:$0xff]  ;;  %v804_v8 = vld [vmem:[#allocation5 + $0x1478] sm:$0xff] }
 0x186   :  { %1930 = vmatprep.subr.mxu1 %v768_v9  ;;  %1854 = vmatpush2.msra.mxu0 %v703_v10  ;;  %v868_v9 = vld [vmem:[#allocation5 + $0x1678] sm:$0xff]  ;;  %v803_v10 = vld [vmem:[#allocation5 + $0x1470] sm:$0xff] }
 0x187   :  { %1931 = vmatpush2.msra.mxu1 %v767_v11  ;;  %1855 = vmatprep.subr.mxu0 %v702_v12  ;;  %v867_v11 = vld [vmem:[#allocation5 + $0x1670] sm:$0xff]  ;;  %v802_v12 = vld [vmem:[#allocation5 + $0x1468] sm:$0xff] }
 0x188   :  { %1932 = vmatprep.subr.mxu1 %v766_v13  ;;  %1856 = vmatpush2.msra.mxu0 %v701_v14  ;;  %v866_v13 = vld [vmem:[#allocation5 + $0x1668] sm:$0xff]  ;;  %v801_v14 = vld [vmem:[#allocation5 + $0x1460] sm:$0xff] }
 0x189   :  { %1933 = vmatpush2.msra.mxu1 %v765_v15  ;;  %1857 = vmatprep.subr.mxu0 %v700_v16  ;;  %v865_v15 = vld [vmem:[#allocation5 + $0x1660] sm:$0xff]  ;;  %v800_v16 = vld [vmem:[#allocation5 + $0x1458] sm:$0xff] }
 0x18a   :  { %1934 = vmatprep.subr.mxu1 %v764_v17  ;;  %1858 = vmatpush2.msra.mxu0 %v699_v18  ;;  %v864_v17 = vld [vmem:[#allocation5 + $0x1658] sm:$0xff]  ;;  %v799_v18 = vld [vmem:[#allocation5 + $0x1450] sm:$0xff] }
 0x18b   :  { %1935 = vmatpush2.msra.mxu1 %v763_v19  ;;  %1859 = vmatprep.subr.mxu0 %v698_v20  ;;  %v863_v19 = vld [vmem:[#allocation5 + $0x1650] sm:$0xff]  ;;  %v798_v20 = vld [vmem:[#allocation5 + $0x1448] sm:$0xff] }
 0x18c   :  { %1936 = vmatprep.subr.mxu1 %v762_v21  ;;  %1860 = vmatpush2.msra.mxu0 %v697_v22  ;;  %v862_v21 = vld [vmem:[#allocation5 + $0x1648] sm:$0xff]  ;;  %v797_v22 = vld [vmem:[#allocation5 + $0x1440] sm:$0xff] }
 0x18d   :  { %1937 = vmatpush2.msra.mxu1 %v761_v23  ;;  %1861 = vmatprep.subr.mxu0 %v696_v24  ;;  %v861_v23 = vld [vmem:[#allocation5 + $0x1640] sm:$0xff]  ;;  %v796_v24 = vld [vmem:[#allocation5 + $0x1438] sm:$0xff] }
 0x18e   :  { %1938 = vmatprep.subr.mxu1 %v760_v25  ;;  %1862 = vmatpush2.msra.mxu0 %v695_v26  ;;  %v860_v25 = vld [vmem:[#allocation5 + $0x1638] sm:$0xff]  ;;  %v795_v26 = vld [vmem:[#allocation5 + $0x1430] sm:$0xff] }
 0x18f   :  { %1939 = vmatpush2.msra.mxu1 %v759_v27  ;;  %1863 = vmatprep.subr.mxu0 %v694_v28  ;;  %v859_v27 = vld [vmem:[#allocation5 + $0x1630] sm:$0xff]  ;;  %v794_v28 = vld [vmem:[#allocation5 + $0x1428] sm:$0xff] }
 0x190   :  { %1940 = vmatprep.subr.mxu1 %v758_v29  ;;  %1864 = vmatpush2.msra.mxu0 %v693_v30  ;;  %v858_v29 = vld [vmem:[#allocation5 + $0x1628] sm:$0xff]  ;;  %v793_v30 = vld [vmem:[#allocation5 + $0x1420] sm:$0xff] }
 0x191   :  { %1865 = vmatprep.mubr.f32.mxu0 %v102_v31  ;;  %1941 = vmatpush2.msra.mxu1 %v757_v32  ;;  %v857_v31 = vld [vmem:[#allocation5 + $0x1620] sm:$0xff]  ;;  %v792_v32 = vld [vmem:[#allocation5 + $0x1418] sm:$0xff] }
 0x192   :  { %1866 = vmatmul.mubr.f32.vlgmr.msra.gmra.mxu0 %v101_v33  ;;  %1942 = vmatprep.mubr.f32.mxu1 %v104_v34  ;;  %v856_v33 = vld [vmem:[#allocation5 + $0x1618] sm:$0xff]  ;;  %v791_v34 = vld [vmem:[#allocation5 + $0x1410] sm:$0xff] }
 0x193   :  { %1955 = vmatprep.subr.mxu0 %v820_v35  ;;  %2032 = vmatprep.subr.mxu1 %v884_v36  ;;  %v855_v35 = vld [vmem:[#allocation5 + $0x1610] sm:$0xff]  ;;  %v790_v36 = vld [vmem:[#allocation5 + $0x1408] sm:$0xff] }
 0x194   :  { %1943 = vmatmul.mubr.f32.vlgmr.msra.gmra.mxu1 %v103_v37  ;;  %1956 = vmatpush1.msra.mxu0 %v819_v38  ;;  %v854_v37 = vld [vmem:[#allocation5 + $0x1608] sm:$0xff]  ;;  %v789_v38 = vld [vmem:[#allocation5 + $0x1400] sm:$0xff] }
 0x195   :  { %2033 = vmatpush1.msra.mxu1 %v883_v39  ;;  %1957 = vmatprep.subr.mxu0 %v818_v40  ;;  %v853_v39 = vld [vmem:[#allocation5 + $0x1600] sm:$0xff]  ;;  %v852_v40 = vld [vmem:[#allocation5 + $0x15f8] sm:$0xff] }
 0x196   :  { %2034 = vmatprep.subr.mxu1 %v882_v41  ;;  %1871 = vmatprep.mubr.f32.mxu0 %v134_v42  ;;  %v916_v41 = vld [vmem:[#allocation5 + $0x17f8] sm:$0xff]  ;;  %v851_v42 = vld [vmem:[#allocation5 + $0x15f0] sm:$0xff] }
 0x197   :  { %1958 = vmatpush1.msra.mxu0 %v817_v43  ;;  %2035 = vmatpush1.msra.mxu1 %v881_v44  ;;  %v915_v43 = vld [vmem:[#allocation5 + $0x17f0] sm:$0xff]  ;;  %v850_v44 = vld [vmem:[#allocation5 + $0x15e8] sm:$0xff] }
 0x198   :  { %1872 = vmatmul.mubr.f32.gmra.mxu0 %v133_v45  ;;  %1959 = vmatprep.subr.mxu0 %v816_v46  ;;  %v914_v45 = vld [vmem:[#allocation5 + $0x17e8] sm:$0xff]  ;;  %v849_v46 = vld [vmem:[#allocation5 + $0x15e0] sm:$0xff] }
 0x199   :  { %2036 = vmatprep.subr.mxu1 %v880_v47  ;;  %1948 = vmatprep.mubr.f32.mxu1 %v136_v48  ;;  %v913_v47 = vld [vmem:[#allocation5 + $0x17e0] sm:$0xff]  ;;  %v848_v48 = vld [vmem:[#allocation5 + $0x15d8] sm:$0xff] }
 0x19a   :  { %1960 = vmatpush1.msra.mxu0 %v815_v49  ;;  %2037 = vmatpush1.msra.mxu1 %v879_v50  ;;  %v912_v49 = vld [vmem:[#allocation5 + $0x17d8] sm:$0xff]  ;;  %v847_v50 = vld [vmem:[#allocation5 + $0x15d0] sm:$0xff] }
 0x19b   :  { %1961 = vmatprep.subr.mxu0 %v814_v51  ;;  %1949 = vmatmul.mubr.f32.gmra.mxu1 %v135_v52  ;;  %v911_v51 = vld [vmem:[#allocation5 + $0x17d0] sm:$0xff]  ;;  %v846_v52 = vld [vmem:[#allocation5 + $0x15c8] sm:$0xff] }
 0x19c   :  { %2038 = vmatprep.subr.mxu1 %v878_v53  ;;  %1962 = vmatpush1.msra.mxu0 %v813_v54  ;;  %v910_v53 = vld [vmem:[#allocation5 + $0x17c8] sm:$0xff]  ;;  %v845_v54 = vld [vmem:[#allocation5 + $0x15c0] sm:$0xff] }
 0x19d   :  { %2039 = vmatpush1.msra.mxu1 %v877_v55  ;;  %1963 = vmatprep.subr.mxu0 %v812_v56  ;;  %v909_v55 = vld [vmem:[#allocation5 + $0x17c0] sm:$0xff]  ;;  %v844_v56 = vld [vmem:[#allocation5 + $0x15b8] sm:$0xff] }
 0x19e   :  { %2040 = vmatprep.subr.mxu1 %v876_v57  ;;  %1964 = vmatpush1.msra.mxu0 %v811_v58  ;;  %v908_v57 = vld [vmem:[#allocation5 + $0x17b8] sm:$0xff]  ;;  %v843_v58 = vld [vmem:[#allocation5 + $0x15b0] sm:$0xff] }
 0x19f   :  { %2041 = vmatpush1.msra.mxu1 %v875_v59  ;;  %1965 = vmatprep.subr.mxu0 %v810_v60  ;;  %v907_v59 = vld [vmem:[#allocation5 + $0x17b0] sm:$0xff]  ;;  %v842_v60 = vld [vmem:[#allocation5 + $0x15a8] sm:$0xff] }
 0x1a0   :  { %2042 = vmatprep.subr.mxu1 %v874_v61  ;;  %1966 = vmatpush1.msra.mxu0 %v809_v62  ;;  %v906_v61 = vld [vmem:[#allocation5 + $0x17a8] sm:$0xff]  ;;  %v841_v62 = vld [vmem:[#allocation5 + $0x15a0] sm:$0xff] }
 0x1a1   :  { %2043 = vmatpush1.msra.mxu1 %v873_v63  ;;  %1967 = vmatprep.subr.mxu0 %v808_v0  ;;  %v905_v63 = vld [vmem:[#allocation5 + $0x17a0] sm:$0xff]  ;;  %v840_v0 = vld [vmem:[#allocation5 + $0x1598] sm:$0xff] }
 0x1a2   :  { %2044 = vmatprep.subr.mxu1 %v872_v1  ;;  %1968 = vmatpush1.msra.mxu0 %v807_v2  ;;  %v904_v1 = vld [vmem:[#allocation5 + $0x1798] sm:$0xff]  ;;  %v839_v2 = vld [vmem:[#allocation5 + $0x1590] sm:$0xff] }
 0x1a3   :  { %2045 = vmatpush1.msra.mxu1 %v871_v3  ;;  %1969 = vmatprep.subr.mxu0 %v806_v4  ;;  %v903_v3 = vld [vmem:[#allocation5 + $0x1790] sm:$0xff]  ;;  %v838_v4 = vld [vmem:[#allocation5 + $0x1588] sm:$0xff] }
 0x1a4   :  { %2046 = vmatprep.subr.mxu1 %v870_v5  ;;  %1970 = vmatpush1.msra.mxu0 %v805_v6  ;;  %v902_v5 = vld [vmem:[#allocation5 + $0x1788] sm:$0xff]  ;;  %v837_v6 = vld [vmem:[#allocation5 + $0x1580] sm:$0xff] }
 0x1a5   :  { %2047 = vmatpush1.msra.mxu1 %v869_v7  ;;  %1971 = vmatprep.subr.mxu0 %v804_v8  ;;  %v901_v7 = vld [vmem:[#allocation5 + $0x1780] sm:$0xff]  ;;  %v836_v8 = vld [vmem:[#allocation5 + $0x1578] sm:$0xff] }
 0x1a6   :  { %2048 = vmatprep.subr.mxu1 %v868_v9  ;;  %1972 = vmatpush1.msra.mxu0 %v803_v10  ;;  %v900_v9 = vld [vmem:[#allocation5 + $0x1778] sm:$0xff]  ;;  %v835_v10 = vld [vmem:[#allocation5 + $0x1570] sm:$0xff] }
 0x1a7   :  { %2049 = vmatpush1.msra.mxu1 %v867_v11  ;;  %1973 = vmatprep.subr.mxu0 %v802_v12  ;;  %v899_v11 = vld [vmem:[#allocation5 + $0x1770] sm:$0xff]  ;;  %v834_v12 = vld [vmem:[#allocation5 + $0x1568] sm:$0xff] }
 0x1a8   :  { %2050 = vmatprep.subr.mxu1 %v866_v13  ;;  %1974 = vmatpush1.msra.mxu0 %v801_v14  ;;  %v898_v13 = vld [vmem:[#allocation5 + $0x1768] sm:$0xff]  ;;  %v833_v14 = vld [vmem:[#allocation5 + $0x1560] sm:$0xff] }
 0x1a9   :  { %2051 = vmatpush1.msra.mxu1 %v865_v15  ;;  %1975 = vmatprep.subr.mxu0 %v800_v16  ;;  %v897_v15 = vld [vmem:[#allocation5 + $0x1760] sm:$0xff]  ;;  %v832_v16 = vld [vmem:[#allocation5 + $0x1558] sm:$0xff] }
 0x1aa   :  { %2052 = vmatprep.subr.mxu1 %v864_v17  ;;  %1976 = vmatpush1.msra.mxu0 %v799_v18  ;;  %v896_v17 = vld [vmem:[#allocation5 + $0x1758] sm:$0xff]  ;;  %v831_v18 = vld [vmem:[#allocation5 + $0x1550] sm:$0xff] }
 0x1ab   :  { %2053 = vmatpush1.msra.mxu1 %v863_v19  ;;  %1977 = vmatprep.subr.mxu0 %v798_v20  ;;  %v895_v19 = vld [vmem:[#allocation5 + $0x1750] sm:$0xff]  ;;  %v830_v20 = vld [vmem:[#allocation5 + $0x1548] sm:$0xff] }
 0x1ac   :  { %2054 = vmatprep.subr.mxu1 %v862_v21  ;;  %1978 = vmatpush1.msra.mxu0 %v797_v22  ;;  %v894_v21 = vld [vmem:[#allocation5 + $0x1748] sm:$0xff]  ;;  %v829_v22 = vld [vmem:[#allocation5 + $0x1540] sm:$0xff] }
 0x1ad   :  { %2055 = vmatpush1.msra.mxu1 %v861_v23  ;;  %1979 = vmatprep.subr.mxu0 %v796_v24  ;;  %v893_v23 = vld [vmem:[#allocation5 + $0x1740] sm:$0xff]  ;;  %v828_v24 = vld [vmem:[#allocation5 + $0x1538] sm:$0xff] }
 0x1ae   :  { %2056 = vmatprep.subr.mxu1 %v860_v25  ;;  %1980 = vmatpush1.msra.mxu0 %v795_v26  ;;  %v892_v25 = vld [vmem:[#allocation5 + $0x1738] sm:$0xff]  ;;  %v827_v26 = vld [vmem:[#allocation5 + $0x1530] sm:$0xff] }
 0x1af   :  { %2057 = vmatpush1.msra.mxu1 %v859_v27  ;;  %1981 = vmatprep.subr.mxu0 %v794_v28  ;;  %v891_v27 = vld [vmem:[#allocation5 + $0x1730] sm:$0xff]  ;;  %v826_v28 = vld [vmem:[#allocation5 + $0x1528] sm:$0xff] }
 0x1b0   :  { %2058 = vmatprep.subr.mxu1 %v858_v29  ;;  %1982 = vmatpush1.msra.mxu0 %v793_v30  ;;  %v890_v29 = vld [vmem:[#allocation5 + $0x1728] sm:$0xff]  ;;  %v825_v30 = vld [vmem:[#allocation5 + $0x1520] sm:$0xff] }
 0x1b1   :  { %2059 = vmatpush1.msra.mxu1 %v857_v31  ;;  %1983 = vmatprep.subr.mxu0 %v792_v32  ;;  %v889_v31 = vld [vmem:[#allocation5 + $0x1720] sm:$0xff]  ;;  %v824_v32 = vld [vmem:[#allocation5 + $0x1518] sm:$0xff] }
 0x1b2   :  { %2060 = vmatprep.subr.mxu1 %v856_v33  ;;  %1984 = vmatpush1.msra.mxu0 %v791_v34  ;;  %v888_v33 = vld [vmem:[#allocation5 + $0x1718] sm:$0xff]  ;;  %v823_v34 = vld [vmem:[#allocation5 + $0x1510] sm:$0xff] }
 0x1b3   :  { %2061 = vmatpush1.msra.mxu1 %v855_v35  ;;  %1985 = vmatprep.subr.mxu0 %v790_v36  ;;  %v887_v35 = vld [vmem:[#allocation5 + $0x1710] sm:$0xff]  ;;  %v822_v36 = vld [vmem:[#allocation5 + $0x1508] sm:$0xff] }
 0x1b4   :  { %2062 = vmatprep.subr.mxu1 %v854_v37  ;;  %1986 = vmatpush1.msra.mxu0 %v789_v38  ;;  %v886_v37 = vld [vmem:[#allocation5 + $0x1708] sm:$0xff]  ;;  %v821_v38 = vld [vmem:[#allocation5 + $0x1500] sm:$0xff] }
 0x1b5   :  { %2063 = vmatpush1.msra.mxu1 %v853_v39  ;;  %1987 = vmatprep.subr.mxu0 %v852_v40  ;;  %v106_v39 = vld [vmem:[#allocation2 + $0xa8] sm:$0xff]  ;;  %v885_v40 = vld [vmem:[#allocation5 + $0x1700] sm:$0xff] }
 0x1b6   :  { %2064 = vmatprep.subr.mxu1 %v916_v41  ;;  %1988 = vmatpush2.msra.mxu0 %v851_v42  ;;  %v105_v41 = vld [vmem:[#allocation2 + $0xa0] sm:$0xff]  ;;  %v108_v42 = vld [vmem:[#allocation2 + $0xb8] sm:$0xff] }
 0x1b7   :  { %2065 = vmatpush2.msra.mxu1 %v915_v43  ;;  %1989 = vmatprep.subr.mxu0 %v850_v44  ;;  %v948_v43 = vld [vmem:[#allocation5 + $0x18f8] sm:$0xff] }
 0x1b8   :  { %2066 = vmatprep.subr.mxu1 %v914_v45  ;;  %1990 = vmatpush2.msra.mxu0 %v849_v46  ;;  %v1012_v44 = vld [vmem:[#allocation5 + $0x1af8] sm:$0xff]  ;;  %v107_v45 = vld [vmem:[#allocation2 + $0xb0] sm:$0xff] }
 0x1b9   :  { %2067 = vmatpush2.msra.mxu1 %v913_v47  ;;  %1991 = vmatprep.subr.mxu0 %v848_v48  ;;  %v947_v46 = vld [vmem:[#allocation5 + $0x18f0] sm:$0xff]  ;;  %v946_v48 = vld [vmem:[#allocation5 + $0x18e8] sm:$0xff] }
 0x1ba   :  { %2068 = vmatprep.subr.mxu1 %v912_v49  ;;  %1992 = vmatpush2.msra.mxu0 %v847_v50  ;;  %v1011_v47 = vld [vmem:[#allocation5 + $0x1af0] sm:$0xff]  ;;  %v1010_v49 = vld [vmem:[#allocation5 + $0x1ae8] sm:$0xff] }
 0x1bb   :  { %2069 = vmatpush2.msra.mxu1 %v911_v51  ;;  %1993 = vmatprep.subr.mxu0 %v846_v52  ;;  %v138_v50 = vld [vmem:[#allocation2 + $0x1a8] sm:$0xff]  ;;  %v945_v51 = vld [vmem:[#allocation5 + $0x18e0] sm:$0xff] }
 0x1bc   :  { %2070 = vmatprep.subr.mxu1 %v910_v53  ;;  %1994 = vmatpush2.msra.mxu0 %v845_v54  ;;  %v1009_v52 = vld [vmem:[#allocation5 + $0x1ae0] sm:$0xff]  ;;  %v944_v54 = vld [vmem:[#allocation5 + $0x18d8] sm:$0xff] }
 0x1bd   :  { %2071 = vmatpush2.msra.mxu1 %v909_v55  ;;  %1995 = vmatprep.subr.mxu0 %v844_v56  ;;  %v137_v53 = vld [vmem:[#allocation2 + $0x1a0] sm:$0xff]  ;;  %v1008_v55 = vld [vmem:[#allocation5 + $0x1ad8] sm:$0xff] }
 0x1be   :  { %2072 = vmatprep.subr.mxu1 %v908_v57  ;;  %1996 = vmatpush2.msra.mxu0 %v843_v58  ;;  %v140_v56 = vld [vmem:[#allocation2 + $0x1b8] sm:$0xff]  ;;  %v943_v57 = vld [vmem:[#allocation5 + $0x18d0] sm:$0xff] }
 0x1bf   :  { %2073 = vmatpush2.msra.mxu1 %v907_v59  ;;  %1997 = vmatprep.subr.mxu0 %v842_v60  ;;  %v1007_v58 = vld [vmem:[#allocation5 + $0x1ad0] sm:$0xff]  ;;  %v942_v59 = vld [vmem:[#allocation5 + $0x18c8] sm:$0xff] }
 0x1c0   :  { %2074 = vmatprep.subr.mxu1 %v906_v61  ;;  %1998 = vmatpush2.msra.mxu0 %v841_v62  ;;  %v139_v60 = vld [vmem:[#allocation2 + $0x1b0] sm:$0xff]  ;;  %v1006_v61 = vld [vmem:[#allocation5 + $0x1ac8] sm:$0xff]  ;;  %v941_v62 = vld [vmem:[#allocation5 + $0x18c0] sm:$0xff] }
 0x1c1   :  { %2075 = vmatpush2.msra.mxu1 %v905_v63  ;;  %1999 = vmatprep.subr.mxu0 %v840_v0  ;;  %v1005_v63 = vld [vmem:[#allocation5 + $0x1ac0] sm:$0xff]  ;;  %v940_v0 = vld [vmem:[#allocation5 + $0x18b8] sm:$0xff] }
 0x1c2   :  { %2076 = vmatprep.subr.mxu1 %v904_v1  ;;  %2000 = vmatpush2.msra.mxu0 %v839_v2  ;;  %v1004_v1 = vld [vmem:[#allocation5 + $0x1ab8] sm:$0xff]  ;;  %v939_v2 = vld [vmem:[#allocation5 + $0x18b0] sm:$0xff] }
 0x1c3   :  { %2077 = vmatpush2.msra.mxu1 %v903_v3  ;;  %2001 = vmatprep.subr.mxu0 %v838_v4  ;;  %v1003_v3 = vld [vmem:[#allocation5 + $0x1ab0] sm:$0xff]  ;;  %v938_v4 = vld [vmem:[#allocation5 + $0x18a8] sm:$0xff] }
 0x1c4   :  { %2078 = vmatprep.subr.mxu1 %v902_v5  ;;  %2002 = vmatpush2.msra.mxu0 %v837_v6  ;;  %v1002_v5 = vld [vmem:[#allocation5 + $0x1aa8] sm:$0xff]  ;;  %v937_v6 = vld [vmem:[#allocation5 + $0x18a0] sm:$0xff] }
 0x1c5   :  { %2079 = vmatpush2.msra.mxu1 %v901_v7  ;;  %2003 = vmatprep.subr.mxu0 %v836_v8  ;;  %v1001_v7 = vld [vmem:[#allocation5 + $0x1aa0] sm:$0xff]  ;;  %v936_v8 = vld [vmem:[#allocation5 + $0x1898] sm:$0xff] }
 0x1c6   :  { %2080 = vmatprep.subr.mxu1 %v900_v9  ;;  %2004 = vmatpush2.msra.mxu0 %v835_v10  ;;  %v1000_v9 = vld [vmem:[#allocation5 + $0x1a98] sm:$0xff]  ;;  %v935_v10 = vld [vmem:[#allocation5 + $0x1890] sm:$0xff] }
 0x1c7   :  { %2081 = vmatpush2.msra.mxu1 %v899_v11  ;;  %2005 = vmatprep.subr.mxu0 %v834_v12  ;;  %v999_v11 = vld [vmem:[#allocation5 + $0x1a90] sm:$0xff]  ;;  %v934_v12 = vld [vmem:[#allocation5 + $0x1888] sm:$0xff] }
 0x1c8   :  { %2082 = vmatprep.subr.mxu1 %v898_v13  ;;  %2006 = vmatpush2.msra.mxu0 %v833_v14  ;;  %v998_v13 = vld [vmem:[#allocation5 + $0x1a88] sm:$0xff]  ;;  %v933_v14 = vld [vmem:[#allocation5 + $0x1880] sm:$0xff] }
 0x1c9   :  { %2083 = vmatpush2.msra.mxu1 %v897_v15  ;;  %2007 = vmatprep.subr.mxu0 %v832_v16  ;;  %v997_v15 = vld [vmem:[#allocation5 + $0x1a80] sm:$0xff]  ;;  %v932_v16 = vld [vmem:[#allocation5 + $0x1878] sm:$0xff] }
 0x1ca   :  { %2084 = vmatprep.subr.mxu1 %v896_v17  ;;  %2008 = vmatpush2.msra.mxu0 %v831_v18  ;;  %v996_v17 = vld [vmem:[#allocation5 + $0x1a78] sm:$0xff]  ;;  %v931_v18 = vld [vmem:[#allocation5 + $0x1870] sm:$0xff] }
 0x1cb   :  { %2085 = vmatpush2.msra.mxu1 %v895_v19  ;;  %2009 = vmatprep.subr.mxu0 %v830_v20  ;;  %v995_v19 = vld [vmem:[#allocation5 + $0x1a70] sm:$0xff]  ;;  %v930_v20 = vld [vmem:[#allocation5 + $0x1868] sm:$0xff] }
 0x1cc   :  { %2086 = vmatprep.subr.mxu1 %v894_v21  ;;  %2010 = vmatpush2.msra.mxu0 %v829_v22  ;;  %v994_v21 = vld [vmem:[#allocation5 + $0x1a68] sm:$0xff]  ;;  %v929_v22 = vld [vmem:[#allocation5 + $0x1860] sm:$0xff] }
 0x1cd   :  { %2087 = vmatpush2.msra.mxu1 %v893_v23  ;;  %2011 = vmatprep.subr.mxu0 %v828_v24  ;;  %v993_v23 = vld [vmem:[#allocation5 + $0x1a60] sm:$0xff]  ;;  %v928_v24 = vld [vmem:[#allocation5 + $0x1858] sm:$0xff] }
 0x1ce   :  { %2088 = vmatprep.subr.mxu1 %v892_v25  ;;  %2012 = vmatpush2.msra.mxu0 %v827_v26  ;;  %v992_v25 = vld [vmem:[#allocation5 + $0x1a58] sm:$0xff]  ;;  %v927_v26 = vld [vmem:[#allocation5 + $0x1850] sm:$0xff] }
 0x1cf   :  { %2089 = vmatpush2.msra.mxu1 %v891_v27  ;;  %2013 = vmatprep.subr.mxu0 %v826_v28  ;;  %v991_v27 = vld [vmem:[#allocation5 + $0x1a50] sm:$0xff]  ;;  %v926_v28 = vld [vmem:[#allocation5 + $0x1848] sm:$0xff] }
 0x1d0   :  { %2090 = vmatprep.subr.mxu1 %v890_v29  ;;  %2014 = vmatpush2.msra.mxu0 %v825_v30  ;;  %v990_v29 = vld [vmem:[#allocation5 + $0x1a48] sm:$0xff]  ;;  %v925_v30 = vld [vmem:[#allocation5 + $0x1840] sm:$0xff] }
 0x1d1   :  { %2091 = vmatpush2.msra.mxu1 %v889_v31  ;;  %2015 = vmatprep.subr.mxu0 %v824_v32  ;;  %v989_v31 = vld [vmem:[#allocation5 + $0x1a40] sm:$0xff]  ;;  %v924_v32 = vld [vmem:[#allocation5 + $0x1838] sm:$0xff] }
 0x1d2   :  { %2092 = vmatprep.subr.mxu1 %v888_v33  ;;  %2016 = vmatpush2.msra.mxu0 %v823_v34  ;;  %v988_v33 = vld [vmem:[#allocation5 + $0x1a38] sm:$0xff]  ;;  %v923_v34 = vld [vmem:[#allocation5 + $0x1830] sm:$0xff] }
 0x1d3   :  { %2093 = vmatpush2.msra.mxu1 %v887_v35  ;;  %2017 = vmatprep.subr.mxu0 %v822_v36  ;;  %v987_v35 = vld [vmem:[#allocation5 + $0x1a30] sm:$0xff]  ;;  %v922_v36 = vld [vmem:[#allocation5 + $0x1828] sm:$0xff] }
 0x1d4   :  { %2094 = vmatprep.subr.mxu1 %v886_v37  ;;  %2018 = vmatpush2.msra.mxu0 %v821_v38  ;;  %v986_v37 = vld [vmem:[#allocation5 + $0x1a28] sm:$0xff]  ;;  %v921_v38 = vld [vmem:[#allocation5 + $0x1820] sm:$0xff] }
 0x1d5   :  { %2019 = vmatprep.mubr.f32.mxu0 %v106_v39  ;;  %2095 = vmatpush2.msra.mxu1 %v885_v40  ;;  %v985_v39 = vld [vmem:[#allocation5 + $0x1a20] sm:$0xff]  ;;  %v920_v40 = vld [vmem:[#allocation5 + $0x1818] sm:$0xff] }
 0x1d6   :  { %2020 = vmatmul.mubr.f32.vlgmr.msra.gmra.mxu0 %v105_v41  ;;  %2096 = vmatprep.mubr.f32.mxu1 %v108_v42  ;;  %v984_v41 = vld [vmem:[#allocation5 + $0x1a18] sm:$0xff]  ;;  %v919_v42 = vld [vmem:[#allocation5 + $0x1810] sm:$0xff] }
 0x1d7   :  { %2109 = vmatprep.subr.mxu0 %v948_v43  ;;  %2186 = vmatprep.subr.mxu1 %v1012_v44  ;;  %v983_v43 = vld [vmem:[#allocation5 + $0x1a10] sm:$0xff]  ;;  %v918_v44 = vld [vmem:[#allocation5 + $0x1808] sm:$0xff] }
 0x1d8   :  { %2097 = vmatmul.mubr.f32.vlgmr.msra.gmra.mxu1 %v107_v45  ;;  %2110 = vmatpush1.msra.mxu0 %v947_v46  ;;  %v982_v45 = vld [vmem:[#allocation5 + $0x1a08] sm:$0xff]  ;;  %v917_v46 = vld [vmem:[#allocation5 + $0x1800] sm:$0xff] }
 0x1d9   :  { %2187 = vmatpush1.msra.mxu1 %v1011_v47  ;;  %2111 = vmatprep.subr.mxu0 %v946_v48  ;;  %v981_v47 = vld [vmem:[#allocation5 + $0x1a00] sm:$0xff]  ;;  %v980_v48 = vld [vmem:[#allocation5 + $0x19f8] sm:$0xff] }
 0x1da   :  { %2188 = vmatprep.subr.mxu1 %v1010_v49  ;;  %2025 = vmatprep.mubr.f32.mxu0 %v138_v50  ;;  %v1044_v49 = vld [vmem:[#allocation5 + $0x1bf8] sm:$0xff]  ;;  %v979_v50 = vld [vmem:[#allocation5 + $0x19f0] sm:$0xff] }
 0x1db   :  { %2112 = vmatpush1.msra.mxu0 %v945_v51  ;;  %2189 = vmatpush1.msra.mxu1 %v1009_v52  ;;  %v1043_v51 = vld [vmem:[#allocation5 + $0x1bf0] sm:$0xff]  ;;  %v978_v52 = vld [vmem:[#allocation5 + $0x19e8] sm:$0xff] }
 0x1dc   :  { %2026 = vmatmul.mubr.f32.gmra.mxu0 %v137_v53  ;;  %2113 = vmatprep.subr.mxu0 %v944_v54  ;;  %v1042_v53 = vld [vmem:[#allocation5 + $0x1be8] sm:$0xff]  ;;  %v977_v54 = vld [vmem:[#allocation5 + $0x19e0] sm:$0xff] }
 0x1dd   :  { %2190 = vmatprep.subr.mxu1 %v1008_v55  ;;  %2102 = vmatprep.mubr.f32.mxu1 %v140_v56  ;;  %v1041_v55 = vld [vmem:[#allocation5 + $0x1be0] sm:$0xff]  ;;  %v976_v56 = vld [vmem:[#allocation5 + $0x19d8] sm:$0xff] }
 0x1de   :  { %2114 = vmatpush1.msra.mxu0 %v943_v57  ;;  %2191 = vmatpush1.msra.mxu1 %v1007_v58  ;;  %v1040_v57 = vld [vmem:[#allocation5 + $0x1bd8] sm:$0xff]  ;;  %v975_v58 = vld [vmem:[#allocation5 + $0x19d0] sm:$0xff] }
 0x1df   :  { %2115 = vmatprep.subr.mxu0 %v942_v59  ;;  %2103 = vmatmul.mubr.f32.gmra.mxu1 %v139_v60  ;;  %v1039_v59 = vld [vmem:[#allocation5 + $0x1bd0] sm:$0xff]  ;;  %v974_v60 = vld [vmem:[#allocation5 + $0x19c8] sm:$0xff] }
 0x1e0   :  { %2192 = vmatprep.subr.mxu1 %v1006_v61  ;;  %2116 = vmatpush1.msra.mxu0 %v941_v62  ;;  %v1038_v61 = vld [vmem:[#allocation5 + $0x1bc8] sm:$0xff]  ;;  %v973_v62 = vld [vmem:[#allocation5 + $0x19c0] sm:$0xff] }
 0x1e1   :  { %2193 = vmatpush1.msra.mxu1 %v1005_v63  ;;  %2117 = vmatprep.subr.mxu0 %v940_v0  ;;  %v1037_v63 = vld [vmem:[#allocation5 + $0x1bc0] sm:$0xff]  ;;  %v972_v0 = vld [vmem:[#allocation5 + $0x19b8] sm:$0xff] }
 0x1e2   :  { %2194 = vmatprep.subr.mxu1 %v1004_v1  ;;  %2118 = vmatpush1.msra.mxu0 %v939_v2  ;;  %v1036_v1 = vld [vmem:[#allocation5 + $0x1bb8] sm:$0xff]  ;;  %v971_v2 = vld [vmem:[#allocation5 + $0x19b0] sm:$0xff] }
 0x1e3   :  { %2195 = vmatpush1.msra.mxu1 %v1003_v3  ;;  %2119 = vmatprep.subr.mxu0 %v938_v4  ;;  %v1035_v3 = vld [vmem:[#allocation5 + $0x1bb0] sm:$0xff]  ;;  %v970_v4 = vld [vmem:[#allocation5 + $0x19a8] sm:$0xff] }
 0x1e4   :  { %2196 = vmatprep.subr.mxu1 %v1002_v5  ;;  %2120 = vmatpush1.msra.mxu0 %v937_v6  ;;  %v1034_v5 = vld [vmem:[#allocation5 + $0x1ba8] sm:$0xff]  ;;  %v969_v6 = vld [vmem:[#allocation5 + $0x19a0] sm:$0xff] }
 0x1e5   :  { %2197 = vmatpush1.msra.mxu1 %v1001_v7  ;;  %2121 = vmatprep.subr.mxu0 %v936_v8  ;;  %v1033_v7 = vld [vmem:[#allocation5 + $0x1ba0] sm:$0xff]  ;;  %v968_v8 = vld [vmem:[#allocation5 + $0x1998] sm:$0xff] }
 0x1e6   :  { %2198 = vmatprep.subr.mxu1 %v1000_v9  ;;  %2122 = vmatpush1.msra.mxu0 %v935_v10  ;;  %v1032_v9 = vld [vmem:[#allocation5 + $0x1b98] sm:$0xff]  ;;  %v967_v10 = vld [vmem:[#allocation5 + $0x1990] sm:$0xff] }
 0x1e7   :  { %2199 = vmatpush1.msra.mxu1 %v999_v11  ;;  %2123 = vmatprep.subr.mxu0 %v934_v12  ;;  %v1031_v11 = vld [vmem:[#allocation5 + $0x1b90] sm:$0xff]  ;;  %v966_v12 = vld [vmem:[#allocation5 + $0x1988] sm:$0xff] }
 0x1e8   :  { %2200 = vmatprep.subr.mxu1 %v998_v13  ;;  %2124 = vmatpush1.msra.mxu0 %v933_v14  ;;  %v1030_v13 = vld [vmem:[#allocation5 + $0x1b88] sm:$0xff]  ;;  %v965_v14 = vld [vmem:[#allocation5 + $0x1980] sm:$0xff] }
 0x1e9   :  { %2201 = vmatpush1.msra.mxu1 %v997_v15  ;;  %2125 = vmatprep.subr.mxu0 %v932_v16  ;;  %v1029_v15 = vld [vmem:[#allocation5 + $0x1b80] sm:$0xff]  ;;  %v964_v16 = vld [vmem:[#allocation5 + $0x1978] sm:$0xff] }
 0x1ea   :  { %2202 = vmatprep.subr.mxu1 %v996_v17  ;;  %2126 = vmatpush1.msra.mxu0 %v931_v18  ;;  %v1028_v17 = vld [vmem:[#allocation5 + $0x1b78] sm:$0xff]  ;;  %v963_v18 = vld [vmem:[#allocation5 + $0x1970] sm:$0xff] }
 0x1eb   :  { %2203 = vmatpush1.msra.mxu1 %v995_v19  ;;  %2127 = vmatprep.subr.mxu0 %v930_v20  ;;  %v1027_v19 = vld [vmem:[#allocation5 + $0x1b70] sm:$0xff]  ;;  %v962_v20 = vld [vmem:[#allocation5 + $0x1968] sm:$0xff] }
 0x1ec   :  { %2204 = vmatprep.subr.mxu1 %v994_v21  ;;  %2128 = vmatpush1.msra.mxu0 %v929_v22  ;;  %v1026_v21 = vld [vmem:[#allocation5 + $0x1b68] sm:$0xff]  ;;  %v961_v22 = vld [vmem:[#allocation5 + $0x1960] sm:$0xff] }
 0x1ed   :  { %2205 = vmatpush1.msra.mxu1 %v993_v23  ;;  %2129 = vmatprep.subr.mxu0 %v928_v24  ;;  %v1025_v23 = vld [vmem:[#allocation5 + $0x1b60] sm:$0xff]  ;;  %v960_v24 = vld [vmem:[#allocation5 + $0x1958] sm:$0xff] }
 0x1ee   :  { %2206 = vmatprep.subr.mxu1 %v992_v25  ;;  %2130 = vmatpush1.msra.mxu0 %v927_v26  ;;  %v1024_v25 = vld [vmem:[#allocation5 + $0x1b58] sm:$0xff]  ;;  %v959_v26 = vld [vmem:[#allocation5 + $0x1950] sm:$0xff] }
 0x1ef   :  { %2207 = vmatpush1.msra.mxu1 %v991_v27  ;;  %2131 = vmatprep.subr.mxu0 %v926_v28  ;;  %v1023_v27 = vld [vmem:[#allocation5 + $0x1b50] sm:$0xff]  ;;  %v958_v28 = vld [vmem:[#allocation5 + $0x1948] sm:$0xff] }
 0x1f0   :  { %2208 = vmatprep.subr.mxu1 %v990_v29  ;;  %2132 = vmatpush1.msra.mxu0 %v925_v30  ;;  %v1022_v29 = vld [vmem:[#allocation5 + $0x1b48] sm:$0xff]  ;;  %v957_v30 = vld [vmem:[#allocation5 + $0x1940] sm:$0xff] }
 0x1f1   :  { %2209 = vmatpush1.msra.mxu1 %v989_v31  ;;  %2133 = vmatprep.subr.mxu0 %v924_v32  ;;  %v1021_v31 = vld [vmem:[#allocation5 + $0x1b40] sm:$0xff]  ;;  %v956_v32 = vld [vmem:[#allocation5 + $0x1938] sm:$0xff] }
 0x1f2   :  { %2210 = vmatprep.subr.mxu1 %v988_v33  ;;  %2134 = vmatpush1.msra.mxu0 %v923_v34  ;;  %v1020_v33 = vld [vmem:[#allocation5 + $0x1b38] sm:$0xff]  ;;  %v955_v34 = vld [vmem:[#allocation5 + $0x1930] sm:$0xff] }
 0x1f3   :  { %2211 = vmatpush1.msra.mxu1 %v987_v35  ;;  %2135 = vmatprep.subr.mxu0 %v922_v36  ;;  %v1019_v35 = vld [vmem:[#allocation5 + $0x1b30] sm:$0xff]  ;;  %v954_v36 = vld [vmem:[#allocation5 + $0x1928] sm:$0xff] }
 0x1f4   :  { %2212 = vmatprep.subr.mxu1 %v986_v37  ;;  %2136 = vmatpush1.msra.mxu0 %v921_v38  ;;  %v1018_v37 = vld [vmem:[#allocation5 + $0x1b28] sm:$0xff]  ;;  %v953_v38 = vld [vmem:[#allocation5 + $0x1920] sm:$0xff] }
 0x1f5   :  { %2213 = vmatpush1.msra.mxu1 %v985_v39  ;;  %2137 = vmatprep.subr.mxu0 %v920_v40  ;;  %v1017_v39 = vld [vmem:[#allocation5 + $0x1b20] sm:$0xff]  ;;  %v952_v40 = vld [vmem:[#allocation5 + $0x1918] sm:$0xff] }
 0x1f6   :  { %2214 = vmatprep.subr.mxu1 %v984_v41  ;;  %2138 = vmatpush1.msra.mxu0 %v919_v42  ;;  %v1016_v41 = vld [vmem:[#allocation5 + $0x1b18] sm:$0xff]  ;;  %v951_v42 = vld [vmem:[#allocation5 + $0x1910] sm:$0xff] }
 0x1f7   :  { %2215 = vmatpush1.msra.mxu1 %v983_v43  ;;  %2139 = vmatprep.subr.mxu0 %v918_v44  ;;  %v1015_v43 = vld [vmem:[#allocation5 + $0x1b10] sm:$0xff]  ;;  %v950_v44 = vld [vmem:[#allocation5 + $0x1908] sm:$0xff] }
 0x1f8   :  { %2216 = vmatprep.subr.mxu1 %v982_v45  ;;  %2140 = vmatpush1.msra.mxu0 %v917_v46  ;;  %v1014_v45 = vld [vmem:[#allocation5 + $0x1b08] sm:$0xff]  ;;  %v949_v46 = vld [vmem:[#allocation5 + $0x1900] sm:$0xff] }
 0x1f9   :  { %2217 = vmatpush1.msra.mxu1 %v981_v47  ;;  %2141 = vmatprep.subr.mxu0 %v980_v48  ;;  %v110_v47 = vld [vmem:[#allocation2 + $0xc8] sm:$0xff]  ;;  %v1013_v48 = vld [vmem:[#allocation5 + $0x1b00] sm:$0xff] }
 0x1fa   :  { %2218 = vmatprep.subr.mxu1 %v1044_v49  ;;  %2142 = vmatpush2.msra.mxu0 %v979_v50  ;;  %v109_v49 = vld [vmem:[#allocation2 + $0xc0] sm:$0xff]  ;;  %v112_v50 = vld [vmem:[#allocation2 + $0xd8] sm:$0xff] }
 0x1fb   :  { %2219 = vmatpush2.msra.mxu1 %v1043_v51  ;;  %2143 = vmatprep.subr.mxu0 %v978_v52  ;;  %v1076_v51 = vld [vmem:[#allocation5 + $0x1cf8] sm:$0xff] }
 0x1fc   :  { %2220 = vmatprep.subr.mxu1 %v1042_v53  ;;  %2144 = vmatpush2.msra.mxu0 %v977_v54  ;;  %v1140_v52 = vld [vmem:[#allocation5 + $0x1ef8] sm:$0xff]  ;;  %v111_v53 = vld [vmem:[#allocation2 + $0xd0] sm:$0xff] }
 0x1fd   :  { %2221 = vmatpush2.msra.mxu1 %v1041_v55  ;;  %2145 = vmatprep.subr.mxu0 %v976_v56  ;;  %v1075_v54 = vld [vmem:[#allocation5 + $0x1cf0] sm:$0xff]  ;;  %v1074_v56 = vld [vmem:[#allocation5 + $0x1ce8] sm:$0xff] }
 0x1fe   :  { %2222 = vmatprep.subr.mxu1 %v1040_v57  ;;  %2146 = vmatpush2.msra.mxu0 %v975_v58  ;;  %v1139_v55 = vld [vmem:[#allocation5 + $0x1ef0] sm:$0xff]  ;;  %v1138_v57 = vld [vmem:[#allocation5 + $0x1ee8] sm:$0xff] }
 0x1ff   :  { %2223 = vmatpush2.msra.mxu1 %v1039_v59  ;;  %2147 = vmatprep.subr.mxu0 %v974_v60  ;;  %v142_v58 = vld [vmem:[#allocation2 + $0x1c8] sm:$0xff]  ;;  %v1073_v59 = vld [vmem:[#allocation5 + $0x1ce0] sm:$0xff] }
 0x200   :  { %2224 = vmatprep.subr.mxu1 %v1038_v61  ;;  %2148 = vmatpush2.msra.mxu0 %v973_v62  ;;  %v1137_v60 = vld [vmem:[#allocation5 + $0x1ee0] sm:$0xff]  ;;  %v1072_v62 = vld [vmem:[#allocation5 + $0x1cd8] sm:$0xff] }
 0x201   :  { %2225 = vmatpush2.msra.mxu1 %v1037_v63  ;;  %2149 = vmatprep.subr.mxu0 %v972_v0  ;;  %v141_v61 = vld [vmem:[#allocation2 + $0x1c0] sm:$0xff]  ;;  %v1136_v63 = vld [vmem:[#allocation5 + $0x1ed8] sm:$0xff] }
 0x202   :  { %2226 = vmatprep.subr.mxu1 %v1036_v1  ;;  %2150 = vmatpush2.msra.mxu0 %v971_v2  ;;  %v144_v0 = vld [vmem:[#allocation2 + $0x1d8] sm:$0xff]  ;;  %v1071_v1 = vld [vmem:[#allocation5 + $0x1cd0] sm:$0xff] }
 0x203   :  { %2227 = vmatpush2.msra.mxu1 %v1035_v3  ;;  %2151 = vmatprep.subr.mxu0 %v970_v4  ;;  %v1135_v2 = vld [vmem:[#allocation5 + $0x1ed0] sm:$0xff]  ;;  %v1070_v3 = vld [vmem:[#allocation5 + $0x1cc8] sm:$0xff] }
 0x204   :  { %2228 = vmatprep.subr.mxu1 %v1034_v5  ;;  %2152 = vmatpush2.msra.mxu0 %v969_v6  ;;  %v143_v4 = vld [vmem:[#allocation2 + $0x1d0] sm:$0xff]  ;;  %v1134_v5 = vld [vmem:[#allocation5 + $0x1ec8] sm:$0xff]  ;;  %v1069_v6 = vld [vmem:[#allocation5 + $0x1cc0] sm:$0xff] }
 0x205   :  { %2229 = vmatpush2.msra.mxu1 %v1033_v7  ;;  %2153 = vmatprep.subr.mxu0 %v968_v8  ;;  %v1133_v7 = vld [vmem:[#allocation5 + $0x1ec0] sm:$0xff]  ;;  %v1068_v8 = vld [vmem:[#allocation5 + $0x1cb8] sm:$0xff] }
 0x206   :  { %2230 = vmatprep.subr.mxu1 %v1032_v9  ;;  %2154 = vmatpush2.msra.mxu0 %v967_v10  ;;  %v1132_v9 = vld [vmem:[#allocation5 + $0x1eb8] sm:$0xff]  ;;  %v1067_v10 = vld [vmem:[#allocation5 + $0x1cb0] sm:$0xff] }
 0x207   :  { %2231 = vmatpush2.msra.mxu1 %v1031_v11  ;;  %2155 = vmatprep.subr.mxu0 %v966_v12  ;;  %v1131_v11 = vld [vmem:[#allocation5 + $0x1eb0] sm:$0xff]  ;;  %v1066_v12 = vld [vmem:[#allocation5 + $0x1ca8] sm:$0xff] }
 0x208   :  { %2232 = vmatprep.subr.mxu1 %v1030_v13  ;;  %2156 = vmatpush2.msra.mxu0 %v965_v14  ;;  %v1130_v13 = vld [vmem:[#allocation5 + $0x1ea8] sm:$0xff]  ;;  %v1065_v14 = vld [vmem:[#allocation5 + $0x1ca0] sm:$0xff] }
 0x209   :  { %2233 = vmatpush2.msra.mxu1 %v1029_v15  ;;  %2157 = vmatprep.subr.mxu0 %v964_v16  ;;  %v1129_v15 = vld [vmem:[#allocation5 + $0x1ea0] sm:$0xff]  ;;  %v1064_v16 = vld [vmem:[#allocation5 + $0x1c98] sm:$0xff] }
 0x20a   :  { %2234 = vmatprep.subr.mxu1 %v1028_v17  ;;  %2158 = vmatpush2.msra.mxu0 %v963_v18  ;;  %v1128_v17 = vld [vmem:[#allocation5 + $0x1e98] sm:$0xff]  ;;  %v1063_v18 = vld [vmem:[#allocation5 + $0x1c90] sm:$0xff] }
 0x20b   :  { %2235 = vmatpush2.msra.mxu1 %v1027_v19  ;;  %2159 = vmatprep.subr.mxu0 %v962_v20  ;;  %v1127_v19 = vld [vmem:[#allocation5 + $0x1e90] sm:$0xff]  ;;  %v1062_v20 = vld [vmem:[#allocation5 + $0x1c88] sm:$0xff] }
 0x20c   :  { %2236 = vmatprep.subr.mxu1 %v1026_v21  ;;  %2160 = vmatpush2.msra.mxu0 %v961_v22  ;;  %v1126_v21 = vld [vmem:[#allocation5 + $0x1e88] sm:$0xff]  ;;  %v1061_v22 = vld [vmem:[#allocation5 + $0x1c80] sm:$0xff] }
 0x20d   :  { %2237 = vmatpush2.msra.mxu1 %v1025_v23  ;;  %2161 = vmatprep.subr.mxu0 %v960_v24  ;;  %v1125_v23 = vld [vmem:[#allocation5 + $0x1e80] sm:$0xff]  ;;  %v1060_v24 = vld [vmem:[#allocation5 + $0x1c78] sm:$0xff] }
 0x20e   :  { %2238 = vmatprep.subr.mxu1 %v1024_v25  ;;  %2162 = vmatpush2.msra.mxu0 %v959_v26  ;;  %v1124_v25 = vld [vmem:[#allocation5 + $0x1e78] sm:$0xff]  ;;  %v1059_v26 = vld [vmem:[#allocation5 + $0x1c70] sm:$0xff] }
 0x20f   :  { %2239 = vmatpush2.msra.mxu1 %v1023_v27  ;;  %2163 = vmatprep.subr.mxu0 %v958_v28  ;;  %v1123_v27 = vld [vmem:[#allocation5 + $0x1e70] sm:$0xff]  ;;  %v1058_v28 = vld [vmem:[#allocation5 + $0x1c68] sm:$0xff] }
 0x210   :  { %2240 = vmatprep.subr.mxu1 %v1022_v29  ;;  %2164 = vmatpush2.msra.mxu0 %v957_v30  ;;  %v1122_v29 = vld [vmem:[#allocation5 + $0x1e68] sm:$0xff]  ;;  %v1057_v30 = vld [vmem:[#allocation5 + $0x1c60] sm:$0xff] }
 0x211   :  { %2241 = vmatpush2.msra.mxu1 %v1021_v31  ;;  %2165 = vmatprep.subr.mxu0 %v956_v32  ;;  %v1121_v31 = vld [vmem:[#allocation5 + $0x1e60] sm:$0xff]  ;;  %v1056_v32 = vld [vmem:[#allocation5 + $0x1c58] sm:$0xff] }
 0x212   :  { %2242 = vmatprep.subr.mxu1 %v1020_v33  ;;  %2166 = vmatpush2.msra.mxu0 %v955_v34  ;;  %v1120_v33 = vld [vmem:[#allocation5 + $0x1e58] sm:$0xff]  ;;  %v1055_v34 = vld [vmem:[#allocation5 + $0x1c50] sm:$0xff] }
 0x213   :  { %2243 = vmatpush2.msra.mxu1 %v1019_v35  ;;  %2167 = vmatprep.subr.mxu0 %v954_v36  ;;  %v1119_v35 = vld [vmem:[#allocation5 + $0x1e50] sm:$0xff]  ;;  %v1054_v36 = vld [vmem:[#allocation5 + $0x1c48] sm:$0xff] }
 0x214   :  { %2244 = vmatprep.subr.mxu1 %v1018_v37  ;;  %2168 = vmatpush2.msra.mxu0 %v953_v38  ;;  %v1118_v37 = vld [vmem:[#allocation5 + $0x1e48] sm:$0xff]  ;;  %v1053_v38 = vld [vmem:[#allocation5 + $0x1c40] sm:$0xff] }
 0x215   :  { %2245 = vmatpush2.msra.mxu1 %v1017_v39  ;;  %2169 = vmatprep.subr.mxu0 %v952_v40  ;;  %v1117_v39 = vld [vmem:[#allocation5 + $0x1e40] sm:$0xff]  ;;  %v1052_v40 = vld [vmem:[#allocation5 + $0x1c38] sm:$0xff] }
 0x216   :  { %2246 = vmatprep.subr.mxu1 %v1016_v41  ;;  %2170 = vmatpush2.msra.mxu0 %v951_v42  ;;  %v1116_v41 = vld [vmem:[#allocation5 + $0x1e38] sm:$0xff]  ;;  %v1051_v42 = vld [vmem:[#allocation5 + $0x1c30] sm:$0xff] }
 0x217   :  { %2247 = vmatpush2.msra.mxu1 %v1015_v43  ;;  %2171 = vmatprep.subr.mxu0 %v950_v44  ;;  %v1115_v43 = vld [vmem:[#allocation5 + $0x1e30] sm:$0xff]  ;;  %v1050_v44 = vld [vmem:[#allocation5 + $0x1c28] sm:$0xff] }
 0x218   :  { %2248 = vmatprep.subr.mxu1 %v1014_v45  ;;  %2172 = vmatpush2.msra.mxu0 %v949_v46  ;;  %v1114_v45 = vld [vmem:[#allocation5 + $0x1e28] sm:$0xff]  ;;  %v1049_v46 = vld [vmem:[#allocation5 + $0x1c20] sm:$0xff] }
 0x219   :  { %2173 = vmatprep.mubr.f32.mxu0 %v110_v47  ;;  %2249 = vmatpush2.msra.mxu1 %v1013_v48  ;;  %v1113_v47 = vld [vmem:[#allocation5 + $0x1e20] sm:$0xff]  ;;  %v1048_v48 = vld [vmem:[#allocation5 + $0x1c18] sm:$0xff] }
 0x21a   :  { %2174 = vmatmul.mubr.f32.vlgmr.msra.gmra.mxu0 %v109_v49  ;;  %2250 = vmatprep.mubr.f32.mxu1 %v112_v50  ;;  %v1112_v49 = vld [vmem:[#allocation5 + $0x1e18] sm:$0xff]  ;;  %v1047_v50 = vld [vmem:[#allocation5 + $0x1c10] sm:$0xff] }
 0x21b   :  { %2263 = vmatprep.subr.mxu0 %v1076_v51  ;;  %2340 = vmatprep.subr.mxu1 %v1140_v52  ;;  %v1111_v51 = vld [vmem:[#allocation5 + $0x1e10] sm:$0xff]  ;;  %v1046_v52 = vld [vmem:[#allocation5 + $0x1c08] sm:$0xff] }
 0x21c   :  { %2251 = vmatmul.mubr.f32.vlgmr.msra.gmra.mxu1 %v111_v53  ;;  %2264 = vmatpush1.msra.mxu0 %v1075_v54  ;;  %v1110_v53 = vld [vmem:[#allocation5 + $0x1e08] sm:$0xff]  ;;  %v1045_v54 = vld [vmem:[#allocation5 + $0x1c00] sm:$0xff] }
 0x21d   :  { %2341 = vmatpush1.msra.mxu1 %v1139_v55  ;;  %2265 = vmatprep.subr.mxu0 %v1074_v56  ;;  %v1109_v55 = vld [vmem:[#allocation5 + $0x1e00] sm:$0xff]  ;;  %v1108_v56 = vld [vmem:[#allocation5 + $0x1df8] sm:$0xff] }
 0x21e   :  { %2342 = vmatprep.subr.mxu1 %v1138_v57  ;;  %2179 = vmatprep.mubr.f32.mxu0 %v142_v58  ;;  %v1172_v57 = vld [vmem:[#allocation5 + $0x1ff8] sm:$0xff]  ;;  %v1107_v58 = vld [vmem:[#allocation5 + $0x1df0] sm:$0xff] }
 0x21f   :  { %2266 = vmatpush1.msra.mxu0 %v1073_v59  ;;  %2343 = vmatpush1.msra.mxu1 %v1137_v60  ;;  %v1171_v59 = vld [vmem:[#allocation5 + $0x1ff0] sm:$0xff]  ;;  %v1106_v60 = vld [vmem:[#allocation5 + $0x1de8] sm:$0xff] }
 0x220   :  { %2180 = vmatmul.mubr.f32.gmra.mxu0 %v141_v61  ;;  %2267 = vmatprep.subr.mxu0 %v1072_v62  ;;  %v1170_v61 = vld [vmem:[#allocation5 + $0x1fe8] sm:$0xff]  ;;  %v1105_v62 = vld [vmem:[#allocation5 + $0x1de0] sm:$0xff] }
 0x221   :  { %2344 = vmatprep.subr.mxu1 %v1136_v63  ;;  %2256 = vmatprep.mubr.f32.mxu1 %v144_v0  ;;  %v1169_v63 = vld [vmem:[#allocation5 + $0x1fe0] sm:$0xff]  ;;  %v1104_v0 = vld [vmem:[#allocation5 + $0x1dd8] sm:$0xff] }
 0x222   :  { %2268 = vmatpush1.msra.mxu0 %v1071_v1  ;;  %2345 = vmatpush1.msra.mxu1 %v1135_v2  ;;  %v1168_v1 = vld [vmem:[#allocation5 + $0x1fd8] sm:$0xff]  ;;  %v1103_v2 = vld [vmem:[#allocation5 + $0x1dd0] sm:$0xff] }
 0x223   :  { %2269 = vmatprep.subr.mxu0 %v1070_v3  ;;  %2257 = vmatmul.mubr.f32.gmra.mxu1 %v143_v4  ;;  %v1167_v3 = vld [vmem:[#allocation5 + $0x1fd0] sm:$0xff]  ;;  %v1102_v4 = vld [vmem:[#allocation5 + $0x1dc8] sm:$0xff] }
 0x224   :  { %2346 = vmatprep.subr.mxu1 %v1134_v5  ;;  %2270 = vmatpush1.msra.mxu0 %v1069_v6  ;;  %v1166_v5 = vld [vmem:[#allocation5 + $0x1fc8] sm:$0xff]  ;;  %v1101_v6 = vld [vmem:[#allocation5 + $0x1dc0] sm:$0xff] }
 0x225   :  { %2347 = vmatpush1.msra.mxu1 %v1133_v7  ;;  %2271 = vmatprep.subr.mxu0 %v1068_v8  ;;  %v1165_v7 = vld [vmem:[#allocation5 + $0x1fc0] sm:$0xff]  ;;  %v1100_v8 = vld [vmem:[#allocation5 + $0x1db8] sm:$0xff] }
 0x226   :  { %2348 = vmatprep.subr.mxu1 %v1132_v9  ;;  %2272 = vmatpush1.msra.mxu0 %v1067_v10  ;;  %v1164_v9 = vld [vmem:[#allocation5 + $0x1fb8] sm:$0xff]  ;;  %v1099_v10 = vld [vmem:[#allocation5 + $0x1db0] sm:$0xff] }
 0x227   :  { %2349 = vmatpush1.msra.mxu1 %v1131_v11  ;;  %2273 = vmatprep.subr.mxu0 %v1066_v12  ;;  %v1163_v11 = vld [vmem:[#allocation5 + $0x1fb0] sm:$0xff]  ;;  %v1098_v12 = vld [vmem:[#allocation5 + $0x1da8] sm:$0xff] }
 0x228   :  { %2350 = vmatprep.subr.mxu1 %v1130_v13  ;;  %2274 = vmatpush1.msra.mxu0 %v1065_v14  ;;  %v1162_v13 = vld [vmem:[#allocation5 + $0x1fa8] sm:$0xff]  ;;  %v1097_v14 = vld [vmem:[#allocation5 + $0x1da0] sm:$0xff] }
 0x229   :  { %2351 = vmatpush1.msra.mxu1 %v1129_v15  ;;  %2275 = vmatprep.subr.mxu0 %v1064_v16  ;;  %v1161_v15 = vld [vmem:[#allocation5 + $0x1fa0] sm:$0xff]  ;;  %v1096_v16 = vld [vmem:[#allocation5 + $0x1d98] sm:$0xff] }
 0x22a   :  { %2352 = vmatprep.subr.mxu1 %v1128_v17  ;;  %2276 = vmatpush1.msra.mxu0 %v1063_v18  ;;  %v1160_v17 = vld [vmem:[#allocation5 + $0x1f98] sm:$0xff]  ;;  %v1095_v18 = vld [vmem:[#allocation5 + $0x1d90] sm:$0xff] }
 0x22b   :  { %2353 = vmatpush1.msra.mxu1 %v1127_v19  ;;  %2277 = vmatprep.subr.mxu0 %v1062_v20  ;;  %v1159_v19 = vld [vmem:[#allocation5 + $0x1f90] sm:$0xff]  ;;  %v1094_v20 = vld [vmem:[#allocation5 + $0x1d88] sm:$0xff] }
 0x22c   :  { %2354 = vmatprep.subr.mxu1 %v1126_v21  ;;  %2278 = vmatpush1.msra.mxu0 %v1061_v22  ;;  %v1158_v21 = vld [vmem:[#allocation5 + $0x1f88] sm:$0xff]  ;;  %v1093_v22 = vld [vmem:[#allocation5 + $0x1d80] sm:$0xff] }
 0x22d   :  { %2355 = vmatpush1.msra.mxu1 %v1125_v23  ;;  %2279 = vmatprep.subr.mxu0 %v1060_v24  ;;  %v1157_v23 = vld [vmem:[#allocation5 + $0x1f80] sm:$0xff]  ;;  %v1092_v24 = vld [vmem:[#allocation5 + $0x1d78] sm:$0xff] }
 0x22e   :  { %2356 = vmatprep.subr.mxu1 %v1124_v25  ;;  %2280 = vmatpush1.msra.mxu0 %v1059_v26  ;;  %v1156_v25 = vld [vmem:[#allocation5 + $0x1f78] sm:$0xff]  ;;  %v1091_v26 = vld [vmem:[#allocation5 + $0x1d70] sm:$0xff] }
 0x22f   :  { %2357 = vmatpush1.msra.mxu1 %v1123_v27  ;;  %2281 = vmatprep.subr.mxu0 %v1058_v28  ;;  %v1155_v27 = vld [vmem:[#allocation5 + $0x1f70] sm:$0xff]  ;;  %v1090_v28 = vld [vmem:[#allocation5 + $0x1d68] sm:$0xff] }
 0x230   :  { %2358 = vmatprep.subr.mxu1 %v1122_v29  ;;  %2282 = vmatpush1.msra.mxu0 %v1057_v30  ;;  %v1154_v29 = vld [vmem:[#allocation5 + $0x1f68] sm:$0xff]  ;;  %v1089_v30 = vld [vmem:[#allocation5 + $0x1d60] sm:$0xff] }
 0x231   :  { %2359 = vmatpush1.msra.mxu1 %v1121_v31  ;;  %2283 = vmatprep.subr.mxu0 %v1056_v32  ;;  %v1153_v31 = vld [vmem:[#allocation5 + $0x1f60] sm:$0xff]  ;;  %v1088_v32 = vld [vmem:[#allocation5 + $0x1d58] sm:$0xff] }
 0x232   :  { %2360 = vmatprep.subr.mxu1 %v1120_v33  ;;  %2284 = vmatpush1.msra.mxu0 %v1055_v34  ;;  %v1152_v33 = vld [vmem:[#allocation5 + $0x1f58] sm:$0xff]  ;;  %v1087_v34 = vld [vmem:[#allocation5 + $0x1d50] sm:$0xff] }
 0x233   :  { %2361 = vmatpush1.msra.mxu1 %v1119_v35  ;;  %2285 = vmatprep.subr.mxu0 %v1054_v36  ;;  %v1151_v35 = vld [vmem:[#allocation5 + $0x1f50] sm:$0xff]  ;;  %v1086_v36 = vld [vmem:[#allocation5 + $0x1d48] sm:$0xff] }
 0x234   :  { %2362 = vmatprep.subr.mxu1 %v1118_v37  ;;  %2286 = vmatpush1.msra.mxu0 %v1053_v38  ;;  %v1150_v37 = vld [vmem:[#allocation5 + $0x1f48] sm:$0xff]  ;;  %v1085_v38 = vld [vmem:[#allocation5 + $0x1d40] sm:$0xff] }
 0x235   :  { %2363 = vmatpush1.msra.mxu1 %v1117_v39  ;;  %2287 = vmatprep.subr.mxu0 %v1052_v40  ;;  %v1149_v39 = vld [vmem:[#allocation5 + $0x1f40] sm:$0xff]  ;;  %v1084_v40 = vld [vmem:[#allocation5 + $0x1d38] sm:$0xff] }
 0x236   :  { %2364 = vmatprep.subr.mxu1 %v1116_v41  ;;  %2288 = vmatpush1.msra.mxu0 %v1051_v42  ;;  %v1148_v41 = vld [vmem:[#allocation5 + $0x1f38] sm:$0xff]  ;;  %v1083_v42 = vld [vmem:[#allocation5 + $0x1d30] sm:$0xff] }
 0x237   :  { %2365 = vmatpush1.msra.mxu1 %v1115_v43  ;;  %2289 = vmatprep.subr.mxu0 %v1050_v44  ;;  %v1147_v43 = vld [vmem:[#allocation5 + $0x1f30] sm:$0xff]  ;;  %v1082_v44 = vld [vmem:[#allocation5 + $0x1d28] sm:$0xff] }
 0x238   :  { %2366 = vmatprep.subr.mxu1 %v1114_v45  ;;  %2290 = vmatpush1.msra.mxu0 %v1049_v46  ;;  %v1146_v45 = vld [vmem:[#allocation5 + $0x1f28] sm:$0xff]  ;;  %v1081_v46 = vld [vmem:[#allocation5 + $0x1d20] sm:$0xff] }
 0x239   :  { %2367 = vmatpush1.msra.mxu1 %v1113_v47  ;;  %2291 = vmatprep.subr.mxu0 %v1048_v48  ;;  %v1145_v47 = vld [vmem:[#allocation5 + $0x1f20] sm:$0xff]  ;;  %v1080_v48 = vld [vmem:[#allocation5 + $0x1d18] sm:$0xff] }
 0x23a   :  { %2368 = vmatprep.subr.mxu1 %v1112_v49  ;;  %2292 = vmatpush1.msra.mxu0 %v1047_v50  ;;  %v1144_v49 = vld [vmem:[#allocation5 + $0x1f18] sm:$0xff]  ;;  %v1079_v50 = vld [vmem:[#allocation5 + $0x1d10] sm:$0xff] }
 0x23b   :  { %2369 = vmatpush1.msra.mxu1 %v1111_v51  ;;  %2293 = vmatprep.subr.mxu0 %v1046_v52  ;;  %v1143_v51 = vld [vmem:[#allocation5 + $0x1f10] sm:$0xff]  ;;  %v1078_v52 = vld [vmem:[#allocation5 + $0x1d08] sm:$0xff] }
 0x23c   :  { %2370 = vmatprep.subr.mxu1 %v1110_v53  ;;  %2294 = vmatpush1.msra.mxu0 %v1045_v54  ;;  %v1142_v53 = vld [vmem:[#allocation5 + $0x1f08] sm:$0xff]  ;;  %v1077_v54 = vld [vmem:[#allocation5 + $0x1d00] sm:$0xff] }
 0x23d   :  { %2371 = vmatpush1.msra.mxu1 %v1109_v55  ;;  %2295 = vmatprep.subr.mxu0 %v1108_v56  ;;  %v114_v55 = vld [vmem:[#allocation2 + $0xe8] sm:$0xff]  ;;  %v1141_v56 = vld [vmem:[#allocation5 + $0x1f00] sm:$0xff] }
 0x23e   :  { %2372 = vmatprep.subr.mxu1 %v1172_v57  ;;  %2296 = vmatpush2.msra.mxu0 %v1107_v58  ;;  %v116_v57 = vld [vmem:[#allocation2 + $0xf8] sm:$0xff]  ;;  %v113_v58 = vld [vmem:[#allocation2 + $0xe0] sm:$0xff] }
 0x23f   :  { %2373 = vmatpush2.msra.mxu1 %v1171_v59  ;;  %2297 = vmatprep.subr.mxu0 %v1106_v60  ;;  %v115_v59 = vld [vmem:[#allocation2 + $0xf0] sm:$0xff]  ;;  %v146_v60 = vld [vmem:[#allocation2 + $0x1e8] sm:$0xff] }
 0x240   :  { %2374 = vmatprep.subr.mxu1 %v1170_v61  ;;  %2298 = vmatpush2.msra.mxu0 %v1105_v62  ;;  %v148_v61 = vld [vmem:[#allocation2 + $0x1f8] sm:$0xff]  ;;  %v145_v62 = vld [vmem:[#allocation2 + $0x1e0] sm:$0xff] }
 0x241   :  { %2375 = vmatpush2.msra.mxu1 %v1169_v63  ;;  %2299 = vmatprep.subr.mxu0 %v1104_v0  ;;  %v147_v63 = vld [vmem:[#allocation2 + $0x1f0] sm:$0xff] }
 0x242   :  { %2376 = vmatprep.subr.mxu1 %v1168_v1  ;;  %2300 = vmatpush2.msra.mxu0 %v1103_v2  ;;  %v2538_v0 = vld [vmem:[#allocation8 + $0x3c8] sm:$0xff]  ;;  %v2540_v1 = vld [vmem:[#allocation8 + $0x3d8] sm:$0xff]  ;;  %v2537_v2 = vld [vmem:[#allocation8 + $0x3c0] sm:$0xff] }
 0x243   :  { %2377 = vmatpush2.msra.mxu1 %v1167_v3  ;;  %2301 = vmatprep.subr.mxu0 %v1102_v4  ;;  %v2539_v3 = vld [vmem:[#allocation8 + $0x3d0] sm:$0xff]  ;;  %v2530_v4 = vld [vmem:[#allocation8 + $0x388] sm:$0xff] }
 0x244   :  { %2378 = vmatprep.subr.mxu1 %v1166_v5  ;;  %2302 = vmatpush2.msra.mxu0 %v1101_v6  ;;  %v2532_v5 = vld [vmem:[#allocation8 + $0x398] sm:$0xff]  ;;  %v2529_v6 = vld [vmem:[#allocation8 + $0x380] sm:$0xff] }
 0x245   :  { %2379 = vmatpush2.msra.mxu1 %v1165_v7  ;;  %2303 = vmatprep.subr.mxu0 %v1100_v8  ;;  %v2531_v7 = vld [vmem:[#allocation8 + $0x390] sm:$0xff]  ;;  %v2522_v8 = vld [vmem:[#allocation8 + $0x348] sm:$0xff] }
 0x246   :  { %2380 = vmatprep.subr.mxu1 %v1164_v9  ;;  %2304 = vmatpush2.msra.mxu0 %v1099_v10  ;;  %v2524_v9 = vld [vmem:[#allocation8 + $0x358] sm:$0xff]  ;;  %v2521_v10 = vld [vmem:[#allocation8 + $0x340] sm:$0xff] }
 0x247   :  { %2381 = vmatpush2.msra.mxu1 %v1163_v11  ;;  %2305 = vmatprep.subr.mxu0 %v1098_v12  ;;  %v2523_v11 = vld [vmem:[#allocation8 + $0x350] sm:$0xff]  ;;  %v2514_v12 = vld [vmem:[#allocation8 + $0x308] sm:$0xff] }
 0x248   :  { %2382 = vmatprep.subr.mxu1 %v1162_v13  ;;  %2306 = vmatpush2.msra.mxu0 %v1097_v14  ;;  %v2516_v13 = vld [vmem:[#allocation8 + $0x318] sm:$0xff]  ;;  %v2513_v14 = vld [vmem:[#allocation8 + $0x300] sm:$0xff] }
 0x249   :  { %2383 = vmatpush2.msra.mxu1 %v1161_v15  ;;  %2307 = vmatprep.subr.mxu0 %v1096_v16  ;;  %v2515_v15 = vld [vmem:[#allocation8 + $0x310] sm:$0xff]  ;;  %v2506_v16 = vld [vmem:[#allocation8 + $0x2c8] sm:$0xff] }
 0x24a   :  { %2384 = vmatprep.subr.mxu1 %v1160_v17  ;;  %2308 = vmatpush2.msra.mxu0 %v1095_v18  ;;  %v2508_v17 = vld [vmem:[#allocation8 + $0x2d8] sm:$0xff]  ;;  %v2505_v18 = vld [vmem:[#allocation8 + $0x2c0] sm:$0xff] }
 0x24b   :  { %2385 = vmatpush2.msra.mxu1 %v1159_v19  ;;  %2309 = vmatprep.subr.mxu0 %v1094_v20  ;;  %v2507_v19 = vld [vmem:[#allocation8 + $0x2d0] sm:$0xff]  ;;  %v2498_v20 = vld [vmem:[#allocation8 + $0x288] sm:$0xff] }
 0x24c   :  { %2386 = vmatprep.subr.mxu1 %v1158_v21  ;;  %2310 = vmatpush2.msra.mxu0 %v1093_v22  ;;  %v2500_v21 = vld [vmem:[#allocation8 + $0x298] sm:$0xff]  ;;  %v2497_v22 = vld [vmem:[#allocation8 + $0x280] sm:$0xff] }
 0x24d   :  { %2387 = vmatpush2.msra.mxu1 %v1157_v23  ;;  %2311 = vmatprep.subr.mxu0 %v1092_v24  ;;  %v2499_v23 = vld [vmem:[#allocation8 + $0x290] sm:$0xff]  ;;  %v2490_v24 = vld [vmem:[#allocation8 + $0x248] sm:$0xff] }
 0x24e   :  { %2388 = vmatprep.subr.mxu1 %v1156_v25  ;;  %2312 = vmatpush2.msra.mxu0 %v1091_v26  ;;  %v2492_v25 = vld [vmem:[#allocation8 + $0x258] sm:$0xff]  ;;  %v2489_v26 = vld [vmem:[#allocation8 + $0x240] sm:$0xff] }
 0x24f   :  { %2389 = vmatpush2.msra.mxu1 %v1155_v27  ;;  %2313 = vmatprep.subr.mxu0 %v1090_v28  ;;  %v2491_v27 = vld [vmem:[#allocation8 + $0x250] sm:$0xff]  ;;  %v2482_v28 = vld [vmem:[#allocation8 + $0x208] sm:$0xff] }
 0x250   :  { %2390 = vmatprep.subr.mxu1 %v1154_v29  ;;  %2314 = vmatpush2.msra.mxu0 %v1089_v30  ;;  %v2484_v29 = vld [vmem:[#allocation8 + $0x218] sm:$0xff]  ;;  %v2481_v30 = vld [vmem:[#allocation8 + $0x200] sm:$0xff] }
 0x251   :  { %2391 = vmatpush2.msra.mxu1 %v1153_v31  ;;  %2315 = vmatprep.subr.mxu0 %v1088_v32  ;;  %v2483_v31 = vld [vmem:[#allocation8 + $0x210] sm:$0xff]  ;;  %v2474_v32 = vld [vmem:[#allocation8 + $0x1c8] sm:$0xff] }
 0x252   :  { %2392 = vmatprep.subr.mxu1 %v1152_v33  ;;  %2316 = vmatpush2.msra.mxu0 %v1087_v34  ;;  %v2476_v33 = vld [vmem:[#allocation8 + $0x1d8] sm:$0xff]  ;;  %v2473_v34 = vld [vmem:[#allocation8 + $0x1c0] sm:$0xff] }
 0x253   :  { %2393 = vmatpush2.msra.mxu1 %v1151_v35  ;;  %2317 = vmatprep.subr.mxu0 %v1086_v36  ;;  %v2475_v35 = vld [vmem:[#allocation8 + $0x1d0] sm:$0xff]  ;;  %v2466_v36 = vld [vmem:[#allocation8 + $0x188] sm:$0xff] }
 0x254   :  { %2394 = vmatprep.subr.mxu1 %v1150_v37  ;;  %2318 = vmatpush2.msra.mxu0 %v1085_v38  ;;  %v2468_v37 = vld [vmem:[#allocation8 + $0x198] sm:$0xff]  ;;  %v2465_v38 = vld [vmem:[#allocation8 + $0x180] sm:$0xff] }
 0x255   :  { %2395 = vmatpush2.msra.mxu1 %v1149_v39  ;;  %2319 = vmatprep.subr.mxu0 %v1084_v40  ;;  %v2467_v39 = vld [vmem:[#allocation8 + $0x190] sm:$0xff]  ;;  %v2458_v40 = vld [vmem:[#allocation8 + $0x148] sm:$0xff] }
 0x256   :  { %2396 = vmatprep.subr.mxu1 %v1148_v41  ;;  %2320 = vmatpush2.msra.mxu0 %v1083_v42  ;;  %v2460_v41 = vld [vmem:[#allocation8 + $0x158] sm:$0xff]  ;;  %v2457_v42 = vld [vmem:[#allocation8 + $0x140] sm:$0xff] }
 0x257   :  { %2397 = vmatpush2.msra.mxu1 %v1147_v43  ;;  %2321 = vmatprep.subr.mxu0 %v1082_v44  ;;  %v2459_v43 = vld [vmem:[#allocation8 + $0x150] sm:$0xff]  ;;  %v2450_v44 = vld [vmem:[#allocation8 + $0x108] sm:$0xff] }
 0x258   :  { %2398 = vmatprep.subr.mxu1 %v1146_v45  ;;  %2322 = vmatpush2.msra.mxu0 %v1081_v46  ;;  %v2452_v45 = vld [vmem:[#allocation8 + $0x118] sm:$0xff]  ;;  %v2449_v46 = vld [vmem:[#allocation8 + $0x100] sm:$0xff] }
 0x259   :  { %2399 = vmatpush2.msra.mxu1 %v1145_v47  ;;  %2323 = vmatprep.subr.mxu0 %v1080_v48  ;;  %v2451_v47 = vld [vmem:[#allocation8 + $0x110] sm:$0xff]  ;;  %v2442_v48 = vld [vmem:[#allocation8 + $0xc8] sm:$0xff] }
 0x25a   :  { %2400 = vmatprep.subr.mxu1 %v1144_v49  ;;  %2324 = vmatpush2.msra.mxu0 %v1079_v50  ;;  %v2444_v49 = vld [vmem:[#allocation8 + $0xd8] sm:$0xff]  ;;  %v2441_v50 = vld [vmem:[#allocation8 + $0xc0] sm:$0xff] }
 0x25b   :  { %2401 = vmatpush2.msra.mxu1 %v1143_v51  ;;  %2325 = vmatprep.subr.mxu0 %v1078_v52  ;;  %v2443_v51 = vld [vmem:[#allocation8 + $0xd0] sm:$0xff]  ;;  %v2434_v52 = vld [vmem:[#allocation8 + $0x88] sm:$0xff] }
 0x25c   :  { %2402 = vmatprep.subr.mxu1 %v1142_v53  ;;  %2326 = vmatpush2.msra.mxu0 %v1077_v54  ;;  %v2436_v53 = vld [vmem:[#allocation8 + $0x98] sm:$0xff]  ;;  %v2433_v54 = vld [vmem:[#allocation8 + $0x80] sm:$0xff] }
 0x25d   :  { %2327 = vmatprep.mubr.f32.mxu0 %v114_v55  ;;  %2403 = vmatpush2.msra.mxu1 %v1141_v56  ;;  %v2435_v55 = vld [vmem:[#allocation8 + $0x90] sm:$0xff]  ;;  %v2426_v56 = vld [vmem:[#allocation8 + $0x48] sm:$0xff] }
 0x25e   :  { %2404 = vmatprep.mubr.f32.mxu1 %v116_v57  ;;  %2328 = vmatmul.mubr.f32.vlgmr.msra.gmra.mxu0 %v113_v58  ;;  %v2428_v57 = vld [vmem:[#allocation8 + $0x58] sm:$0xff]  ;;  %v2425_v58 = vld [vmem:[#allocation8 + $0x40] sm:$0xff] }
 0x25f   :  { %2405 = vmatmul.mubr.f32.vlgmr.msra.gmra.mxu1 %v115_v59  ;;  %2333 = vmatprep.mubr.f32.mxu0 %v146_v60  ;;  %v2427_v59 = vld [vmem:[#allocation8 + $0x50] sm:$0xff]  ;;  %v2418_v60 = vld [vmem:[#allocation8 + $0x8] sm:$0xff] }
 0x260   :  { %2410 = vmatprep.mubr.f32.mxu1 %v148_v61  ;;  %2715 = vmatprep.subr.mxu0 %v2538_v0  ;;  %v2420_v61 = vld [vmem:[#allocation8 + $0x18] sm:$0xff]  ;;  %v2666_v0 = vld [vmem:[#allocation8 + $0x7c8] sm:$0xff] }
 0x261   :  { %2792 = vmatprep.subr.mxu1 %v2540_v1  ;;  %2716 = vmatpush1.msra.mxu0 %v2537_v2  ;;  %v2668_v1 = vld [vmem:[#allocation8 + $0x7d8] sm:$0xff]  ;;  %v2665_v2 = vld [vmem:[#allocation8 + $0x7c0] sm:$0xff] }
 0x262   :  { %2334 = vmatmul.mubr.f32.gmra.mxu0 %v145_v62  ;;  %2793 = vmatpush1.msra.mxu1 %v2539_v3  ;;  %v2417_v62 = vld [vmem:[#allocation8] sm:$0xff]  ;;  %v2667_v3 = vld [vmem:[#allocation8 + $0x7d0] sm:$0xff] }
 0x263   :  { %2411 = vmatmul.mubr.f32.gmra.mxu1 %v147_v63  ;;  %2717 = vmatprep.subr.mxu0 %v2530_v4  ;;  %v2419_v63 = vld [vmem:[#allocation8 + $0x10] sm:$0xff]  ;;  %v2658_v4 = vld [vmem:[#allocation8 + $0x788] sm:$0xff] }
 0x264   :  { %2794 = vmatprep.subr.mxu1 %v2532_v5  ;;  %2718 = vmatpush1.msra.mxu0 %v2529_v6  ;;  %v2660_v5 = vld [vmem:[#allocation8 + $0x798] sm:$0xff]  ;;  %v2657_v6 = vld [vmem:[#allocation8 + $0x780] sm:$0xff] }
 0x265   :  { %2795 = vmatpush1.msra.mxu1 %v2531_v7  ;;  %2719 = vmatprep.subr.mxu0 %v2522_v8  ;;  %v2659_v7 = vld [vmem:[#allocation8 + $0x790] sm:$0xff]  ;;  %v2650_v8 = vld [vmem:[#allocation8 + $0x748] sm:$0xff] }
 0x266   :  { %2796 = vmatprep.subr.mxu1 %v2524_v9  ;;  %2720 = vmatpush1.msra.mxu0 %v2521_v10  ;;  %v2652_v9 = vld [vmem:[#allocation8 + $0x758] sm:$0xff]  ;;  %v2649_v10 = vld [vmem:[#allocation8 + $0x740] sm:$0xff] }
 0x267   :  { %2797 = vmatpush1.msra.mxu1 %v2523_v11  ;;  %2721 = vmatprep.subr.mxu0 %v2514_v12  ;;  %v2651_v11 = vld [vmem:[#allocation8 + $0x750] sm:$0xff]  ;;  %v2642_v12 = vld [vmem:[#allocation8 + $0x708] sm:$0xff] }
 0x268   :  { %2798 = vmatprep.subr.mxu1 %v2516_v13  ;;  %2722 = vmatpush1.msra.mxu0 %v2513_v14  ;;  %v2644_v13 = vld [vmem:[#allocation8 + $0x718] sm:$0xff]  ;;  %v2641_v14 = vld [vmem:[#allocation8 + $0x700] sm:$0xff] }
 0x269   :  { %2799 = vmatpush1.msra.mxu1 %v2515_v15  ;;  %2723 = vmatprep.subr.mxu0 %v2506_v16  ;;  %v2643_v15 = vld [vmem:[#allocation8 + $0x710] sm:$0xff]  ;;  %v2634_v16 = vld [vmem:[#allocation8 + $0x6c8] sm:$0xff] }
 0x26a   :  { %2800 = vmatprep.subr.mxu1 %v2508_v17  ;;  %2724 = vmatpush1.msra.mxu0 %v2505_v18  ;;  %v2636_v17 = vld [vmem:[#allocation8 + $0x6d8] sm:$0xff]  ;;  %v2633_v18 = vld [vmem:[#allocation8 + $0x6c0] sm:$0xff] }
 0x26b   :  { %2801 = vmatpush1.msra.mxu1 %v2507_v19  ;;  %2725 = vmatprep.subr.mxu0 %v2498_v20  ;;  %v2635_v19 = vld [vmem:[#allocation8 + $0x6d0] sm:$0xff]  ;;  %v2626_v20 = vld [vmem:[#allocation8 + $0x688] sm:$0xff] }
 0x26c   :  { %2802 = vmatprep.subr.mxu1 %v2500_v21  ;;  %2726 = vmatpush1.msra.mxu0 %v2497_v22  ;;  %v2628_v21 = vld [vmem:[#allocation8 + $0x698] sm:$0xff]  ;;  %v2625_v22 = vld [vmem:[#allocation8 + $0x680] sm:$0xff] }
 0x26d   :  { %2803 = vmatpush1.msra.mxu1 %v2499_v23  ;;  %2727 = vmatprep.subr.mxu0 %v2490_v24  ;;  %v2627_v23 = vld [vmem:[#allocation8 + $0x690] sm:$0xff]  ;;  %v2618_v24 = vld [vmem:[#allocation8 + $0x648] sm:$0xff] }
 0x26e   :  { %2804 = vmatprep.subr.mxu1 %v2492_v25  ;;  %2728 = vmatpush1.msra.mxu0 %v2489_v26  ;;  %v2620_v25 = vld [vmem:[#allocation8 + $0x658] sm:$0xff]  ;;  %v2617_v26 = vld [vmem:[#allocation8 + $0x640] sm:$0xff] }
 0x26f   :  { %2805 = vmatpush1.msra.mxu1 %v2491_v27  ;;  %2729 = vmatprep.subr.mxu0 %v2482_v28  ;;  %v2619_v27 = vld [vmem:[#allocation8 + $0x650] sm:$0xff]  ;;  %v2610_v28 = vld [vmem:[#allocation8 + $0x608] sm:$0xff] }
 0x270   :  { %2806 = vmatprep.subr.mxu1 %v2484_v29  ;;  %2730 = vmatpush1.msra.mxu0 %v2481_v30  ;;  %v2612_v29 = vld [vmem:[#allocation8 + $0x618] sm:$0xff]  ;;  %v2609_v30 = vld [vmem:[#allocation8 + $0x600] sm:$0xff] }
 0x271   :  { %2807 = vmatpush1.msra.mxu1 %v2483_v31  ;;  %2731 = vmatprep.subr.mxu0 %v2474_v32  ;;  %v2611_v31 = vld [vmem:[#allocation8 + $0x610] sm:$0xff]  ;;  %v2602_v32 = vld [vmem:[#allocation8 + $0x5c8] sm:$0xff] }
 0x272   :  { %2808 = vmatprep.subr.mxu1 %v2476_v33  ;;  %2732 = vmatpush1.msra.mxu0 %v2473_v34  ;;  %v2604_v33 = vld [vmem:[#allocation8 + $0x5d8] sm:$0xff]  ;;  %v2601_v34 = vld [vmem:[#allocation8 + $0x5c0] sm:$0xff] }
 0x273   :  { %2809 = vmatpush1.msra.mxu1 %v2475_v35  ;;  %2733 = vmatprep.subr.mxu0 %v2466_v36  ;;  %v2603_v35 = vld [vmem:[#allocation8 + $0x5d0] sm:$0xff]  ;;  %v2594_v36 = vld [vmem:[#allocation8 + $0x588] sm:$0xff] }
 0x274   :  { %2810 = vmatprep.subr.mxu1 %v2468_v37  ;;  %2734 = vmatpush1.msra.mxu0 %v2465_v38  ;;  %v2596_v37 = vld [vmem:[#allocation8 + $0x598] sm:$0xff]  ;;  %v2593_v38 = vld [vmem:[#allocation8 + $0x580] sm:$0xff] }
 0x275   :  { %2811 = vmatpush1.msra.mxu1 %v2467_v39  ;;  %2735 = vmatprep.subr.mxu0 %v2458_v40  ;;  %v2595_v39 = vld [vmem:[#allocation8 + $0x590] sm:$0xff]  ;;  %v2586_v40 = vld [vmem:[#allocation8 + $0x548] sm:$0xff] }
 0x276   :  { %2812 = vmatprep.subr.mxu1 %v2460_v41  ;;  %2736 = vmatpush1.msra.mxu0 %v2457_v42  ;;  %v2588_v41 = vld [vmem:[#allocation8 + $0x558] sm:$0xff]  ;;  %v2585_v42 = vld [vmem:[#allocation8 + $0x540] sm:$0xff] }
 0x277   :  { %2813 = vmatpush1.msra.mxu1 %v2459_v43  ;;  %2737 = vmatprep.subr.mxu0 %v2450_v44  ;;  %v2587_v43 = vld [vmem:[#allocation8 + $0x550] sm:$0xff]  ;;  %v2578_v44 = vld [vmem:[#allocation8 + $0x508] sm:$0xff] }
 0x278   :  { %2814 = vmatprep.subr.mxu1 %v2452_v45  ;;  %2738 = vmatpush1.msra.mxu0 %v2449_v46  ;;  %v2580_v45 = vld [vmem:[#allocation8 + $0x518] sm:$0xff]  ;;  %v2577_v46 = vld [vmem:[#allocation8 + $0x500] sm:$0xff] }
 0x279   :  { %2815 = vmatpush1.msra.mxu1 %v2451_v47  ;;  %2739 = vmatprep.subr.mxu0 %v2442_v48  ;;  %v2579_v47 = vld [vmem:[#allocation8 + $0x510] sm:$0xff]  ;;  %v2570_v48 = vld [vmem:[#allocation8 + $0x4c8] sm:$0xff] }
 0x27a   :  { %2816 = vmatprep.subr.mxu1 %v2444_v49  ;;  %2740 = vmatpush1.msra.mxu0 %v2441_v50  ;;  %v2572_v49 = vld [vmem:[#allocation8 + $0x4d8] sm:$0xff]  ;;  %v2569_v50 = vld [vmem:[#allocation8 + $0x4c0] sm:$0xff] }
 0x27b   :  { %2817 = vmatpush1.msra.mxu1 %v2443_v51  ;;  %2741 = vmatprep.subr.mxu0 %v2434_v52  ;;  %v2571_v51 = vld [vmem:[#allocation8 + $0x4d0] sm:$0xff]  ;;  %v2562_v52 = vld [vmem:[#allocation8 + $0x488] sm:$0xff] }
 0x27c   :  { %2818 = vmatprep.subr.mxu1 %v2436_v53  ;;  %2742 = vmatpush1.msra.mxu0 %v2433_v54  ;;  %v2564_v53 = vld [vmem:[#allocation8 + $0x498] sm:$0xff]  ;;  %v2561_v54 = vld [vmem:[#allocation8 + $0x480] sm:$0xff] }
 0x27d   :  { %2819 = vmatpush1.msra.mxu1 %v2435_v55  ;;  %2743 = vmatprep.subr.mxu0 %v2426_v56  ;;  %v2563_v55 = vld [vmem:[#allocation8 + $0x490] sm:$0xff]  ;;  %v2554_v56 = vld [vmem:[#allocation8 + $0x448] sm:$0xff] }
 0x27e   :  { %2820 = vmatprep.subr.mxu1 %v2428_v57  ;;  %2744 = vmatpush1.msra.mxu0 %v2425_v58  ;;  %v2556_v57 = vld [vmem:[#allocation8 + $0x458] sm:$0xff]  ;;  %v2553_v58 = vld [vmem:[#allocation8 + $0x440] sm:$0xff] }
 0x27f   :  { %2821 = vmatpush1.msra.mxu1 %v2427_v59  ;;  %2745 = vmatprep.subr.mxu0 %v2418_v60  ;;  %v2555_v59 = vld [vmem:[#allocation8 + $0x450] sm:$0xff]  ;;  %v2546_v60 = vld [vmem:[#allocation8 + $0x408] sm:$0xff] }
 0x280   :  { %2822 = vmatprep.subr.mxu1 %v2420_v61  ;;  %2746 = vmatpush1.msra.mxu0 %v2417_v62  ;;  %v2548_v61 = vld [vmem:[#allocation8 + $0x418] sm:$0xff]  ;;  %v2545_v62 = vld [vmem:[#allocation8 + $0x400] sm:$0xff] }
 0x281   :  { %2823 = vmatpush1.msra.mxu1 %v2419_v63  ;;  %2747 = vmatprep.subr.mxu0 %v2666_v0  ;;  %v2547_v63 = vld [vmem:[#allocation8 + $0x410] sm:$0xff]  ;;  %v2542_v0 = vld [vmem:[#allocation8 + $0x3e8] sm:$0xff] }
 0x282   :  { %2824 = vmatprep.subr.mxu1 %v2668_v1  ;;  %2748 = vmatpush2.msra.mxu0 %v2665_v2  ;;  %v2544_v1 = vld [vmem:[#allocation8 + $0x3f8] sm:$0xff]  ;;  %v1251_v2 = vpop.f32.mrf.mxu0 }
 0x283   :  { %2825 = vmatpush2.msra.mxu1 %v2667_v3  ;;  %2749 = vmatprep.subr.mxu0 %v2658_v4  ;;  %v1328_v3 = vpop.f32.mrf.mxu1 }
 0x284   :  { %2826 = vmatprep.subr.mxu1 %v2660_v5  ;;  %2750 = vmatpush2.msra.mxu0 %v2657_v6  ;;  %v1253_v4 = vpop.f32.mrf.mxu0 }
 0x285   :  { %2827 = vmatpush2.msra.mxu1 %v2659_v7  ;;  %2751 = vmatprep.subr.mxu0 %v2650_v8  ;;  %v1330_v5 = vpop.f32.mrf.mxu1 }
 0x286   :  { %2828 = vmatprep.subr.mxu1 %v2652_v9  ;;  %2752 = vmatpush2.msra.mxu0 %v2649_v10  ;;  %v1257_v6 = vpop.f32.mrf.mxu0 }
 0x287   :  { %2829 = vmatpush2.msra.mxu1 %v2651_v11  ;;  %2753 = vmatprep.subr.mxu0 %v2642_v12  ;;  %v1334_v7 = vpop.f32.mrf.mxu1 }
 0x288   :  { %2830 = vmatprep.subr.mxu1 %v2644_v13  ;;  %2754 = vmatpush2.msra.mxu0 %v2641_v14  ;;  %v1259_v8 = vpop.f32.mrf.mxu0 }
 0x289   :  { %2831 = vmatpush2.msra.mxu1 %v2643_v15  ;;  %2755 = vmatprep.subr.mxu0 %v2634_v16  ;;  %v1336_v9 = vpop.f32.mrf.mxu1 }
 0x28a   :  { %2832 = vmatprep.subr.mxu1 %v2636_v17  ;;  %2756 = vmatpush2.msra.mxu0 %v2633_v18  ;;  %v1405_v10 = vpop.f32.mrf.mxu0 }
 0x28b   :  { %2833 = vmatpush2.msra.mxu1 %v2635_v19  ;;  %2757 = vmatprep.subr.mxu0 %v2626_v20  ;;  %v1482_v11 = vpop.f32.mrf.mxu1 }
 0x28c   :  { %2834 = vmatprep.subr.mxu1 %v2628_v21  ;;  %2758 = vmatpush2.msra.mxu0 %v2625_v22  ;;  %v1407_v12 = vpop.f32.mrf.mxu0 }
 0x28d   :  { %2835 = vmatpush2.msra.mxu1 %v2627_v23  ;;  %2759 = vmatprep.subr.mxu0 %v2618_v24  ;;  %v1484_v13 = vpop.f32.mrf.mxu1 }
 0x28e   :  { %2836 = vmatprep.subr.mxu1 %v2620_v25  ;;  %2760 = vmatpush2.msra.mxu0 %v2617_v26  ;;  %v1411_v14 = vpop.f32.mrf.mxu0  ;;  %v1175_v26 = vlaneseq }
 0x28f   :  { %2837 = vmatpush2.msra.mxu1 %v2619_v27  ;;  %2761 = vmatprep.subr.mxu0 %v2610_v28  ;;  %v1488_v15 = vpop.f32.mrf.mxu1 }
 0x290   :  { %2838 = vmatprep.subr.mxu1 %v2612_v29  ;;  %2762 = vmatpush2.msra.mxu0 %v2609_v30  ;;  %v1413_v16 = vpop.f32.mrf.mxu0  ;;  %v3259_v29 = vshrl.u32 %v1175_v26, 7 }
 0x291   :  { %2839 = vmatpush2.msra.mxu1 %v2611_v31  ;;  %2763 = vmatprep.subr.mxu0 %v2602_v32  ;;  %v1490_v17 = vpop.f32.mrf.mxu1 }
 0x292   :  { %2840 = vmatprep.subr.mxu1 %v2604_v33  ;;  %2764 = vmatpush2.msra.mxu0 %v2601_v34  ;;  %v1559_v18 = vpop.f32.mrf.mxu0  ;;  %v1177_v32 = vsub.s32 0, %v3259_v29 }
 0x293   :  { %2841 = vmatpush2.msra.mxu1 %v2603_v35  ;;  %2765 = vmatprep.subr.mxu0 %v2594_v36  ;;  %v1636_v19 = vpop.f32.mrf.mxu1  ;;  %v1173_v35 = vld [vmem:[#allocation7] sm:$0x3]  ;;  %v1181_v36 = vsub.s32 1, %v3259_v29 }
 0x294   :  { %2842 = vmatprep.subr.mxu1 %v2596_v37  ;;  %2766 = vmatpush2.msra.mxu0 %v2593_v38  ;;  %v1561_v20 = vpop.f32.mrf.mxu0  ;;  %v1178_v37 = vrot.slane %v1173_v35, %v1177_v32 }
 0x295   :  { %2843 = vmatpush2.msra.mxu1 %v2595_v39  ;;  %2767 = vmatprep.subr.mxu0 %v2586_v40  ;;  %v1638_v21 = vpop.f32.mrf.mxu1  ;;  %v1182_v40 = vrot.slane %v1173_v35, %v1181_v36 }
 0x296   :  { %2844 = vmatprep.subr.mxu1 %v2588_v41  ;;  %2768 = vmatpush2.msra.mxu0 %v2585_v42  ;;  %v1565_v22 = vpop.f32.mrf.mxu0 }
 0x297   :  { %2845 = vmatpush2.msra.mxu1 %v2587_v43  ;;  %2769 = vmatprep.subr.mxu0 %v2578_v44  ;;  %v1642_v23 = vpop.f32.mrf.mxu1  ;;  %v1252_v43 = vadd.f32 %v1251_v2, %v1178_v37  ;;  %v1254_v44 = vadd.f32 %v1253_v4, %v1182_v40 }
 0x298   :  { %2846 = vmatprep.subr.mxu1 %v2580_v45  ;;  %2770 = vmatpush2.msra.mxu0 %v2577_v46  ;;  %v1567_v24 = vpop.f32.mrf.mxu0 }
 0x299   :  { %2847 = vmatpush2.msra.mxu1 %v2579_v47  ;;  %2771 = vmatprep.subr.mxu0 %v2570_v48  ;;  %v1644_v25 = vpop.f32.mrf.mxu1  ;;  %v1329_v47 = vadd.f32 %v1328_v3, %v1252_v43  ;;  %v1331_v48 = vadd.f32 %v1330_v5, %v1254_v44 }
 0x29a   :  { %2848 = vmatprep.subr.mxu1 %v2572_v49  ;;  %2772 = vmatpush2.msra.mxu0 %v2569_v50  ;;  %v1713_v27 = vpop.f32.mrf.mxu0  ;;  %v1260_v49 = vadd.f32 %v1259_v8, %v1182_v40  ;;  %v1258_v50 = vadd.f32 %v1257_v6, %v1178_v37 }
 0x29b   :  { %2849 = vmatpush2.msra.mxu1 %v2571_v51  ;;  %2773 = vmatprep.subr.mxu0 %v2562_v52  ;;  %v1790_v28 = vpop.f32.mrf.mxu1  ;;  %v1406_v51 = vadd.f32 %v1405_v10, %v1329_v47 }
 0x29c   :  { %2850 = vmatprep.subr.mxu1 %v2564_v53  ;;  %2774 = vmatpush2.msra.mxu0 %v2561_v54  ;;  %v1715_v30 = vpop.f32.mrf.mxu0  ;;  %v1408_v54 = vadd.f32 %v1407_v12, %v1331_v48 }
 0x29d   :  { %2851 = vmatpush2.msra.mxu1 %v2563_v55  ;;  %2775 = vmatprep.subr.mxu0 %v2554_v56  ;;  %v1792_v31 = vpop.f32.mrf.mxu1  ;;  %v1337_v55 = vadd.f32 %v1336_v9, %v1260_v49  ;;  %v1335_v56 = vadd.f32 %v1334_v7, %v1258_v50 }
 0x29e   :  { %2852 = vmatprep.subr.mxu1 %v2556_v57  ;;  %2776 = vmatpush2.msra.mxu0 %v2553_v58  ;;  %v1719_v33 = vpop.f32.mrf.mxu0  ;;  %v1483_v57 = vadd.f32 %v1482_v11, %v1406_v51 }
 0x29f   :  { %2853 = vmatpush2.msra.mxu1 %v2555_v59  ;;  %2777 = vmatprep.subr.mxu0 %v2546_v60  ;;  %v1796_v34 = vpop.f32.mrf.mxu1  ;;  %v1485_v60 = vadd.f32 %v1484_v13, %v1408_v54 }
 0x2a0   :  { %2854 = vmatprep.subr.mxu1 %v2548_v61  ;;  %2778 = vmatpush2.msra.mxu0 %v2545_v62  ;;  %v1721_v38 = vpop.f32.mrf.mxu0  ;;  %v1414_v61 = vadd.f32 %v1413_v16, %v1337_v55  ;;  %v1412_v62 = vadd.f32 %v1411_v14, %v1335_v56 }
 0x2a1   :  { %2855 = vmatpush2.msra.mxu1 %v2547_v63  ;;  %2869 = vmatprep.subr.mxu0 %v2542_v0  ;;  %v1798_v39 = vpop.f32.mrf.mxu1  ;;  %v1560_v63 = vadd.f32 %v1559_v18, %v1483_v57  ;;  %v1562_v2 = vadd.f32 %v1561_v20, %v1485_v60 }
 0x2a2   :  { %2946 = vmatprep.subr.mxu1 %v2544_v1  ;;  %v1867_v41 = vpop.f32.mrf.mxu0  ;;  %v1491_v3 = vadd.f32 %v1490_v17, %v1414_v61  ;;  %v1489_v4 = vadd.f32 %v1488_v15, %v1412_v62 }
 0x2a3   :  { %v1944_v42 = vpop.f32.mrf.mxu1  ;;  %v1637_v5 = vadd.f32 %v1636_v19, %v1560_v63  ;;  %v1639_v10 = vadd.f32 %v1638_v21, %v1562_v2 }
 0x2a4   :  { %v1869_v45 = vpop.f32.mrf.mxu0  ;;  %v1568_v26 = vadd.f32 %v1567_v24, %v1491_v3  ;;  %v1566_v12 = vadd.f32 %v1565_v22, %v1489_v4 }
 0x2a5   :  { %v1946_v46 = vpop.f32.mrf.mxu1  ;;  %v1714_v9 = vadd.f32 %v1713_v27, %v1637_v5  ;;  %v1716_v7 = vadd.f32 %v1715_v30, %v1639_v10  ;;  %v2541_v10 = vld [vmem:[#allocation8 + $0x3e0] sm:$0xff] }
 0x2a6   :  { %v1873_v52 = vpop.f32.mrf.mxu0  ;;  %v1645_v37 = vadd.f32 %v1644_v25, %v1568_v26  ;;  %v1643_v13 = vadd.f32 %v1642_v23, %v1566_v12  ;;  %v2543_v26 = vld [vmem:[#allocation8 + $0x3f0] sm:$0xff] }
 0x2a7   :  { %v1950_v53 = vpop.f32.mrf.mxu1  ;;  %v1791_v16 = vadd.f32 %v1790_v28, %v1714_v9  ;;  %v1793_v14 = vadd.f32 %v1792_v31, %v1716_v7  ;;  %v2534_v9 = vld [vmem:[#allocation8 + $0x3a8] sm:$0xff]  ;;  %v2536_v7 = vld [vmem:[#allocation8 + $0x3b8] sm:$0xff] }
 0x2a8   :  { %v1875_v58 = vpop.f32.mrf.mxu0  ;;  %v1722_v18 = vadd.f32 %v1721_v38, %v1645_v37  ;;  %v1720_v40 = vadd.f32 %v1719_v33, %v1643_v13  ;;  %v2535_v37 = vld [vmem:[#allocation8 + $0x3b0] sm:$0xff] }
 0x2a9   :  { %v1952_v59 = vpop.f32.mrf.mxu1  ;;  %v1868_v43 = vadd.f32 %v1867_v41, %v1791_v16  ;;  %v1870_v15 = vadd.f32 %v1869_v45, %v1793_v14  ;;  %v2526_v16 = vld [vmem:[#allocation8 + $0x368] sm:$0xff]  ;;  %v2528_v14 = vld [vmem:[#allocation8 + $0x378] sm:$0xff] }
 0x2aa   :  { %v2021_v0 = vpop.f32.mrf.mxu0  ;;  %v1799_v47 = vadd.f32 %v1798_v39, %v1722_v18  ;;  %v1797_v21 = vadd.f32 %v1796_v34, %v1720_v40  ;;  %v2525_v40 = vld [vmem:[#allocation8 + $0x360] sm:$0xff] }
 0x2ab   :  { %v2098_v1 = vpop.f32.mrf.mxu1  ;;  %v1945_v24 = vadd.f32 %v1944_v42, %v1868_v43  ;;  %v1947_v22 = vadd.f32 %v1946_v46, %v1870_v15  ;;  %v2527_v43 = vld [vmem:[#allocation8 + $0x370] sm:$0xff]  ;;  %v2517_v15 = vld [vmem:[#allocation8 + $0x320] sm:$0xff] }
 0x2ac   :  { %v2023_v6 = vpop.f32.mrf.mxu0  ;;  %v1876_v27 = vadd.f32 %v1875_v58, %v1799_v47  ;;  %v1874_v30 = vadd.f32 %v1873_v52, %v1797_v21  ;;  %v2512_v47 = vld [vmem:[#allocation8 + $0x2f8] sm:$0xff]  ;;  %v2509_v21 = vld [vmem:[#allocation8 + $0x2e0] sm:$0xff] }
 0x2ad   :  { %v2100_v8 = vpop.f32.mrf.mxu1  ;;  %v2022_v48 = vadd.f32 %v2021_v0, %v1945_v24  ;;  %v2024_v23 = vadd.f32 %v2023_v6, %v1947_v22  ;;  %v2511_v24 = vld [vmem:[#allocation8 + $0x2f0] sm:$0xff]  ;;  %v2502_v22 = vld [vmem:[#allocation8 + $0x2a8] sm:$0xff] }
 0x2ae   :  { %v2027_v11 = vpop.f32.mrf.mxu0  ;;  %v1953_v28 = vadd.f32 %v1952_v59, %v1876_v27  ;;  %v1951_v31 = vadd.f32 %v1950_v53, %v1874_v30  ;;  %v2504_v27 = vld [vmem:[#allocation8 + $0x2b8] sm:$0xff]  ;;  %v2501_v30 = vld [vmem:[#allocation8 + $0x2a0] sm:$0xff] }
 0x2af   :  { %v2104_v35 = vpop.f32.mrf.mxu1  ;;  %v2099_v38 = vadd.f32 %v2098_v1, %v2022_v48  ;;  %v2101_v50 = vadd.f32 %v2100_v8, %v2024_v23  ;;  %v2503_v48 = vld [vmem:[#allocation8 + $0x2b0] sm:$0xff]  ;;  %v2493_v23 = vld [vmem:[#allocation8 + $0x260] sm:$0xff] }
 0x2b0   :  { %v2029_v20 = vpop.f32.mrf.mxu0  ;;  %v2028_v45 = vadd.f32 %v2027_v11, %v1951_v31  ;;  %v2486_v31 = vld [vmem:[#allocation8 + $0x228] sm:$0xff] }
 0x2b1   :  { %v2106_v17 = vpop.f32.mrf.mxu1  ;;  %v2030_v51 = vadd.f32 %v2029_v20, %v1953_v28  ;;  %v2518_v20 = vld [vmem:[#allocation8 + $0x328] sm:$0xff]  ;;  %v2495_v28 = vld [vmem:[#allocation8 + $0x270] sm:$0xff] }
 0x2b2   :  { %v2105_v46 = vadd.f32 %v2104_v35, %v2028_v45  ;;  %v2533_v35 = vld [vmem:[#allocation8 + $0x3a0] sm:$0xff] }
 0x2b3   :  { %v2107_v42 = vadd.f32 %v2106_v17, %v2030_v51  ;;  %v2520_v17 = vld [vmem:[#allocation8 + $0x338] sm:$0xff]  ;;  %v2477_v45 = vld [vmem:[#allocation8 + $0x1e0] sm:$0xff] }
 0x2b4   :  { %v2480_v51 = vld [vmem:[#allocation8 + $0x1f8] sm:$0xff] }
 0x2da   :  { %v2175_v19 = vpop.f32.mrf.mxu0 }
 0x2db   :  { %v2176_v54 = vadd.f32 %v2175_v19, %v2099_v38  ;;  %v2519_v19 = vld [vmem:[#allocation8 + $0x330] sm:$0xff]  ;;  %v2488_v38 = vld [vmem:[#allocation8 + $0x238] sm:$0xff] }
 0x2dc   :  { %v2252_v44 = vpop.f32.mrf.mxu1  ;;  %v2177_v49 = vpop.f32.mrf.mxu0 }
 0x2dd   :  { %v2178_v55 = vadd.f32 %v2177_v49, %v2101_v50  ;;  %v2253_v56 = vadd.f32 %v2252_v44, %v2176_v54  ;;  %v2510_v44 = vld [vmem:[#allocation8 + $0x2e8] sm:$0xff]  ;;  %v2479_v54 = vld [vmem:[#allocation8 + $0x1f0] sm:$0xff] }
 0x2de   :  { %v2254_v25 = vpop.f32.mrf.mxu1  ;;  %v2494_v49 = vld [vmem:[#allocation8 + $0x268] sm:$0xff] }
 0x2df   :  { %v2255_v58 = vadd.f32 %v2254_v25, %v2178_v55  ;;  %v2496_v25 = vld [vmem:[#allocation8 + $0x278] sm:$0xff]  ;;  %v2478_v50 = vld [vmem:[#allocation8 + $0x1e8] sm:$0xff] }
 0x2e0   :  { %v2181_v33 = vpop.f32.mrf.mxu0  ;;  %v2470_v55 = vld [vmem:[#allocation8 + $0x1a8] sm:$0xff] }
 0x2e1   :  { %v2182_v61 = vadd.f32 %v2181_v33, %v2105_v46  ;;  %v2485_v33 = vld [vmem:[#allocation8 + $0x220] sm:$0xff]  ;;  %v2462_v46 = vld [vmem:[#allocation8 + $0x168] sm:$0xff] }
 0x2e2   :  { %v2183_v39 = vpop.f32.mrf.mxu0 }
 0x2e3   :  { %v2258_v41 = vpop.f32.mrf.mxu1  ;;  %v2184_v60 = vadd.f32 %v2183_v39, %v2107_v42  ;;  %v2472_v39 = vld [vmem:[#allocation8 + $0x1b8] sm:$0xff]  ;;  %v2471_v42 = vld [vmem:[#allocation8 + $0x1b0] sm:$0xff] }
 0x2e4   :  { %v2259_v4 = vadd.f32 %v2258_v41, %v2182_v61  ;;  %v2487_v41 = vld [vmem:[#allocation8 + $0x230] sm:$0xff]  ;;  %v2453_v61 = vld [vmem:[#allocation8 + $0x120] sm:$0xff] }
 0x2e5   :  { %v2260_v34 = vpop.f32.mrf.mxu1 }
 0x2e6   :  { %v2261_v2 = vadd.f32 %v2260_v34, %v2184_v60  ;;  %v2469_v34 = vld [vmem:[#allocation8 + $0x1a0] sm:$0xff]  ;;  %v2456_v60 = vld [vmem:[#allocation8 + $0x138] sm:$0xff] }
 0x31e   :  { %v2329_v52 = vpop.f32.mrf.mxu0 }
 0x31f   :  { %v2406_v57 = vpop.f32.mrf.mxu1  ;;  %v2330_v59 = vadd.f32 %v2329_v52, %v2253_v56  ;;  %v2464_v56 = vld [vmem:[#allocation8 + $0x178] sm:$0xff]  ;;  %v2461_v52 = vld [vmem:[#allocation8 + $0x160] sm:$0xff] }
 0x320   :  { %v2331_v53 = vpop.f32.mrf.mxu0 }
 0x321   :  { %v2408_v62 = vpop.f32.mrf.mxu1  ;;  %v2332_v63 = vadd.f32 %v2331_v53, %v2255_v58  ;;  %v3267_v5 = vadd.f32 %v2406_v57, %v2330_v59  ;;  %v2463_v57 = vld [vmem:[#allocation8 + $0x170] sm:$0xff]  ;;  %v2454_v58 = vld [vmem:[#allocation8 + $0x128] sm:$0xff] }
 0x322   :  { %v2335_v0 = vpop.f32.mrf.mxu0  ;;  %v2455_v59 = vld [vmem:[#allocation8 + $0x130] sm:$0xff]  ;;  %v2446_v53 = vld [vmem:[#allocation8 + $0xe8] sm:$0xff] }
 0x323   :  { %v2412_v1 = vpop.f32.mrf.mxu1  ;;  %v2409_v3 = vadd.f32 %v2408_v62, %v2332_v63  ;;  %v2336_v11 = vadd.f32 %v2335_v0, %v2259_v4  ;;  %v2448_v62 = vld [vmem:[#allocation8 + $0xf8] sm:$0xff]  ;;  %v2445_v63 = vld [vmem:[#allocation8 + $0xe0] sm:$0xff]  ;;  %v2447_v0 = vld [vmem:[#allocation8 + $0xf0] sm:$0xff] }
 0x324   :  { %v2337_v6 = vpop.f32.mrf.mxu0  ;;  %v2439_v4 = vld [vmem:[#allocation8 + $0xb0] sm:$0xff] }
 0x325   :  { %v2414_v8 = vpop.f32.mrf.mxu1  ;;  %v2338_v12 = vadd.f32 %v2337_v6, %v2261_v2  ;;  %2779 = vmatprep.mubr.f32.mxu0 %v2409_v3  ;;  %2856 = vmatprep.mubr.f32.mxu1 %v2409_v3  ;;  %v3273_v18 = vadd.f32 %v2412_v1, %v2336_v11  ;;  %v2438_v1 = vld [vmem:[#allocation8 + $0xa8] sm:$0xff]  ;;  %v2440_v2 = vld [vmem:[#allocation8 + $0xb8] sm:$0xff]  ;;  %v2423_v11 = vld [vmem:[#allocation8 + $0x30] sm:$0xff] }
 0x326   :  { %2780 = vmatmul.mubr.f32.vlgmr.msra.gmra.mxu0 %v3267_v5  ;;  %2857 = vmatmul.mubr.f32.vlgmr.msra.gmra.mxu1 %v3267_v5  ;;  %v2430_v6 = vld [vmem:[#allocation8 + $0x68] sm:$0xff] }
 0x327   :  { %v3271_v13 = vadd.f32 %v2414_v8, %v2338_v12  ;;  %2870 = vmatpush1.msra.mxu0 %v2541_v10  ;;  %2947 = vmatpush1.msra.mxu1 %v2543_v26  ;;  %v2432_v8 = vld [vmem:[#allocation8 + $0x78] sm:$0xff]  ;;  %v2429_v10 = vld [vmem:[#allocation8 + $0x60] sm:$0xff]  ;;  %v2431_v26 = vld [vmem:[#allocation8 + $0x70] sm:$0xff] }
 0x328   :  { %2871 = vmatprep.subr.mxu0 %v2534_v9  ;;  %2948 = vmatprep.subr.mxu1 %v2536_v7  ;;  %v2422_v12 = vld [vmem:[#allocation8 + $0x28] sm:$0xff]  ;;  %v2424_v9 = vld [vmem:[#allocation8 + $0x38] sm:$0xff]  ;;  %v2421_v7 = vld [vmem:[#allocation8 + $0x20] sm:$0xff] }
 0x329   :  { %2872 = vmatpush1.msra.mxu0 %v2533_v35  ;;  %2949 = vmatpush1.msra.mxu1 %v2535_v37  ;;  %v2670_v35 = vld [vmem:[#allocation8 + $0x7e8] sm:$0xff]  ;;  %v2672_v37 = vld [vmem:[#allocation8 + $0x7f8] sm:$0xff] }
 0x32a   :  { %2785 = vmatprep.mubr.f32.mxu0 %v3271_v13  ;;  %2862 = vmatprep.mubr.f32.mxu1 %v3271_v13 }
 0x32b   :  { %2873 = vmatprep.subr.mxu0 %v2526_v16  ;;  %2950 = vmatprep.subr.mxu1 %v2528_v14  ;;  %v2669_v16 = vld [vmem:[#allocation8 + $0x7e0] sm:$0xff]  ;;  %v2671_v14 = vld [vmem:[#allocation8 + $0x7f0] sm:$0xff] }
 0x32c   :  { %2786 = vmatmul.mubr.f32.gmra.mxu0 %v3273_v18  ;;  %2863 = vmatmul.mubr.f32.gmra.mxu1 %v3273_v18 }
 0x32d   :  { %2874 = vmatpush1.msra.mxu0 %v2525_v40  ;;  %2951 = vmatpush1.msra.mxu1 %v2527_v43  ;;  %v2662_v40 = vld [vmem:[#allocation8 + $0x7a8] sm:$0xff]  ;;  %v2664_v43 = vld [vmem:[#allocation8 + $0x7b8] sm:$0xff] }
 0x32e   :  { %2875 = vmatprep.subr.mxu0 %v2518_v20  ;;  %2933 = vmatprep.mubr.f32.mxu0 %v2409_v3  ;;  %v2661_v20 = vld [vmem:[#allocation8 + $0x7a0] sm:$0xff] }
 0x32f   :  { %2952 = vmatprep.subr.mxu1 %v2520_v17  ;;  %3010 = vmatprep.mubr.f32.mxu1 %v2409_v3  ;;  %v2437_v3 = vld [vmem:[#allocation8 + $0xa0] sm:$0xff]  ;;  %v2663_v17 = vld [vmem:[#allocation8 + $0x7b0] sm:$0xff] }
 0x330   :  { %2876 = vmatpush1.msra.mxu0 %v2517_v15  ;;  %2953 = vmatpush1.msra.mxu1 %v2519_v19  ;;  %v2654_v15 = vld [vmem:[#allocation8 + $0x768] sm:$0xff]  ;;  %v2656_v19 = vld [vmem:[#allocation8 + $0x778] sm:$0xff] }
 0x331   :  { %2877 = vmatprep.subr.mxu0 %v2510_v44  ;;  %2954 = vmatprep.subr.mxu1 %v2512_v47  ;;  %v2653_v44 = vld [vmem:[#allocation8 + $0x760] sm:$0xff]  ;;  %v2655_v47 = vld [vmem:[#allocation8 + $0x770] sm:$0xff] }
 0x332   :  { %2878 = vmatpush1.msra.mxu0 %v2509_v21  ;;  %2955 = vmatpush1.msra.mxu1 %v2511_v24  ;;  %v2646_v21 = vld [vmem:[#allocation8 + $0x728] sm:$0xff]  ;;  %v2648_v24 = vld [vmem:[#allocation8 + $0x738] sm:$0xff] }
 0x333   :  { %2879 = vmatprep.subr.mxu0 %v2502_v22  ;;  %2956 = vmatprep.subr.mxu1 %v2504_v27  ;;  %v2645_v22 = vld [vmem:[#allocation8 + $0x720] sm:$0xff]  ;;  %v2647_v27 = vld [vmem:[#allocation8 + $0x730] sm:$0xff] }
 0x334   :  { %2880 = vmatpush1.msra.mxu0 %v2501_v30  ;;  %2957 = vmatpush1.msra.mxu1 %v2503_v48  ;;  %v2638_v30 = vld [vmem:[#allocation8 + $0x6e8] sm:$0xff]  ;;  %v2640_v48 = vld [vmem:[#allocation8 + $0x6f8] sm:$0xff] }
 0x335   :  { %2881 = vmatprep.subr.mxu0 %v2494_v49  ;;  %2958 = vmatprep.subr.mxu1 %v2496_v25  ;;  %v2637_v49 = vld [vmem:[#allocation8 + $0x6e0] sm:$0xff]  ;;  %v2639_v25 = vld [vmem:[#allocation8 + $0x6f0] sm:$0xff] }
 0x336   :  { %2882 = vmatpush1.msra.mxu0 %v2493_v23  ;;  %2959 = vmatpush1.msra.mxu1 %v2495_v28  ;;  %v2630_v23 = vld [vmem:[#allocation8 + $0x6a8] sm:$0xff]  ;;  %v2632_v28 = vld [vmem:[#allocation8 + $0x6b8] sm:$0xff] }
 0x337   :  { %2883 = vmatprep.subr.mxu0 %v2486_v31  ;;  %2960 = vmatprep.subr.mxu1 %v2488_v38  ;;  %v2629_v31 = vld [vmem:[#allocation8 + $0x6a0] sm:$0xff]  ;;  %v2631_v38 = vld [vmem:[#allocation8 + $0x6b0] sm:$0xff] }
 0x338   :  { %2884 = vmatpush1.msra.mxu0 %v2485_v33  ;;  %2961 = vmatpush1.msra.mxu1 %v2487_v41  ;;  %v2622_v33 = vld [vmem:[#allocation8 + $0x668] sm:$0xff]  ;;  %v2624_v41 = vld [vmem:[#allocation8 + $0x678] sm:$0xff] }
 0x339   :  { %2885 = vmatprep.subr.mxu0 %v2478_v50  ;;  %2962 = vmatprep.subr.mxu1 %v2480_v51  ;;  %v2621_v50 = vld [vmem:[#allocation8 + $0x660] sm:$0xff]  ;;  %v2623_v51 = vld [vmem:[#allocation8 + $0x670] sm:$0xff] }
 0x33a   :  { %2886 = vmatpush1.msra.mxu0 %v2477_v45  ;;  %2963 = vmatpush1.msra.mxu1 %v2479_v54  ;;  %v2614_v45 = vld [vmem:[#allocation8 + $0x628] sm:$0xff]  ;;  %v2616_v54 = vld [vmem:[#allocation8 + $0x638] sm:$0xff] }
 0x33b   :  { %2887 = vmatprep.subr.mxu0 %v2470_v55  ;;  %2964 = vmatprep.subr.mxu1 %v2472_v39  ;;  %v2613_v55 = vld [vmem:[#allocation8 + $0x620] sm:$0xff]  ;;  %v2615_v39 = vld [vmem:[#allocation8 + $0x630] sm:$0xff] }
 0x33c   :  { %2888 = vmatpush1.msra.mxu0 %v2469_v34  ;;  %2965 = vmatpush1.msra.mxu1 %v2471_v42  ;;  %v2606_v34 = vld [vmem:[#allocation8 + $0x5e8] sm:$0xff]  ;;  %v2608_v42 = vld [vmem:[#allocation8 + $0x5f8] sm:$0xff] }
 0x33d   :  { %2889 = vmatprep.subr.mxu0 %v2462_v46  ;;  %2966 = vmatprep.subr.mxu1 %v2464_v56  ;;  %v2605_v46 = vld [vmem:[#allocation8 + $0x5e0] sm:$0xff]  ;;  %v2607_v56 = vld [vmem:[#allocation8 + $0x5f0] sm:$0xff] }
 0x33e   :  { %2890 = vmatpush1.msra.mxu0 %v2461_v52  ;;  %2967 = vmatpush1.msra.mxu1 %v2463_v57  ;;  %v2598_v52 = vld [vmem:[#allocation8 + $0x5a8] sm:$0xff]  ;;  %v2600_v57 = vld [vmem:[#allocation8 + $0x5b8] sm:$0xff] }
 0x33f   :  { %2891 = vmatprep.subr.mxu0 %v2454_v58  ;;  %2968 = vmatprep.subr.mxu1 %v2456_v60  ;;  %v2597_v58 = vld [vmem:[#allocation8 + $0x5a0] sm:$0xff]  ;;  %v2599_v60 = vld [vmem:[#allocation8 + $0x5b0] sm:$0xff] }
 0x340   :  { %2892 = vmatpush1.msra.mxu0 %v2453_v61  ;;  %2969 = vmatpush1.msra.mxu1 %v2455_v59  ;;  %v2590_v61 = vld [vmem:[#allocation8 + $0x568] sm:$0xff]  ;;  %v2592_v59 = vld [vmem:[#allocation8 + $0x578] sm:$0xff] }
 0x341   :  { %2893 = vmatprep.subr.mxu0 %v2446_v53  ;;  %2970 = vmatprep.subr.mxu1 %v2448_v62  ;;  %v2589_v53 = vld [vmem:[#allocation8 + $0x560] sm:$0xff]  ;;  %v2591_v62 = vld [vmem:[#allocation8 + $0x570] sm:$0xff] }
 0x342   :  { %2894 = vmatpush1.msra.mxu0 %v2445_v63  ;;  %2971 = vmatpush1.msra.mxu1 %v2447_v0  ;;  %v2582_v63 = vld [vmem:[#allocation8 + $0x528] sm:$0xff]  ;;  %v2584_v0 = vld [vmem:[#allocation8 + $0x538] sm:$0xff] }
 0x343   :  { %2895 = vmatprep.subr.mxu0 %v2438_v1  ;;  %2972 = vmatprep.subr.mxu1 %v2440_v2  ;;  %v2581_v1 = vld [vmem:[#allocation8 + $0x520] sm:$0xff]  ;;  %v2583_v2 = vld [vmem:[#allocation8 + $0x530] sm:$0xff] }
 0x344   :  { %2896 = vmatpush1.msra.mxu0 %v2437_v3  ;;  %2973 = vmatpush1.msra.mxu1 %v2439_v4  ;;  %v2574_v3 = vld [vmem:[#allocation8 + $0x4e8] sm:$0xff]  ;;  %v2576_v4 = vld [vmem:[#allocation8 + $0x4f8] sm:$0xff] }
 0x345   :  { %2897 = vmatprep.subr.mxu0 %v2430_v6  ;;  %2974 = vmatprep.subr.mxu1 %v2432_v8  ;;  %v2573_v6 = vld [vmem:[#allocation8 + $0x4e0] sm:$0xff]  ;;  %v2575_v8 = vld [vmem:[#allocation8 + $0x4f0] sm:$0xff] }
 0x346   :  { %2898 = vmatpush1.msra.mxu0 %v2429_v10  ;;  %2975 = vmatpush1.msra.mxu1 %v2431_v26  ;;  %v2566_v10 = vld [vmem:[#allocation8 + $0x4a8] sm:$0xff]  ;;  %v2568_v26 = vld [vmem:[#allocation8 + $0x4b8] sm:$0xff] }
 0x347   :  { %2899 = vmatprep.subr.mxu0 %v2422_v12  ;;  %2976 = vmatprep.subr.mxu1 %v2424_v9  ;;  %v2565_v12 = vld [vmem:[#allocation8 + $0x4a0] sm:$0xff]  ;;  %v2567_v9 = vld [vmem:[#allocation8 + $0x4b0] sm:$0xff] }
 0x348   :  { %2900 = vmatpush1.msra.mxu0 %v2421_v7  ;;  %2977 = vmatpush1.msra.mxu1 %v2423_v11  ;;  %v2558_v7 = vld [vmem:[#allocation8 + $0x468] sm:$0xff]  ;;  %v2560_v11 = vld [vmem:[#allocation8 + $0x478] sm:$0xff] }
 0x349   :  { %2901 = vmatprep.subr.mxu0 %v2670_v35  ;;  %2978 = vmatprep.subr.mxu1 %v2672_v37  ;;  %v2557_v35 = vld [vmem:[#allocation8 + $0x460] sm:$0xff]  ;;  %v2559_v37 = vld [vmem:[#allocation8 + $0x470] sm:$0xff] }
 0x34a   :  { %2902 = vmatpush2.msra.mxu0 %v2669_v16  ;;  %2979 = vmatpush2.msra.mxu1 %v2671_v14  ;;  %v2550_v16 = vld [vmem:[#allocation8 + $0x428] sm:$0xff]  ;;  %v2552_v14 = vld [vmem:[#allocation8 + $0x438] sm:$0xff] }
 0x34b   :  { %2903 = vmatprep.subr.mxu0 %v2662_v40  ;;  %2980 = vmatprep.subr.mxu1 %v2664_v43  ;;  %v2549_v40 = vld [vmem:[#allocation8 + $0x420] sm:$0xff]  ;;  %v2551_v43 = vld [vmem:[#allocation8 + $0x430] sm:$0xff] }
 0x34c   :  { %2904 = vmatpush2.msra.mxu0 %v2661_v20  ;;  %2981 = vmatpush2.msra.mxu1 %v2663_v17  ;;  %v2685_v20 = vsub.s32 2, %v3259_v29  ;;  %v2673_v17 = vld [vmem:[#allocation10] sm:$0xff] }
 0x34d   :  { %2905 = vmatprep.subr.mxu0 %v2654_v15  ;;  %2982 = vmatprep.subr.mxu1 %v2656_v19  ;;  %v2689_v15 = vsub.s32 3, %v3259_v29  ;;  %v2678_v19 = vrot.slane %v2673_v17, %v1177_v32 }
 0x34e   :  { %2906 = vmatpush2.msra.mxu0 %v2653_v44  ;;  %2983 = vmatpush2.msra.mxu1 %v2655_v47  ;;  %v2686_v44 = vrot.slane %v2673_v17, %v2685_v20 }
 0x34f   :  { %2907 = vmatprep.subr.mxu0 %v2646_v21  ;;  %2984 = vmatprep.subr.mxu1 %v2648_v24  ;;  %v2690_v47 = vrot.slane %v2673_v17, %v2689_v15 }
 0x350   :  { %2908 = vmatpush2.msra.mxu0 %v2645_v22  ;;  %2985 = vmatpush2.msra.mxu1 %v2647_v27 }
 0x351   :  { %2909 = vmatprep.subr.mxu0 %v2638_v30  ;;  %2986 = vmatprep.subr.mxu1 %v2640_v48 }
 0x352   :  { %2910 = vmatpush2.msra.mxu0 %v2637_v49  ;;  %2987 = vmatpush2.msra.mxu1 %v2639_v25 }
 0x353   :  { %2911 = vmatprep.subr.mxu0 %v2630_v23  ;;  %2988 = vmatprep.subr.mxu1 %v2632_v28 }
 0x354   :  { %2912 = vmatpush2.msra.mxu0 %v2629_v31  ;;  %2989 = vmatpush2.msra.mxu1 %v2631_v38 }
 0x355   :  { %2913 = vmatprep.subr.mxu0 %v2622_v33  ;;  %2990 = vmatprep.subr.mxu1 %v2624_v41  ;;  %v2693_v33 = vsub.s32 4, %v3259_v29  ;;  %v2701_v41 = vsub.s32 6, %v3259_v29 }
 0x356   :  { %2914 = vmatpush2.msra.mxu0 %v2621_v50  ;;  %2991 = vmatpush2.msra.mxu1 %v2623_v51  ;;  %v2697_v50 = vsub.s32 5, %v3259_v29  ;;  %v2705_v51 = vsub.s32 7, %v3259_v29 }
 0x357   :  { %2915 = vmatprep.subr.mxu0 %v2614_v45  ;;  %2992 = vmatprep.subr.mxu1 %v2616_v54  ;;  %v2694_v45 = vrot.slane %v2673_v17, %v2693_v33  ;;  %v2702_v54 = vrot.slane %v2673_v17, %v2701_v41 }
 0x358   :  { %2916 = vmatpush2.msra.mxu0 %v2613_v55  ;;  %2993 = vmatpush2.msra.mxu1 %v2615_v39  ;;  %v2698_v55 = vrot.slane %v2673_v17, %v2697_v50  ;;  %v2706_v39 = vrot.slane %v2673_v17, %v2705_v51 }
 0x359   :  { %2917 = vmatprep.subr.mxu0 %v2606_v34  ;;  %2994 = vmatprep.subr.mxu1 %v2608_v42 }
 0x35a   :  { %2918 = vmatpush2.msra.mxu0 %v2605_v46  ;;  %2995 = vmatpush2.msra.mxu1 %v2607_v56 }
 0x35b   :  { %2919 = vmatprep.subr.mxu0 %v2598_v52  ;;  %2996 = vmatprep.subr.mxu1 %v2600_v57 }
 0x35c   :  { %2920 = vmatpush2.msra.mxu0 %v2597_v58  ;;  %2997 = vmatpush2.msra.mxu1 %v2599_v60 }
 0x35d   :  { %2921 = vmatprep.subr.mxu0 %v2590_v61  ;;  %2998 = vmatprep.subr.mxu1 %v2592_v59 }
 0x35e   :  { %2922 = vmatpush2.msra.mxu0 %v2589_v53  ;;  %2999 = vmatpush2.msra.mxu1 %v2591_v62 }
 0x35f   :  { %2923 = vmatprep.subr.mxu0 %v2582_v63  ;;  %3000 = vmatprep.subr.mxu1 %v2584_v0 }
 0x360   :  { %2924 = vmatpush2.msra.mxu0 %v2581_v1  ;;  %3001 = vmatpush2.msra.mxu1 %v2583_v2 }
 0x361   :  { %2925 = vmatprep.subr.mxu0 %v2574_v3  ;;  %3002 = vmatprep.subr.mxu1 %v2576_v4 }
 0x362   :  { %2926 = vmatpush2.msra.mxu0 %v2573_v6  ;;  %3003 = vmatpush2.msra.mxu1 %v2575_v8 }
 0x363   :  { %2927 = vmatprep.subr.mxu0 %v2566_v10  ;;  %3004 = vmatprep.subr.mxu1 %v2568_v26 }
 0x364   :  { %2928 = vmatpush2.msra.mxu0 %v2565_v12  ;;  %3005 = vmatpush2.msra.mxu1 %v2567_v9 }
 0x365   :  { %2929 = vmatprep.subr.mxu0 %v2558_v7  ;;  %3006 = vmatprep.subr.mxu1 %v2560_v11 }
 0x366   :  { %2930 = vmatpush2.msra.mxu0 %v2557_v35  ;;  %3007 = vmatpush2.msra.mxu1 %v2559_v37 }
 0x367   :  { %2931 = vmatprep.subr.mxu0 %v2550_v16  ;;  %3008 = vmatprep.subr.mxu1 %v2552_v14 }
 0x368   :  { %2932 = vmatpush2.msra.mxu0 %v2549_v40  ;;  %3009 = vmatpush2.msra.mxu1 %v2551_v43 }
 0x369   :  { %2934 = vmatmul.mubr.f32.vlgmr.msra.gmra.mxu0 %v3267_v5  ;;  %3011 = vmatmul.mubr.f32.vlgmr.msra.gmra.mxu1 %v3267_v5  ;;  %v2682_v5 = vrot.slane %v2673_v17, %v1181_v36 }
 0x36a   :  { %2939 = vmatprep.mubr.f32.mxu0 %v3271_v13  ;;  %3016 = vmatprep.mubr.f32.mxu1 %v3271_v13 }
 0x36d   :  { %2940 = vmatmul.mubr.f32.gmra.mxu0 %v3273_v18  ;;  %3017 = vmatmul.mubr.f32.gmra.mxu1 %v3273_v18 }
 0x3e6   :  { %v2781_v21 = vpop.f32.mrf.mxu0  ;;  %v2858_v24 = vpop.f32.mrf.mxu1 }
 0x3e7   :  { %v2782_v13 = vadd.f32 %v2781_v21, %v2678_v19  ;;  %v2859_v22 = vadd.f32 %v2858_v24, %v2686_v44 }
 0x3e8   :  { %v2783_v27 = vpop.f32.mrf.mxu0  ;;  %v2860_v30 = vpop.f32.mrf.mxu1 }
 0x3e9   :  { %3023 = vst [vmem:[#allocation11] sm:$0xff] %v2782_v13  ;;  %3025 = vst [vmem:[#allocation11 + $0x10] sm:$0xff] %v2859_v22  ;;  %v2784_v18 = vadd.f32 %v2783_v27, %v2682_v5  ;;  %v2861_v48 = vadd.f32 %v2860_v30, %v2690_v47 }
 0x3eb   :  { %3024 = vst [vmem:[#allocation11 + $0x8] sm:$0xff] %v2784_v18  ;;  %3026 = vst [vmem:[#allocation11 + $0x18] sm:$0xff] %v2861_v48 }
 0x3ec   :  { %v2787_v49 = vpop.f32.mrf.mxu0  ;;  %v2864_v25 = vpop.f32.mrf.mxu1 }
 0x3ed   :  { %v2788_v32 = vadd.f32 %v2787_v49, %v2678_v19  ;;  %v2865_v23 = vadd.f32 %v2864_v25, %v2686_v44 }
 0x3ee   :  { %v2789_v28 = vpop.f32.mrf.mxu0  ;;  %v2866_v31 = vpop.f32.mrf.mxu1 }
 0x3ef   :  { %3031 = vst [vmem:[#allocation11 + $0x40] sm:$0xff] %v2788_v32  ;;  %3033 = vst [vmem:[#allocation11 + $0x50] sm:$0xff] %v2865_v23  ;;  %v2790_v36 = vadd.f32 %v2789_v28, %v2682_v5  ;;  %v2867_v38 = vadd.f32 %v2866_v31, %v2690_v47 }
 0x3f1   :  { %3032 = vst [vmem:[#allocation11 + $0x48] sm:$0xff] %v2790_v36  ;;  %3034 = vst [vmem:[#allocation11 + $0x58] sm:$0xff] %v2867_v38 }
 0x429   :  { %v2935_v34 = vpop.f32.mrf.mxu0  ;;  %v3012_v42 = vpop.f32.mrf.mxu1 }
 0x42a   :  { %v2936_v46 = vadd.f32 %v2935_v34, %v2694_v45  ;;  %v3013_v56 = vadd.f32 %v3012_v42, %v2702_v54 }
 0x42b   :  { %v2937_v52 = vpop.f32.mrf.mxu0  ;;  %v3014_v57 = vpop.f32.mrf.mxu1 }
 0x42c   :  { %3027 = vst [vmem:[#allocation11 + $0x20] sm:$0xff] %v2936_v46  ;;  %3029 = vst [vmem:[#allocation11 + $0x30] sm:$0xff] %v3013_v56  ;;  %v2938_v58 = vadd.f32 %v2937_v52, %v2698_v55  ;;  %v3015_v60 = vadd.f32 %v3014_v57, %v2706_v39 }
 0x42d   :  { %v2941_v61 = vpop.f32.mrf.mxu0  ;;  %v3018_v59 = vpop.f32.mrf.mxu1 }
 0x42e   :  { %3028 = vst [vmem:[#allocation11 + $0x28] sm:$0xff] %v2938_v58  ;;  %3030 = vst [vmem:[#allocation11 + $0x38] sm:$0xff] %v3015_v60  ;;  %v2942_v29 = vadd.f32 %v2941_v61, %v2694_v45  ;;  %v3019_v53 = vadd.f32 %v3018_v59, %v2702_v54 }
 0x42f   :  { %v2943_v62 = vpop.f32.mrf.mxu0  ;;  %v3020_v63 = vpop.f32.mrf.mxu1 }
 0x430   :  { %3035 = vst [vmem:[#allocation11 + $0x60] sm:$0xff] %v2942_v29  ;;  %3037 = vst [vmem:[#allocation11 + $0x70] sm:$0xff] %v3019_v53  ;;  %v2944_v0 = vadd.f32 %v2943_v62, %v2698_v55  ;;  %v3021_v1 = vadd.f32 %v3020_v63, %v2706_v39 }
 0x432   :  { %3036 = vst [vmem:[#allocation11 + $0x68] sm:$0xff] %v2944_v0  ;;  %3038 = vst [vmem:[#allocation11 + $0x78] sm:$0xff] %v3021_v1 }
 0x433   :  { %3180 = shalt.err (!%p3177_p1)
}
 0x434   :  { %3050 = dma.vmem_to_hbm [thread:$0]  %s3045_s4, 2048, %s3306_s5, [#allocation4], %s3201_s28, %s3201_s28, %s3202_s29  }
 0x435   :  { %3195 = dma.done.wait [#allocation4], 2048  }
 0x436   :  { %3196 = vsyncadd [#allocation4], 4294965248 }
 0x437   :  { %3054 = vsyncpa [#allocation3], 1 }
 0x438   :  { %3055 = vsyncpa [#allocation6], 1 }
 0x439   :  { %3056 = vsyncpa [#allocation9], 1 }
 0x43a   :  { %3057 = vsyncpa [#allocation4], 1 }

</bundles_post_ra>
